<compile_context>
chip_gen: v7x
topology: tpu7x:2x2x1
jax: 0.10.0
libtpu: 0.0.40
codegen_flags: <defaults>
</compile_context>

<pallas_src>
from functools import partial

import jax
import jax.numpy as jnp
from jax import lax
from jax.experimental import pallas as pl
from jax.experimental.pallas import tpu as pltpu

HIDDEN_DIM = 100
N_LAYERS = 1
LANE = 128
BP_MIN = 8                      # f32 sublane tile
MATMUL_DTYPE = jnp.float32      # jnp.bfloat16 on v6e/v7x for ~3x serial matmuls


def _round_up(x, m):
    return (x + m - 1) // m * m


def _full_spec(shape):
    # whole-array block, gridless call
    return pl.BlockSpec(shape, lambda: tuple(0 for _ in shape))


def _pad_gate_cols(w2d, H, Hp):
    """(rows, 4H) -> (rows, 4Hp); gate block k placed at [k*Hp, k*Hp+H), pads=0."""
    rows = w2d.shape[0]
    out = jnp.zeros((rows, 4 * Hp), w2d.dtype)
    for k in range(4):
        out = out.at[:, k * Hp:k * Hp + H].set(w2d[:, k * H:(k + 1) * H])
    return out


# ---------------------------------------------------------------------------
# One-time parameter preparation (hoisted out of the per-call forward).
# ---------------------------------------------------------------------------
def prepare_params(params, matmul_dtype=jnp.float32):
    """Returns lane-aligned, zero-padded, gate-scaled tensors:

      gtab : (Vr, 4*Hp)  fused  emb @ W_ih_scaled + (b_ih+b_hh)_scaled ; gate
             block k occupies cols [k*Hp, k*Hp+H); i/f/o blocks pre-scaled 0.5
             so sigmoid becomes 0.5*tanh(.)+0.5 (one tanh per step in-kernel).
      w_hh : (Hp, 4*Hp)  recurrent weights, same scaling / padding.
      w_fc : (Hp, Vp)    output projection,  b_fc : (1, Vp).
    Pad rows/cols are zero, so pad lanes of h/c provably stay zero.
    """
    emb = params["embedding"].astype(jnp.float32)
    V, _E = emb.shape
    H = HIDDEN_DIM
    Hp = _round_up(H, LANE)
    Vp = _round_up(V, LANE)
    Vr = _round_up(V, LANE)    # table rows padded -> one-hot matmul fully tile-aligned

    # 0.5 pre-scale for the sigmoid gates; PyTorch gate order (i, f, g, o).
    scale = jnp.concatenate([jnp.full((H,), s, jnp.float32)
                             for s in (0.5, 0.5, 1.0, 0.5)])            # (4H,)

    w_ih_s = params["w_ih"].astype(jnp.float32).T * scale[None, :]      # (E, 4H)
    w_hh_s = params["w_hh"].astype(jnp.float32).T * scale[None, :]      # (H, 4H)
    b_s = (params["b_ih"] + params["b_hh"]).astype(jnp.float32) * scale  # (4H,)

    gtab = emb @ w_ih_s + b_s[None, :]                                  # (V, 4H)
    gtab_p = jnp.pad(_pad_gate_cols(gtab, H, Hp), ((0, Vr - V), (0, 0)))

    w_hh_p = jnp.pad(_pad_gate_cols(w_hh_s, H, Hp), ((0, Hp - H), (0, 0)))

    w_fc_p = jnp.pad(params["w_fc"].astype(jnp.float32).T,
                     ((0, Hp - H), (0, Vp - V)))                        # (Hp, Vp)
    b_fc_p = jnp.pad(params["b_fc"].astype(jnp.float32),
                     (0, Vp - V)).reshape(1, Vp)

    return {
        "gtab": gtab_p.astype(matmul_dtype),
        "w_hh": w_hh_p.astype(matmul_dtype),
        "w_fc": w_fc_p.astype(matmul_dtype),
        "b_fc": b_fc_p,   # stays f32 (added after the f32-accumulated matmul)
    }


# ---------------------------------------------------------------------------
# Fused kernel: in-kernel gather (one-hot matmul) -> unrolled LSTM -> per-step FC
# ---------------------------------------------------------------------------
def fused_lstm_fc_kernel(ids_ref, gtab_ref, whh_ref, wfc_ref, bfc_ref,
                         h0_ref, c0_ref,
                         logits_ref, hT_ref, cT_ref, pg_sc):
    Bp, Hp = h0_ref.shape
    Vr, G = gtab_ref.shape          # G == 4 * Hp
    T = ids_ref.shape[1]
    Vp = wfc_ref.shape[1]

    # (1) Fused embedding lookup + input projection + bias, hoisted off the
    #     recurrence.  gtab[v] already equals emb[v] @ W_ih_s + b_s, so a
    #     one-hot MXU matmul IS the row gather.  Results land in VMEM scratch
    #     so the unrolled loop below keeps vreg pressure low.
    ids = ids_ref[...]                                           # (Bp, T) int32
    vocab_iota = lax.broadcasted_iota(jnp.int32, (Bp, Vr), 1)
    for t in range(T):
        onehot = (ids[:, t:t + 1] == vocab_iota).astype(jnp.float32)
        pg_sc[:, t * G:(t + 1) * G] = jnp.dot(
            onehot.astype(gtab_ref.dtype), gtab_ref[...],
            preferred_element_type=jnp.float32)

    # (2) Fully unrolled recurrence.  Gate blocks are 128-lane aligned (free
    #     views); every load/store is a full (8,128) tile.  All three sigmoids
    #     collapse into ONE tanh over the 4-gate block (0.5 pre-scale folded
    #     into the weights at prep time) -> 2 EUP ops per step.
    # (3) FC fused per step: consumes h_t, nothing later depends on it, so the
    #     scheduler overlaps it with step t+1's recurrent matmul; lane-dense
    #     128-wide column stores into the logits output.
    h = h0_ref[...]                                              # (Bp, Hp)
    c = c0_ref[...]
    bfc = jnp.broadcast_to(bfc_ref[...], (Bp, Vp))               # hoisted broadcast
    for t in range(T):
        gates = pg_sc[:, t * G:(t + 1) * G] + jnp.dot(
            h.astype(whh_ref.dtype), whh_ref[...],
            preferred_element_type=jnp.float32)                  # (Bp, 4*Hp)
        tg = jnp.tanh(gates)
        i_g = 0.5 * tg[:, 0 * Hp:1 * Hp] + 0.5
        f_g = 0.5 * tg[:, 1 * Hp:2 * Hp] + 0.5
        g_g = tg[:, 2 * Hp:3 * Hp]
        o_g = 0.5 * tg[:, 3 * Hp:4 * Hp] + 0.5
        c = f_g * c + i_g * g_g
        h = o_g * jnp.tanh(c)
        logits_ref[:, t * Vp:(t + 1) * Vp] = (
            jnp.dot(h.astype(wfc_ref.dtype), wfc_ref[...],
                    preferred_element_type=jnp.float32) + bfc)

    hT_ref[...] = h
    cT_ref[...] = c


# ---------------------------------------------------------------------------
# Forward wrapper (matches CorruptionGenerator.forward semantics)
# ---------------------------------------------------------------------------
@partial(jax.jit, static_argnames=("vocab_size",))
def corruption_generator_forward(inputs, prev_state, prepped, *, vocab_size):
    """inputs: (B, T) int32 tokens; prev_state = (h0, c0), each (1, B, H)."""
    B, T = inputs.shape
    H = HIDDEN_DIM
    Hp = prepped["w_hh"].shape[0]
    G = prepped["w_hh"].shape[1]          # 4 * Hp
    Vp = prepped["w_fc"].shape[1]
    Vr = prepped["gtab"].shape[0]
    Bp = max(_round_up(B, BP_MIN), BP_MIN)

    # Only per-call prep left: pad batch to a full sublane tile so every
    # per-step load/store inside the kernel is an unmasked (8,128) tile.
    ids_p = jnp.pad(inputs.astype(jnp.int32), ((0, Bp - B), (0, 0)))      # (Bp, T)
    h0_p = jnp.pad(prev_state[0][0].astype(jnp.float32),
                   ((0, Bp - B), (0, Hp - H)))                            # (Bp, Hp)
    c0_p = jnp.pad(prev_state[1][0].astype(jnp.float32),
                   ((0, Bp - B), (0, Hp - H)))

    logits_p, hT_p, cT_p = pl.pallas_call(
        fused_lstm_fc_kernel,
        out_shape=(
            jax.ShapeDtypeStruct((Bp, T * Vp), jnp.float32),
            jax.ShapeDtypeStruct((Bp, Hp), jnp.float32),
            jax.ShapeDtypeStruct((Bp, Hp), jnp.float32),
        ),
        in_specs=[
            _full_spec((Bp, T)),
            _full_spec((Vr, G)),
            _full_spec((Hp, G)),
            _full_spec((Hp, Vp)),
            _full_spec((1, Vp)),
            _full_spec((Bp, Hp)),
            _full_spec((Bp, Hp)),
        ],
        out_specs=(
            _full_spec((Bp, T * Vp)),
            _full_spec((Bp, Hp)),
            _full_spec((Bp, Hp)),
        ),
        scratch_shapes=[pltpu.VMEM((Bp, T * G), jnp.float32)],
    )(ids_p, prepped["gtab"], prepped["w_hh"], prepped["w_fc"],
      prepped["b_fc"], h0_p, c0_p)

    V = vocab_size
    logits = logits_p.reshape(Bp, T, Vp)[:B, :, :V]     # batch-first (B, T, V)
    hT = hT_p[:B, :H][None, ...]
    cT = cT_p[:B, :H][None, ...]
    return logits, (hT, cT)


# ---------------------------------------------------------------------------
# Pure-JAX reference (numeric sanity check)
# ---------------------------------------------------------------------------
def reference_forward(inputs, prev_state, params):
    x = jnp.take(params["embedding"], inputs, axis=0)   # (B, T, E)
    H = HIDDEN_DIM
    w_ih, w_hh = params["w_ih"], params["w_hh"]
    b = params["b_ih"] + params["b_hh"]
    h, c = prev_state[0][0], prev_state[1][0]

    def step(carry, x_t):
        h, c = carry
        gates = x_t @ w_ih.T + h @ w_hh.T + b
        i_g = jax.nn.sigmoid(gates[:, 0 * H:1 * H])
        f_g = jax.nn.sigmoid(gates[:, 1 * H:2 * H])
        g_g = jnp.tanh(gates[:, 2 * H:3 * H])
        o_g = jax.nn.sigmoid(gates[:, 3 * H:4 * H])
        c = f_g * c + i_g * g_g
        h = o_g * jnp.tanh(c)
        return (h, c), h

    (hT, cT), y_tm = jax.lax.scan(step, (h, c), jnp.transpose(x, (1, 0, 2)))
    y = jnp.transpose(y_tm, (1, 0, 2))
    B, T, _ = y.shape
    logits = y.reshape(B * T, H) @ params["w_fc"].T + params["b_fc"]
    return logits.reshape(B, T, -1), (hT[None], cT[None])


if __name__ == "__main__":
    V, E = 50, 32          # vocab_size, embedding_dim (from embedding_matrix shape)
    B, T = 2, 8            # batch, sequence length
    H = HIDDEN_DIM

    key = jax.random.PRNGKey(0)
    ks = jax.random.split(key, 8)
    params = {
        "embedding": jax.random.normal(ks[0], (V, E), jnp.float32),
        "w_ih": 0.1 * jax.random.normal(ks[1], (4 * H, E), jnp.float32),
        "w_hh": 0.1 * jax.random.normal(ks[2], (4 * H, H), jnp.float32),
        "b_ih": 0.1 * jax.random.normal(ks[3], (4 * H,), jnp.float32),
        "b_hh": 0.1 * jax.random.normal(ks[4], (4 * H,), jnp.float32),
        "w_fc": 0.1 * jax.random.normal(ks[5], (V, H), jnp.float32),
        "b_fc": 0.1 * jax.random.normal(ks[6], (V,), jnp.float32),
    }
    inputs = jax.random.randint(ks[7], (B, T), 0, V, dtype=jnp.int32)
    h0 = jnp.zeros((N_LAYERS, B, H), jnp.float32)
    c0 = jnp.zeros((N_LAYERS, B, H), jnp.float32)

    # One-time weight prep (hoisted out of the per-call forward).
    prepped = prepare_params(params, matmul_dtype=MATMUL_DTYPE)
    prepped = jax.tree_util.tree_map(jax.block_until_ready, prepped)

    logits, (hT, cT) = corruption_generator_forward(
        inputs, (h0, c0), prepped, vocab_size=V)
    jax.block_until_ready((logits, hT, cT))

    ref_logits, (ref_hT, ref_cT) = reference_forward(inputs, (h0, c0), params)
    assert logits.shape == (B, T, V)
    assert hT.shape == (1, B, H) and cT.shape == (1, B, H)
    assert jnp.allclose(logits, ref_logits, atol=1e-4, rtol=1e-4)
    assert jnp.allclose(hT, ref_hT, atol=1e-4, rtol=1e-4)
    assert jnp.allclose(cT, ref_cT, atol=1e-4, rtol=1e-4)

    print("KERNEL_OK")
</pallas_src>

<mosaic_0001>
module attributes {stable_mosaic.version = 11 : i64} {
  func.func @fused_lstm_fc_kernel(%arg0: memref<8x8xi32, #tpu.memory_space<vmem>>, %arg1: memref<128x512xf32, #tpu.memory_space<vmem>>, %arg2: memref<128x512xf32, #tpu.memory_space<vmem>>, %arg3: memref<128x128xf32, #tpu.memory_space<vmem>>, %arg4: memref<1x128xf32, #tpu.memory_space<vmem>>, %arg5: memref<8x128xf32, #tpu.memory_space<vmem>>, %arg6: memref<8x128xf32, #tpu.memory_space<vmem>>, %arg7: memref<8x1024xf32, #tpu.memory_space<vmem>>, %arg8: memref<8x128xf32, #tpu.memory_space<vmem>>, %arg9: memref<8x128xf32, #tpu.memory_space<vmem>>, %arg10: memref<8x4096xf32, #tpu.memory_space<vmem>>) attributes {dimension_semantics = [], scalar_prefetch = 0 : i64, scratch_operands = 1 : i64, tpu.core_type = #tpu.core_type<tc>} {
    %c0 = arith.constant 0 : index
    %c0_0 = arith.constant 0 : index
    %0 = vector.load %arg0[%c0, %c0_0] : memref<8x8xi32, #tpu.memory_space<vmem>>, vector<8x8xi32>
    %1 = tpu.iota {dimensions = array<i32: 1>} : vector<8x128xi32>
    %2 = vector.extract_strided_slice %0 {offsets = [0, 0], sizes = [8, 1], strides = [1, 1]} : vector<8x8xi32> to vector<8x1xi32>
    %3 = vector.broadcast %2 : vector<8x1xi32> to vector<8x128xi32>
    %4 = arith.cmpi eq, %3, %1 : vector<8x128xi32>
    %5 = arith.extui %4 : vector<8x128xi1> to vector<8x128xi32>
    %6 = arith.sitofp %5 : vector<8x128xi32> to vector<8x128xf32>
    %c0_1 = arith.constant 0 : index
    %c0_2 = arith.constant 0 : index
    %7 = vector.load %arg1[%c0_1, %c0_2] : memref<128x512xf32, #tpu.memory_space<vmem>>, vector<128x512xf32>
    %cst = arith.constant dense<0.000000e+00> : vector<8x512xf32>
    %8 = tpu.matmul %6, %7, %cst {dimension_numbers = #tpu.dot_dimension_numbers<[1], [0], [0], [1], [0, 0, 1, 1], [], []>} : vector<8x128xf32>, vector<128x512xf32>, vector<8x512xf32> -> vector<8x512xf32>
    %c0_3 = arith.constant 0 : index
    %c0_4 = arith.constant 0 : index
    %9 = vector.load %arg10[%c0_3, %c0_4] : memref<8x4096xf32, #tpu.memory_space<vmem>>, vector<8x512xf32>
    tpu.vector_store %arg10[%c0_3, %c0_4], %8 {strides = array<i32>} : memref<8x4096xf32, #tpu.memory_space<vmem>>, vector<8x512xf32>,
    %10 = vector.extract_strided_slice %0 {offsets = [0, 1], sizes = [8, 1], strides = [1, 1]} : vector<8x8xi32> to vector<8x1xi32>
    %11 = vector.broadcast %10 : vector<8x1xi32> to vector<8x128xi32>
    %12 = arith.cmpi eq, %11, %1 : vector<8x128xi32>
    %13 = arith.extui %12 : vector<8x128xi1> to vector<8x128xi32>
    %14 = arith.sitofp %13 : vector<8x128xi32> to vector<8x128xf32>
    %c0_5 = arith.constant 0 : index
    %c0_6 = arith.constant 0 : index
    %15 = vector.load %arg1[%c0_5, %c0_6] : memref<128x512xf32, #tpu.memory_space<vmem>>, vector<128x512xf32>
    %cst_7 = arith.constant dense<0.000000e+00> : vector<8x512xf32>
    %16 = tpu.matmul %14, %15, %cst_7 {dimension_numbers = #tpu.dot_dimension_numbers<[1], [0], [0], [1], [0, 0, 1, 1], [], []>} : vector<8x128xf32>, vector<128x512xf32>, vector<8x512xf32> -> vector<8x512xf32>
    %c0_8 = arith.constant 0 : index
    %c512 = arith.constant 512 : index
    %17 = vector.load %arg10[%c0_8, %c512] : memref<8x4096xf32, #tpu.memory_space<vmem>>, vector<8x512xf32>
    tpu.vector_store %arg10[%c0_8, %c512], %16 {strides = array<i32>} : memref<8x4096xf32, #tpu.memory_space<vmem>>, vector<8x512xf32>,
    %18 = vector.extract_strided_slice %0 {offsets = [0, 2], sizes = [8, 1], strides = [1, 1]} : vector<8x8xi32> to vector<8x1xi32>
    %19 = vector.broadcast %18 : vector<8x1xi32> to vector<8x128xi32>
    %20 = arith.cmpi eq, %19, %1 : vector<8x128xi32>
    %21 = arith.extui %20 : vector<8x128xi1> to vector<8x128xi32>
    %22 = arith.sitofp %21 : vector<8x128xi32> to vector<8x128xf32>
    %c0_9 = arith.constant 0 : index
    %c0_10 = arith.constant 0 : index
    %23 = vector.load %arg1[%c0_9, %c0_10] : memref<128x512xf32, #tpu.memory_space<vmem>>, vector<128x512xf32>
    %cst_11 = arith.constant dense<0.000000e+00> : vector<8x512xf32>
    %24 = tpu.matmul %22, %23, %cst_11 {dimension_numbers = #tpu.dot_dimension_numbers<[1], [0], [0], [1], [0, 0, 1, 1], [], []>} : vector<8x128xf32>, vector<128x512xf32>, vector<8x512xf32> -> vector<8x512xf32>
    %c0_12 = arith.constant 0 : index
    %c1024 = arith.constant 1024 : index
    %25 = vector.load %arg10[%c0_12, %c1024] : memref<8x4096xf32, #tpu.memory_space<vmem>>, vector<8x512xf32>
    tpu.vector_store %arg10[%c0_12, %c1024], %24 {strides = array<i32>} : memref<8x4096xf32, #tpu.memory_space<vmem>>, vector<8x512xf32>,
    %26 = vector.extract_strided_slice %0 {offsets = [0, 3], sizes = [8, 1], strides = [1, 1]} : vector<8x8xi32> to vector<8x1xi32>
    %27 = vector.broadcast %26 : vector<8x1xi32> to vector<8x128xi32>
    %28 = arith.cmpi eq, %27, %1 : vector<8x128xi32>
    %29 = arith.extui %28 : vector<8x128xi1> to vector<8x128xi32>
    %30 = arith.sitofp %29 : vector<8x128xi32> to vector<8x128xf32>
    %c0_13 = arith.constant 0 : index
    %c0_14 = arith.constant 0 : index
    %31 = vector.load %arg1[%c0_13, %c0_14] : memref<128x512xf32, #tpu.memory_space<vmem>>, vector<128x512xf32>
    %cst_15 = arith.constant dense<0.000000e+00> : vector<8x512xf32>
    %32 = tpu.matmul %30, %31, %cst_15 {dimension_numbers = #tpu.dot_dimension_numbers<[1], [0], [0], [1], [0, 0, 1, 1], [], []>} : vector<8x128xf32>, vector<128x512xf32>, vector<8x512xf32> -> vector<8x512xf32>
    %c0_16 = arith.constant 0 : index
    %c1536 = arith.constant 1536 : index
    %33 = vector.load %arg10[%c0_16, %c1536] : memref<8x4096xf32, #tpu.memory_space<vmem>>, vector<8x512xf32>
    tpu.vector_store %arg10[%c0_16, %c1536], %32 {strides = array<i32>} : memref<8x4096xf32, #tpu.memory_space<vmem>>, vector<8x512xf32>,
    %34 = vector.extract_strided_slice %0 {offsets = [0, 4], sizes = [8, 1], strides = [1, 1]} : vector<8x8xi32> to vector<8x1xi32>
    %35 = vector.broadcast %34 : vector<8x1xi32> to vector<8x128xi32>
    %36 = arith.cmpi eq, %35, %1 : vector<8x128xi32>
    %37 = arith.extui %36 : vector<8x128xi1> to vector<8x128xi32>
    %38 = arith.sitofp %37 : vector<8x128xi32> to vector<8x128xf32>
    %c0_17 = arith.constant 0 : index
    %c0_18 = arith.constant 0 : index
    %39 = vector.load %arg1[%c0_17, %c0_18] : memref<128x512xf32, #tpu.memory_space<vmem>>, vector<128x512xf32>
    %cst_19 = arith.constant dense<0.000000e+00> : vector<8x512xf32>
    %40 = tpu.matmul %38, %39, %cst_19 {dimension_numbers = #tpu.dot_dimension_numbers<[1], [0], [0], [1], [0, 0, 1, 1], [], []>} : vector<8x128xf32>, vector<128x512xf32>, vector<8x512xf32> -> vector<8x512xf32>
    %c0_20 = arith.constant 0 : index
    %c2048 = arith.constant 2048 : index
    %41 = vector.load %arg10[%c0_20, %c2048] : memref<8x4096xf32, #tpu.memory_space<vmem>>, vector<8x512xf32>
    tpu.vector_store %arg10[%c0_20, %c2048], %40 {strides = array<i32>} : memref<8x4096xf32, #tpu.memory_space<vmem>>, vector<8x512xf32>,
    %42 = vector.extract_strided_slice %0 {offsets = [0, 5], sizes = [8, 1], strides = [1, 1]} : vector<8x8xi32> to vector<8x1xi32>
    %43 = vector.broadcast %42 : vector<8x1xi32> to vector<8x128xi32>
    %44 = arith.cmpi eq, %43, %1 : vector<8x128xi32>
    %45 = arith.extui %44 : vector<8x128xi1> to vector<8x128xi32>
    %46 = arith.sitofp %45 : vector<8x128xi32> to vector<8x128xf32>
    %c0_21 = arith.constant 0 : index
    %c0_22 = arith.constant 0 : index
    %47 = vector.load %arg1[%c0_21, %c0_22] : memref<128x512xf32, #tpu.memory_space<vmem>>, vector<128x512xf32>
    %cst_23 = arith.constant dense<0.000000e+00> : vector<8x512xf32>
    %48 = tpu.matmul %46, %47, %cst_23 {dimension_numbers = #tpu.dot_dimension_numbers<[1], [0], [0], [1], [0, 0, 1, 1], [], []>} : vector<8x128xf32>, vector<128x512xf32>, vector<8x512xf32> -> vector<8x512xf32>
    %c0_24 = arith.constant 0 : index
    %c2560 = arith.constant 2560 : index
    %49 = vector.load %arg10[%c0_24, %c2560] : memref<8x4096xf32, #tpu.memory_space<vmem>>, vector<8x512xf32>
    tpu.vector_store %arg10[%c0_24, %c2560], %48 {strides = array<i32>} : memref<8x4096xf32, #tpu.memory_space<vmem>>, vector<8x512xf32>,
    %50 = vector.extract_strided_slice %0 {offsets = [0, 6], sizes = [8, 1], strides = [1, 1]} : vector<8x8xi32> to vector<8x1xi32>
    %51 = vector.broadcast %50 : vector<8x1xi32> to vector<8x128xi32>
    %52 = arith.cmpi eq, %51, %1 : vector<8x128xi32>
    %53 = arith.extui %52 : vector<8x128xi1> to vector<8x128xi32>
    %54 = arith.sitofp %53 : vector<8x128xi32> to vector<8x128xf32>
    %c0_25 = arith.constant 0 : index
    %c0_26 = arith.constant 0 : index
    %55 = vector.load %arg1[%c0_25, %c0_26] : memref<128x512xf32, #tpu.memory_space<vmem>>, vector<128x512xf32>
    %cst_27 = arith.constant dense<0.000000e+00> : vector<8x512xf32>
    %56 = tpu.matmul %54, %55, %cst_27 {dimension_numbers = #tpu.dot_dimension_numbers<[1], [0], [0], [1], [0, 0, 1, 1], [], []>} : vector<8x128xf32>, vector<128x512xf32>, vector<8x512xf32> -> vector<8x512xf32>
    %c0_28 = arith.constant 0 : index
    %c3072 = arith.constant 3072 : index
    %57 = vector.load %arg10[%c0_28, %c3072] : memref<8x4096xf32, #tpu.memory_space<vmem>>, vector<8x512xf32>
    tpu.vector_store %arg10[%c0_28, %c3072], %56 {strides = array<i32>} : memref<8x4096xf32, #tpu.memory_space<vmem>>, vector<8x512xf32>,
    %58 = vector.extract_strided_slice %0 {offsets = [0, 7], sizes = [8, 1], strides = [1, 1]} : vector<8x8xi32> to vector<8x1xi32>
    %59 = vector.broadcast %58 : vector<8x1xi32> to vector<8x128xi32>
    %60 = arith.cmpi eq, %59, %1 : vector<8x128xi32>
    %61 = arith.extui %60 : vector<8x128xi1> to vector<8x128xi32>
    %62 = arith.sitofp %61 : vector<8x128xi32> to vector<8x128xf32>
    %c0_29 = arith.constant 0 : index
    %c0_30 = arith.constant 0 : index
    %63 = vector.load %arg1[%c0_29, %c0_30] : memref<128x512xf32, #tpu.memory_space<vmem>>, vector<128x512xf32>
    %cst_31 = arith.constant dense<0.000000e+00> : vector<8x512xf32>
    %64 = tpu.matmul %62, %63, %cst_31 {dimension_numbers = #tpu.dot_dimension_numbers<[1], [0], [0], [1], [0, 0, 1, 1], [], []>} : vector<8x128xf32>, vector<128x512xf32>, vector<8x512xf32> -> vector<8x512xf32>
    %c0_32 = arith.constant 0 : index
    %c3584 = arith.constant 3584 : index
    %65 = vector.load %arg10[%c0_32, %c3584] : memref<8x4096xf32, #tpu.memory_space<vmem>>, vector<8x512xf32>
    tpu.vector_store %arg10[%c0_32, %c3584], %64 {strides = array<i32>} : memref<8x4096xf32, #tpu.memory_space<vmem>>, vector<8x512xf32>,
    %c0_33 = arith.constant 0 : index
    %c0_34 = arith.constant 0 : index
    %66 = vector.load %arg5[%c0_33, %c0_34] : memref<8x128xf32, #tpu.memory_space<vmem>>, vector<8x128xf32>
    %c0_35 = arith.constant 0 : index
    %c0_36 = arith.constant 0 : index
    %67 = vector.load %arg6[%c0_35, %c0_36] : memref<8x128xf32, #tpu.memory_space<vmem>>, vector<8x128xf32>
    %c0_37 = arith.constant 0 : index
    %c0_38 = arith.constant 0 : index
    %68 = vector.load %arg4[%c0_37, %c0_38] : memref<1x128xf32, #tpu.memory_space<vmem>>, vector<1x128xf32>
    %69 = vector.shape_cast %68 : vector<1x128xf32> to vector<1x128xf32>
    %70 = vector.broadcast %69 : vector<1x128xf32> to vector<8x128xf32>
    %c0_39 = arith.constant 0 : index
    %c0_40 = arith.constant 0 : index
    %71 = vector.load %arg10[%c0_39, %c0_40] : memref<8x4096xf32, #tpu.memory_space<vmem>>, vector<8x512xf32>
    %c0_41 = arith.constant 0 : index
    %c0_42 = arith.constant 0 : index
    %72 = vector.load %arg2[%c0_41, %c0_42] : memref<128x512xf32, #tpu.memory_space<vmem>>, vector<128x512xf32>
    %cst_43 = arith.constant dense<0.000000e+00> : vector<8x512xf32>
    %73 = tpu.matmul %66, %72, %cst_43 {dimension_numbers = #tpu.dot_dimension_numbers<[1], [0], [0], [1], [0, 0, 1, 1], [], []>} : vector<8x128xf32>, vector<128x512xf32>, vector<8x512xf32> -> vector<8x512xf32>
    %74 = arith.addf %71, %73 : vector<8x512xf32>
    %75 = math.tanh %74 : vector<8x512xf32>
    %76 = vector.extract_strided_slice %75 {offsets = [0, 0], sizes = [8, 128], strides = [1, 1]} : vector<8x512xf32> to vector<8x128xf32>
    %cst_44 = arith.constant 5.000000e-01 : f32
    %77 = vector.broadcast %cst_44 : f32 to vector<8x128xf32>
    %78 = arith.mulf %77, %76 : vector<8x128xf32>
    %cst_45 = arith.constant 5.000000e-01 : f32
    %79 = vector.broadcast %cst_45 : f32 to vector<8x128xf32>
    %80 = arith.addf %78, %79 : vector<8x128xf32>
    %81 = vector.extract_strided_slice %75 {offsets = [0, 128], sizes = [8, 128], strides = [1, 1]} : vector<8x512xf32> to vector<8x128xf32>
    %cst_46 = arith.constant 5.000000e-01 : f32
    %82 = vector.broadcast %cst_46 : f32 to vector<8x128xf32>
    %83 = arith.mulf %82, %81 : vector<8x128xf32>
    %cst_47 = arith.constant 5.000000e-01 : f32
    %84 = vector.broadcast %cst_47 : f32 to vector<8x128xf32>
    %85 = arith.addf %83, %84 : vector<8x128xf32>
    %86 = vector.extract_strided_slice %75 {offsets = [0, 256], sizes = [8, 128], strides = [1, 1]} : vector<8x512xf32> to vector<8x128xf32>
    %87 = vector.extract_strided_slice %75 {offsets = [0, 384], sizes = [8, 128], strides = [1, 1]} : vector<8x512xf32> to vector<8x128xf32>
    %cst_48 = arith.constant 5.000000e-01 : f32
    %88 = vector.broadcast %cst_48 : f32 to vector<8x128xf32>
    %89 = arith.mulf %88, %87 : vector<8x128xf32>
    %cst_49 = arith.constant 5.000000e-01 : f32
    %90 = vector.broadcast %cst_49 : f32 to vector<8x128xf32>
    %91 = arith.addf %89, %90 : vector<8x128xf32>
    %92 = arith.mulf %85, %67 : vector<8x128xf32>
    %93 = arith.mulf %80, %86 : vector<8x128xf32>
    %94 = arith.addf %92, %93 : vector<8x128xf32>
    %95 = math.tanh %94 : vector<8x128xf32>
    %96 = arith.mulf %91, %95 : vector<8x128xf32>
    %c0_50 = arith.constant 0 : index
    %c0_51 = arith.constant 0 : index
    %97 = vector.load %arg3[%c0_50, %c0_51] : memref<128x128xf32, #tpu.memory_space<vmem>>, vector<128x128xf32>
    %cst_52 = arith.constant dense<0.000000e+00> : vector<8x128xf32>
    %98 = tpu.matmul %96, %97, %cst_52 {dimension_numbers = #tpu.dot_dimension_numbers<[1], [0], [0], [1], [0, 0, 1, 1], [], []>} : vector<8x128xf32>, vector<128x128xf32>, vector<8x128xf32> -> vector<8x128xf32>
    %99 = arith.addf %98, %70 : vector<8x128xf32>
    %c0_53 = arith.constant 0 : index
    %c0_54 = arith.constant 0 : index
    %100 = vector.load %arg7[%c0_53, %c0_54] : memref<8x1024xf32, #tpu.memory_space<vmem>>, vector<8x128xf32>
    tpu.vector_store %arg7[%c0_53, %c0_54], %99 {strides = array<i32>} : memref<8x1024xf32, #tpu.memory_space<vmem>>, vector<8x128xf32>,
    %c0_55 = arith.constant 0 : index
    %c512_56 = arith.constant 512 : index
    %101 = vector.load %arg10[%c0_55, %c512_56] : memref<8x4096xf32, #tpu.memory_space<vmem>>, vector<8x512xf32>
    %c0_57 = arith.constant 0 : index
    %c0_58 = arith.constant 0 : index
    %102 = vector.load %arg2[%c0_57, %c0_58] : memref<128x512xf32, #tpu.memory_space<vmem>>, vector<128x512xf32>
    %cst_59 = arith.constant dense<0.000000e+00> : vector<8x512xf32>
    %103 = tpu.matmul %96, %102, %cst_59 {dimension_numbers = #tpu.dot_dimension_numbers<[1], [0], [0], [1], [0, 0, 1, 1], [], []>} : vector<8x128xf32>, vector<128x512xf32>, vector<8x512xf32> -> vector<8x512xf32>
    %104 = arith.addf %101, %103 : vector<8x512xf32>
    %105 = math.tanh %104 : vector<8x512xf32>
    %106 = vector.extract_strided_slice %105 {offsets = [0, 0], sizes = [8, 128], strides = [1, 1]} : vector<8x512xf32> to vector<8x128xf32>
    %cst_60 = arith.constant 5.000000e-01 : f32
    %107 = vector.broadcast %cst_60 : f32 to vector<8x128xf32>
    %108 = arith.mulf %107, %106 : vector<8x128xf32>
    %cst_61 = arith.constant 5.000000e-01 : f32
    %109 = vector.broadcast %cst_61 : f32 to vector<8x128xf32>
    %110 = arith.addf %108, %109 : vector<8x128xf32>
    %111 = vector.extract_strided_slice %105 {offsets = [0, 128], sizes = [8, 128], strides = [1, 1]} : vector<8x512xf32> to vector<8x128xf32>
    %cst_62 = arith.constant 5.000000e-01 : f32
    %112 = vector.broadcast %cst_62 : f32 to vector<8x128xf32>
    %113 = arith.mulf %112, %111 : vector<8x128xf32>
    %cst_63 = arith.constant 5.000000e-01 : f32
    %114 = vector.broadcast %cst_63 : f32 to vector<8x128xf32>
    %115 = arith.addf %113, %114 : vector<8x128xf32>
    %116 = vector.extract_strided_slice %105 {offsets = [0, 256], sizes = [8, 128], strides = [1, 1]} : vector<8x512xf32> to vector<8x128xf32>
    %117 = vector.extract_strided_slice %105 {offsets = [0, 384], sizes = [8, 128], strides = [1, 1]} : vector<8x512xf32> to vector<8x128xf32>
    %cst_64 = arith.constant 5.000000e-01 : f32
    %118 = vector.broadcast %cst_64 : f32 to vector<8x128xf32>
    %119 = arith.mulf %118, %117 : vector<8x128xf32>
    %cst_65 = arith.constant 5.000000e-01 : f32
    %120 = vector.broadcast %cst_65 : f32 to vector<8x128xf32>
    %121 = arith.addf %119, %120 : vector<8x128xf32>
    %122 = arith.mulf %115, %94 : vector<8x128xf32>
    %123 = arith.mulf %110, %116 : vector<8x128xf32>
    %124 = arith.addf %122, %123 : vector<8x128xf32>
    %125 = math.tanh %124 : vector<8x128xf32>
    %126 = arith.mulf %121, %125 : vector<8x128xf32>
    %c0_66 = arith.constant 0 : index
    %c0_67 = arith.constant 0 : index
    %127 = vector.load %arg3[%c0_66, %c0_67] : memref<128x128xf32, #tpu.memory_space<vmem>>, vector<128x128xf32>
    %cst_68 = arith.constant dense<0.000000e+00> : vector<8x128xf32>
    %128 = tpu.matmul %126, %127, %cst_68 {dimension_numbers = #tpu.dot_dimension_numbers<[1], [0], [0], [1], [0, 0, 1, 1], [], []>} : vector<8x128xf32>, vector<128x128xf32>, vector<8x128xf32> -> vector<8x128xf32>
    %129 = arith.addf %128, %70 : vector<8x128xf32>
    %c0_69 = arith.constant 0 : index
    %c128 = arith.constant 128 : index
    %130 = vector.load %arg7[%c0_69, %c128] : memref<8x1024xf32, #tpu.memory_space<vmem>>, vector<8x128xf32>
    tpu.vector_store %arg7[%c0_69, %c128], %129 {strides = array<i32>} : memref<8x1024xf32, #tpu.memory_space<vmem>>, vector<8x128xf32>,
    %c0_70 = arith.constant 0 : index
    %c1024_71 = arith.constant 1024 : index
    %131 = vector.load %arg10[%c0_70, %c1024_71] : memref<8x4096xf32, #tpu.memory_space<vmem>>, vector<8x512xf32>
    %c0_72 = arith.constant 0 : index
    %c0_73 = arith.constant 0 : index
    %132 = vector.load %arg2[%c0_72, %c0_73] : memref<128x512xf32, #tpu.memory_space<vmem>>, vector<128x512xf32>
    %cst_74 = arith.constant dense<0.000000e+00> : vector<8x512xf32>
    %133 = tpu.matmul %126, %132, %cst_74 {dimension_numbers = #tpu.dot_dimension_numbers<[1], [0], [0], [1], [0, 0, 1, 1], [], []>} : vector<8x128xf32>, vector<128x512xf32>, vector<8x512xf32> -> vector<8x512xf32>
    %134 = arith.addf %131, %133 : vector<8x512xf32>
    %135 = math.tanh %134 : vector<8x512xf32>
    %136 = vector.extract_strided_slice %135 {offsets = [0, 0], sizes = [8, 128], strides = [1, 1]} : vector<8x512xf32> to vector<8x128xf32>
    %cst_75 = arith.constant 5.000000e-01 : f32
    %137 = vector.broadcast %cst_75 : f32 to vector<8x128xf32>
    %138 = arith.mulf %137, %136 : vector<8x128xf32>
    %cst_76 = arith.constant 5.000000e-01 : f32
    %139 = vector.broadcast %cst_76 : f32 to vector<8x128xf32>
    %140 = arith.addf %138, %139 : vector<8x128xf32>
    %141 = vector.extract_strided_slice %135 {offsets = [0, 128], sizes = [8, 128], strides = [1, 1]} : vector<8x512xf32> to vector<8x128xf32>
    %cst_77 = arith.constant 5.000000e-01 : f32
    %142 = vector.broadcast %cst_77 : f32 to vector<8x128xf32>
    %143 = arith.mulf %142, %141 : vector<8x128xf32>
    %cst_78 = arith.constant 5.000000e-01 : f32
    %144 = vector.broadcast %cst_78 : f32 to vector<8x128xf32>
    %145 = arith.addf %143, %144 : vector<8x128xf32>
    %146 = vector.extract_strided_slice %135 {offsets = [0, 256], sizes = [8, 128], strides = [1, 1]} : vector<8x512xf32> to vector<8x128xf32>
    %147 = vector.extract_strided_slice %135 {offsets = [0, 384], sizes = [8, 128], strides = [1, 1]} : vector<8x512xf32> to vector<8x128xf32>
    %cst_79 = arith.constant 5.000000e-01 : f32
    %148 = vector.broadcast %cst_79 : f32 to vector<8x128xf32>
    %149 = arith.mulf %148, %147 : vector<8x128xf32>
    %cst_80 = arith.constant 5.000000e-01 : f32
    %150 = vector.broadcast %cst_80 : f32 to vector<8x128xf32>
    %151 = arith.addf %149, %150 : vector<8x128xf32>
    %152 = arith.mulf %145, %124 : vector<8x128xf32>
    %153 = arith.mulf %140, %146 : vector<8x128xf32>
    %154 = arith.addf %152, %153 : vector<8x128xf32>
    %155 = math.tanh %154 : vector<8x128xf32>
    %156 = arith.mulf %151, %155 : vector<8x128xf32>
    %c0_81 = arith.constant 0 : index
    %c0_82 = arith.constant 0 : index
    %157 = vector.load %arg3[%c0_81, %c0_82] : memref<128x128xf32, #tpu.memory_space<vmem>>, vector<128x128xf32>
    %cst_83 = arith.constant dense<0.000000e+00> : vector<8x128xf32>
    %158 = tpu.matmul %156, %157, %cst_83 {dimension_numbers = #tpu.dot_dimension_numbers<[1], [0], [0], [1], [0, 0, 1, 1], [], []>} : vector<8x128xf32>, vector<128x128xf32>, vector<8x128xf32> -> vector<8x128xf32>
    %159 = arith.addf %158, %70 : vector<8x128xf32>
    %c0_84 = arith.constant 0 : index
    %c256 = arith.constant 256 : index
    %160 = vector.load %arg7[%c0_84, %c256] : memref<8x1024xf32, #tpu.memory_space<vmem>>, vector<8x128xf32>
    tpu.vector_store %arg7[%c0_84, %c256], %159 {strides = array<i32>} : memref<8x1024xf32, #tpu.memory_space<vmem>>, vector<8x128xf32>,
    %c0_85 = arith.constant 0 : index
    %c1536_86 = arith.constant 1536 : index
    %161 = vector.load %arg10[%c0_85, %c1536_86] : memref<8x4096xf32, #tpu.memory_space<vmem>>, vector<8x512xf32>
    %c0_87 = arith.constant 0 : index
    %c0_88 = arith.constant 0 : index
    %162 = vector.load %arg2[%c0_87, %c0_88] : memref<128x512xf32, #tpu.memory_space<vmem>>, vector<128x512xf32>
    %cst_89 = arith.constant dense<0.000000e+00> : vector<8x512xf32>
    %163 = tpu.matmul %156, %162, %cst_89 {dimension_numbers = #tpu.dot_dimension_numbers<[1], [0], [0], [1], [0, 0, 1, 1], [], []>} : vector<8x128xf32>, vector<128x512xf32>, vector<8x512xf32> -> vector<8x512xf32>
    %164 = arith.addf %161, %163 : vector<8x512xf32>
    %165 = math.tanh %164 : vector<8x512xf32>
    %166 = vector.extract_strided_slice %165 {offsets = [0, 0], sizes = [8, 128], strides = [1, 1]} : vector<8x512xf32> to vector<8x128xf32>
    %cst_90 = arith.constant 5.000000e-01 : f32
    %167 = vector.broadcast %cst_90 : f32 to vector<8x128xf32>
    %168 = arith.mulf %167, %166 : vector<8x128xf32>
    %cst_91 = arith.constant 5.000000e-01 : f32
    %169 = vector.broadcast %cst_91 : f32 to vector<8x128xf32>
    %170 = arith.addf %168, %169 : vector<8x128xf32>
    %171 = vector.extract_strided_slice %165 {offsets = [0, 128], sizes = [8, 128], strides = [1, 1]} : vector<8x512xf32> to vector<8x128xf32>
    %cst_92 = arith.constant 5.000000e-01 : f32
    %172 = vector.broadcast %cst_92 : f32 to vector<8x128xf32>
    %173 = arith.mulf %172, %171 : vector<8x128xf32>
    %cst_93 = arith.constant 5.000000e-01 : f32
    %174 = vector.broadcast %cst_93 : f32 to vector<8x128xf32>
    %175 = arith.addf %173, %174 : vector<8x128xf32>
    %176 = vector.extract_strided_slice %165 {offsets = [0, 256], sizes = [8, 128], strides = [1, 1]} : vector<8x512xf32> to vector<8x128xf32>
    %177 = vector.extract_strided_slice %165 {offsets = [0, 384], sizes = [8, 128], strides = [1, 1]} : vector<8x512xf32> to vector<8x128xf32>
    %cst_94 = arith.constant 5.000000e-01 : f32
    %178 = vector.broadcast %cst_94 : f32 to vector<8x128xf32>
    %179 = arith.mulf %178, %177 : vector<8x128xf32>
    %cst_95 = arith.constant 5.000000e-01 : f32
    %180 = vector.broadcast %cst_95 : f32 to vector<8x128xf32>
    %181 = arith.addf %179, %180 : vector<8x128xf32>
    %182 = arith.mulf %175, %154 : vector<8x128xf32>
    %183 = arith.mulf %170, %176 : vector<8x128xf32>
    %184 = arith.addf %182, %183 : vector<8x128xf32>
    %185 = math.tanh %184 : vector<8x128xf32>
    %186 = arith.mulf %181, %185 : vector<8x128xf32>
    %c0_96 = arith.constant 0 : index
    %c0_97 = arith.constant 0 : index
    %187 = vector.load %arg3[%c0_96, %c0_97] : memref<128x128xf32, #tpu.memory_space<vmem>>, vector<128x128xf32>
    %cst_98 = arith.constant dense<0.000000e+00> : vector<8x128xf32>
    %188 = tpu.matmul %186, %187, %cst_98 {dimension_numbers = #tpu.dot_dimension_numbers<[1], [0], [0], [1], [0, 0, 1, 1], [], []>} : vector<8x128xf32>, vector<128x128xf32>, vector<8x128xf32> -> vector<8x128xf32>
    %189 = arith.addf %188, %70 : vector<8x128xf32>
    %c0_99 = arith.constant 0 : index
    %c384 = arith.constant 384 : index
    %190 = vector.load %arg7[%c0_99, %c384] : memref<8x1024xf32, #tpu.memory_space<vmem>>, vector<8x128xf32>
    tpu.vector_store %arg7[%c0_99, %c384], %189 {strides = array<i32>} : memref<8x1024xf32, #tpu.memory_space<vmem>>, vector<8x128xf32>,
    %c0_100 = arith.constant 0 : index
    %c2048_101 = arith.constant 2048 : index
    %191 = vector.load %arg10[%c0_100, %c2048_101] : memref<8x4096xf32, #tpu.memory_space<vmem>>, vector<8x512xf32>
    %c0_102 = arith.constant 0 : index
    %c0_103 = arith.constant 0 : index
    %192 = vector.load %arg2[%c0_102, %c0_103] : memref<128x512xf32, #tpu.memory_space<vmem>>, vector<128x512xf32>
    %cst_104 = arith.constant dense<0.000000e+00> : vector<8x512xf32>
    %193 = tpu.matmul %186, %192, %cst_104 {dimension_numbers = #tpu.dot_dimension_numbers<[1], [0], [0], [1], [0, 0, 1, 1], [], []>} : vector<8x128xf32>, vector<128x512xf32>, vector<8x512xf32> -> vector<8x512xf32>
    %194 = arith.addf %191, %193 : vector<8x512xf32>
    %195 = math.tanh %194 : vector<8x512xf32>
    %196 = vector.extract_strided_slice %195 {offsets = [0, 0], sizes = [8, 128], strides = [1, 1]} : vector<8x512xf32> to vector<8x128xf32>
    %cst_105 = arith.constant 5.000000e-01 : f32
    %197 = vector.broadcast %cst_105 : f32 to vector<8x128xf32>
    %198 = arith.mulf %197, %196 : vector<8x128xf32>
    %cst_106 = arith.constant 5.000000e-01 : f32
    %199 = vector.broadcast %cst_106 : f32 to vector<8x128xf32>
    %200 = arith.addf %198, %199 : vector<8x128xf32>
    %201 = vector.extract_strided_slice %195 {offsets = [0, 128], sizes = [8, 128], strides = [1, 1]} : vector<8x512xf32> to vector<8x128xf32>
    %cst_107 = arith.constant 5.000000e-01 : f32
    %202 = vector.broadcast %cst_107 : f32 to vector<8x128xf32>
    %203 = arith.mulf %202, %201 : vector<8x128xf32>
    %cst_108 = arith.constant 5.000000e-01 : f32
    %204 = vector.broadcast %cst_108 : f32 to vector<8x128xf32>
    %205 = arith.addf %203, %204 : vector<8x128xf32>
    %206 = vector.extract_strided_slice %195 {offsets = [0, 256], sizes = [8, 128], strides = [1, 1]} : vector<8x512xf32> to vector<8x128xf32>
    %207 = vector.extract_strided_slice %195 {offsets = [0, 384], sizes = [8, 128], strides = [1, 1]} : vector<8x512xf32> to vector<8x128xf32>
    %cst_109 = arith.constant 5.000000e-01 : f32
    %208 = vector.broadcast %cst_109 : f32 to vector<8x128xf32>
    %209 = arith.mulf %208, %207 : vector<8x128xf32>
    %cst_110 = arith.constant 5.000000e-01 : f32
    %210 = vector.broadcast %cst_110 : f32 to vector<8x128xf32>
    %211 = arith.addf %209, %210 : vector<8x128xf32>
    %212 = arith.mulf %205, %184 : vector<8x128xf32>
    %213 = arith.mulf %200, %206 : vector<8x128xf32>
    %214 = arith.addf %212, %213 : vector<8x128xf32>
    %215 = math.tanh %214 : vector<8x128xf32>
    %216 = arith.mulf %211, %215 : vector<8x128xf32>
    %c0_111 = arith.constant 0 : index
    %c0_112 = arith.constant 0 : index
    %217 = vector.load %arg3[%c0_111, %c0_112] : memref<128x128xf32, #tpu.memory_space<vmem>>, vector<128x128xf32>
    %cst_113 = arith.constant dense<0.000000e+00> : vector<8x128xf32>
    %218 = tpu.matmul %216, %217, %cst_113 {dimension_numbers = #tpu.dot_dimension_numbers<[1], [0], [0], [1], [0, 0, 1, 1], [], []>} : vector<8x128xf32>, vector<128x128xf32>, vector<8x128xf32> -> vector<8x128xf32>
    %219 = arith.addf %218, %70 : vector<8x128xf32>
    %c0_114 = arith.constant 0 : index
    %c512_115 = arith.constant 512 : index
    %220 = vector.load %arg7[%c0_114, %c512_115] : memref<8x1024xf32, #tpu.memory_space<vmem>>, vector<8x128xf32>
    tpu.vector_store %arg7[%c0_114, %c512_115], %219 {strides = array<i32>} : memref<8x1024xf32, #tpu.memory_space<vmem>>, vector<8x128xf32>,
    %c0_116 = arith.constant 0 : index
    %c2560_117 = arith.constant 2560 : index
    %221 = vector.load %arg10[%c0_116, %c2560_117] : memref<8x4096xf32, #tpu.memory_space<vmem>>, vector<8x512xf32>
    %c0_118 = arith.constant 0 : index
    %c0_119 = arith.constant 0 : index
    %222 = vector.load %arg2[%c0_118, %c0_119] : memref<128x512xf32, #tpu.memory_space<vmem>>, vector<128x512xf32>
    %cst_120 = arith.constant dense<0.000000e+00> : vector<8x512xf32>
    %223 = tpu.matmul %216, %222, %cst_120 {dimension_numbers = #tpu.dot_dimension_numbers<[1], [0], [0], [1], [0, 0, 1, 1], [], []>} : vector<8x128xf32>, vector<128x512xf32>, vector<8x512xf32> -> vector<8x512xf32>
    %224 = arith.addf %221, %223 : vector<8x512xf32>
    %225 = math.tanh %224 : vector<8x512xf32>
    %226 = vector.extract_strided_slice %225 {offsets = [0, 0], sizes = [8, 128], strides = [1, 1]} : vector<8x512xf32> to vector<8x128xf32>
    %cst_121 = arith.constant 5.000000e-01 : f32
    %227 = vector.broadcast %cst_121 : f32 to vector<8x128xf32>
    %228 = arith.mulf %227, %226 : vector<8x128xf32>
    %cst_122 = arith.constant 5.000000e-01 : f32
    %229 = vector.broadcast %cst_122 : f32 to vector<8x128xf32>
    %230 = arith.addf %228, %229 : vector<8x128xf32>
    %231 = vector.extract_strided_slice %225 {offsets = [0, 128], sizes = [8, 128], strides = [1, 1]} : vector<8x512xf32> to vector<8x128xf32>
    %cst_123 = arith.constant 5.000000e-01 : f32
    %232 = vector.broadcast %cst_123 : f32 to vector<8x128xf32>
    %233 = arith.mulf %232, %231 : vector<8x128xf32>
    %cst_124 = arith.constant 5.000000e-01 : f32
    %234 = vector.broadcast %cst_124 : f32 to vector<8x128xf32>
    %235 = arith.addf %233, %234 : vector<8x128xf32>
    %236 = vector.extract_strided_slice %225 {offsets = [0, 256], sizes = [8, 128], strides = [1, 1]} : vector<8x512xf32> to vector<8x128xf32>
    %237 = vector.extract_strided_slice %225 {offsets = [0, 384], sizes = [8, 128], strides = [1, 1]} : vector<8x512xf32> to vector<8x128xf32>
    %cst_125 = arith.constant 5.000000e-01 : f32
    %238 = vector.broadcast %cst_125 : f32 to vector<8x128xf32>
    %239 = arith.mulf %238, %237 : vector<8x128xf32>
    %cst_126 = arith.constant 5.000000e-01 : f32
    %240 = vector.broadcast %cst_126 : f32 to vector<8x128xf32>
    %241 = arith.addf %239, %240 : vector<8x128xf32>
    %242 = arith.mulf %235, %214 : vector<8x128xf32>
    %243 = arith.mulf %230, %236 : vector<8x128xf32>
    %244 = arith.addf %242, %243 : vector<8x128xf32>
    %245 = math.tanh %244 : vector<8x128xf32>
    %246 = arith.mulf %241, %245 : vector<8x128xf32>
    %c0_127 = arith.constant 0 : index
    %c0_128 = arith.constant 0 : index
    %247 = vector.load %arg3[%c0_127, %c0_128] : memref<128x128xf32, #tpu.memory_space<vmem>>, vector<128x128xf32>
    %cst_129 = arith.constant dense<0.000000e+00> : vector<8x128xf32>
    %248 = tpu.matmul %246, %247, %cst_129 {dimension_numbers = #tpu.dot_dimension_numbers<[1], [0], [0], [1], [0, 0, 1, 1], [], []>} : vector<8x128xf32>, vector<128x128xf32>, vector<8x128xf32> -> vector<8x128xf32>
    %249 = arith.addf %248, %70 : vector<8x128xf32>
    %c0_130 = arith.constant 0 : index
    %c640 = arith.constant 640 : index
    %250 = vector.load %arg7[%c0_130, %c640] : memref<8x1024xf32, #tpu.memory_space<vmem>>, vector<8x128xf32>
    tpu.vector_store %arg7[%c0_130, %c640], %249 {strides = array<i32>} : memref<8x1024xf32, #tpu.memory_space<vmem>>, vector<8x128xf32>,
    %c0_131 = arith.constant 0 : index
    %c3072_132 = arith.constant 3072 : index
    %251 = vector.load %arg10[%c0_131, %c3072_132] : memref<8x4096xf32, #tpu.memory_space<vmem>>, vector<8x512xf32>
    %c0_133 = arith.constant 0 : index
    %c0_134 = arith.constant 0 : index
    %252 = vector.load %arg2[%c0_133, %c0_134] : memref<128x512xf32, #tpu.memory_space<vmem>>, vector<128x512xf32>
    %cst_135 = arith.constant dense<0.000000e+00> : vector<8x512xf32>
    %253 = tpu.matmul %246, %252, %cst_135 {dimension_numbers = #tpu.dot_dimension_numbers<[1], [0], [0], [1], [0, 0, 1, 1], [], []>} : vector<8x128xf32>, vector<128x512xf32>, vector<8x512xf32> -> vector<8x512xf32>
    %254 = arith.addf %251, %253 : vector<8x512xf32>
    %255 = math.tanh %254 : vector<8x512xf32>
    %256 = vector.extract_strided_slice %255 {offsets = [0, 0], sizes = [8, 128], strides = [1, 1]} : vector<8x512xf32> to vector<8x128xf32>
    %cst_136 = arith.constant 5.000000e-01 : f32
    %257 = vector.broadcast %cst_136 : f32 to vector<8x128xf32>
    %258 = arith.mulf %257, %256 : vector<8x128xf32>
    %cst_137 = arith.constant 5.000000e-01 : f32
    %259 = vector.broadcast %cst_137 : f32 to vector<8x128xf32>
    %260 = arith.addf %258, %259 : vector<8x128xf32>
    %261 = vector.extract_strided_slice %255 {offsets = [0, 128], sizes = [8, 128], strides = [1, 1]} : vector<8x512xf32> to vector<8x128xf32>
    %cst_138 = arith.constant 5.000000e-01 : f32
    %262 = vector.broadcast %cst_138 : f32 to vector<8x128xf32>
    %263 = arith.mulf %262, %261 : vector<8x128xf32>
    %cst_139 = arith.constant 5.000000e-01 : f32
    %264 = vector.broadcast %cst_139 : f32 to vector<8x128xf32>
    %265 = arith.addf %263, %264 : vector<8x128xf32>
    %266 = vector.extract_strided_slice %255 {offsets = [0, 256], sizes = [8, 128], strides = [1, 1]} : vector<8x512xf32> to vector<8x128xf32>
    %267 = vector.extract_strided_slice %255 {offsets = [0, 384], sizes = [8, 128], strides = [1, 1]} : vector<8x512xf32> to vector<8x128xf32>
    %cst_140 = arith.constant 5.000000e-01 : f32
    %268 = vector.broadcast %cst_140 : f32 to vector<8x128xf32>
    %269 = arith.mulf %268, %267 : vector<8x128xf32>
    %cst_141 = arith.constant 5.000000e-01 : f32
    %270 = vector.broadcast %cst_141 : f32 to vector<8x128xf32>
    %271 = arith.addf %269, %270 : vector<8x128xf32>
    %272 = arith.mulf %265, %244 : vector<8x128xf32>
    %273 = arith.mulf %260, %266 : vector<8x128xf32>
    %274 = arith.addf %272, %273 : vector<8x128xf32>
    %275 = math.tanh %274 : vector<8x128xf32>
    %276 = arith.mulf %271, %275 : vector<8x128xf32>
    %c0_142 = arith.constant 0 : index
    %c0_143 = arith.constant 0 : index
    %277 = vector.load %arg3[%c0_142, %c0_143] : memref<128x128xf32, #tpu.memory_space<vmem>>, vector<128x128xf32>
    %cst_144 = arith.constant dense<0.000000e+00> : vector<8x128xf32>
    %278 = tpu.matmul %276, %277, %cst_144 {dimension_numbers = #tpu.dot_dimension_numbers<[1], [0], [0], [1], [0, 0, 1, 1], [], []>} : vector<8x128xf32>, vector<128x128xf32>, vector<8x128xf32> -> vector<8x128xf32>
    %279 = arith.addf %278, %70 : vector<8x128xf32>
    %c0_145 = arith.constant 0 : index
    %c768 = arith.constant 768 : index
    %280 = vector.load %arg7[%c0_145, %c768] : memref<8x1024xf32, #tpu.memory_space<vmem>>, vector<8x128xf32>
    tpu.vector_store %arg7[%c0_145, %c768], %279 {strides = array<i32>} : memref<8x1024xf32, #tpu.memory_space<vmem>>, vector<8x128xf32>,
    %c0_146 = arith.constant 0 : index
    %c3584_147 = arith.constant 3584 : index
    %281 = vector.load %arg10[%c0_146, %c3584_147] : memref<8x4096xf32, #tpu.memory_space<vmem>>, vector<8x512xf32>
    %c0_148 = arith.constant 0 : index
    %c0_149 = arith.constant 0 : index
    %282 = vector.load %arg2[%c0_148, %c0_149] : memref<128x512xf32, #tpu.memory_space<vmem>>, vector<128x512xf32>
    %cst_150 = arith.constant dense<0.000000e+00> : vector<8x512xf32>
    %283 = tpu.matmul %276, %282, %cst_150 {dimension_numbers = #tpu.dot_dimension_numbers<[1], [0], [0], [1], [0, 0, 1, 1], [], []>} : vector<8x128xf32>, vector<128x512xf32>, vector<8x512xf32> -> vector<8x512xf32>
    %284 = arith.addf %281, %283 : vector<8x512xf32>
    %285 = math.tanh %284 : vector<8x512xf32>
    %286 = vector.extract_strided_slice %285 {offsets = [0, 0], sizes = [8, 128], strides = [1, 1]} : vector<8x512xf32> to vector<8x128xf32>
    %cst_151 = arith.constant 5.000000e-01 : f32
    %287 = vector.broadcast %cst_151 : f32 to vector<8x128xf32>
    %288 = arith.mulf %287, %286 : vector<8x128xf32>
    %cst_152 = arith.constant 5.000000e-01 : f32
    %289 = vector.broadcast %cst_152 : f32 to vector<8x128xf32>
    %290 = arith.addf %288, %289 : vector<8x128xf32>
    %291 = vector.extract_strided_slice %285 {offsets = [0, 128], sizes = [8, 128], strides = [1, 1]} : vector<8x512xf32> to vector<8x128xf32>
    %cst_153 = arith.constant 5.000000e-01 : f32
    %292 = vector.broadcast %cst_153 : f32 to vector<8x128xf32>
    %293 = arith.mulf %292, %291 : vector<8x128xf32>
    %cst_154 = arith.constant 5.000000e-01 : f32
    %294 = vector.broadcast %cst_154 : f32 to vector<8x128xf32>
    %295 = arith.addf %293, %294 : vector<8x128xf32>
    %296 = vector.extract_strided_slice %285 {offsets = [0, 256], sizes = [8, 128], strides = [1, 1]} : vector<8x512xf32> to vector<8x128xf32>
    %297 = vector.extract_strided_slice %285 {offsets = [0, 384], sizes = [8, 128], strides = [1, 1]} : vector<8x512xf32> to vector<8x128xf32>
    %cst_155 = arith.constant 5.000000e-01 : f32
    %298 = vector.broadcast %cst_155 : f32 to vector<8x128xf32>
    %299 = arith.mulf %298, %297 : vector<8x128xf32>
    %cst_156 = arith.constant 5.000000e-01 : f32
    %300 = vector.broadcast %cst_156 : f32 to vector<8x128xf32>
    %301 = arith.addf %299, %300 : vector<8x128xf32>
    %302 = arith.mulf %295, %274 : vector<8x128xf32>
    %303 = arith.mulf %290, %296 : vector<8x128xf32>
    %304 = arith.addf %302, %303 : vector<8x128xf32>
    %305 = math.tanh %304 : vector<8x128xf32>
    %306 = arith.mulf %301, %305 : vector<8x128xf32>
    %c0_157 = arith.constant 0 : index
    %c0_158 = arith.constant 0 : index
    %307 = vector.load %arg3[%c0_157, %c0_158] : memref<128x128xf32, #tpu.memory_space<vmem>>, vector<128x128xf32>
    %cst_159 = arith.constant dense<0.000000e+00> : vector<8x128xf32>
    %308 = tpu.matmul %306, %307, %cst_159 {dimension_numbers = #tpu.dot_dimension_numbers<[1], [0], [0], [1], [0, 0, 1, 1], [], []>} : vector<8x128xf32>, vector<128x128xf32>, vector<8x128xf32> -> vector<8x128xf32>
    %309 = arith.addf %308, %70 : vector<8x128xf32>
    %c0_160 = arith.constant 0 : index
    %c896 = arith.constant 896 : index
    %310 = vector.load %arg7[%c0_160, %c896] : memref<8x1024xf32, #tpu.memory_space<vmem>>, vector<8x128xf32>
    tpu.vector_store %arg7[%c0_160, %c896], %309 {strides = array<i32>} : memref<8x1024xf32, #tpu.memory_space<vmem>>, vector<8x128xf32>,
    %c0_161 = arith.constant 0 : index
    %c0_162 = arith.constant 0 : index
    %311 = vector.load %arg8[%c0_161, %c0_162] : memref<8x128xf32, #tpu.memory_space<vmem>>, vector<8x128xf32>
    tpu.vector_store %arg8[%c0_161, %c0_162], %306 {strides = array<i32>} : memref<8x128xf32, #tpu.memory_space<vmem>>, vector<8x128xf32>,
    %c0_163 = arith.constant 0 : index
    %c0_164 = arith.constant 0 : index
    %312 = vector.load %arg9[%c0_163, %c0_164] : memref<8x128xf32, #tpu.memory_space<vmem>>, vector<8x128xf32>
    tpu.vector_store %arg9[%c0_163, %c0_164], %304 {strides = array<i32>} : memref<8x128xf32, #tpu.memory_space<vmem>>, vector<8x128xf32>,
    return
  }
}

</mosaic_0001>

<bundles_post_ra>
// kernel: corruption_generator_forward.1
= control target key start
LH: loop header
LB: loop body
LE: loop exit
PB: predicated region body
PF: predicated region fallthrough
CT: control target
= control target key end

     0   :  { %15 = vsyncpa [#allocation4], 0  ;;  %s7423_s0 = inlined_call_operand.vmem [shape: s32[8,8], index: 0, kind: input, shape index: {}]   ;;  %s7424_s1 = inlined_call_operand.hbm [shape: f32[128,512], index: 1, kind: input, shape index: {}]   ;;  %s7425_s2 = inlined_call_operand.hbm [shape: f32[128,512], index: 2, kind: input, shape index: {}]   ;;  %s7426_s3 = inlined_call_operand.hbm [shape: f32[128,128], index: 3, kind: input, shape index: {}]   ;;  %s7427_s4 = inlined_call_operand.vmem [shape: f32[1,128], index: 4, kind: input, shape index: {}]   ;;  %s7428_s5 = inlined_call_operand.vmem [shape: f32[8,128], index: 5, kind: input, shape index: {}]   ;;  %s7429_s6 = inlined_call_operand.vmem [shape: f32[8,128], index: 6, kind: input, shape index: {}]   ;;  %s7430_s7 = inlined_call_operand.vmem [shape: f32[8,1024], index: 7, kind: output, shape index: {0}]   ;;  %s7431_s8 = inlined_call_operand.vmem [shape: f32[8,128], index: 8, kind: output, shape index: {1}]   ;;  %s7432_s9 = inlined_call_operand.vmem [shape: f32[8,128], index: 9, kind: output, shape index: {2}]  }
   0x1   :  { %16 = vsyncpa [#allocation6], 0  ;;  %s6222_s30 = smov [#allocation5]   ;;  %s6223_s11 = smov [#allocation3]  }
   0x2   :  { %s36_s10 = sshll.u32 %s6222_s30, 4  ;;  %s24_s12 = sshll.u32 %s6223_s11, 4  ;;  %s37_s10 = int_to_ptr.vmem [resolvable:$true] %s36_s10  ;;  %s6291_s12 = int_to_ptr.vmem [resolvable:$true] %s24_s12 }
   0x3   :  { %s6152_s15 = scalar_lea.hbm %s7425_s2, 8192 }
   0x4   :  { %p6153_p0 = scmp.ne.s32.totalorder %s7425_s2, %s6152_s15  ;;  %p6156_p1 = scmp.lt.u32.totalorder %s6152_s15, %s7425_s2 }
   0x6   :  { %p6158_p2 = pnand %p6156_p1, %p6153_p0 }
   0x8   :  { %6161 = shalt.err (!%p6158_p2)
}
   0x9   :  { %s6162_s20 = scalar_lea.vmem %s37_s10, 8192  ;;  %p6167_p4 = scmp.lt.s32.totalorder %s37_s10, %s37_s10 }
   0xa   :  { %p6163_p3 = scmp.ne.s32.totalorder %s37_s10, %s6162_s20  ;;  %p6168_p5 = scmp.lt.s32.totalorder %s6162_s20, %s6162_s20 }
   0xc   :  { %p6169_p6 = por %p6168_p5, %p6167_p4 }
   0xe   :  { %p6170_p7 = pnand %p6169_p6, %p6163_p3 }
  0x10   :  { %6173 = shalt.err (!%p6170_p7)
}
  0x11   :  { %s6224_s21 = smov 512   ;;  %s6225_s22 = smov 32  }
  0x12   :  { %42 = dma.hbm_to_vmem [thread:$0]  %s7425_s2, 8192, %s37_s10, [#allocation6], %s6224_s21, %s6224_s21, %s6225_s22  }
  0x13   :  { %s6174_s27 = scalar_lea.hbm %s7424_s1, 8192 }
  0x14   :  { %p6175_p8 = scmp.ne.s32.totalorder %s7424_s1, %s6174_s27  ;;  %p6178_p9 = scmp.lt.u32.totalorder %s6174_s27, %s7424_s1 }
  0x16   :  { %p6180_p10 = pnand %p6178_p9, %p6175_p8 }
  0x18   :  { %6183 = shalt.err (!%p6180_p10)
}
  0x19   :  { %s6184_s13 = scalar_lea.vmem %s6291_s12, 8192  ;;  %p6189_p12 = scmp.lt.s32.totalorder %s6291_s12, %s6291_s12 }
  0x1a   :  { %p6185_p11 = scmp.ne.s32.totalorder %s6291_s12, %s6184_s13  ;;  %p6190_p13 = scmp.lt.s32.totalorder %s6184_s13, %s6184_s13 }
  0x1c   :  { %p6191_p0 = por %p6190_p13, %p6189_p12 }
  0x1e   :  { %p6192_p1 = pnand %p6191_p0, %p6185_p11 }
  0x20   :  { %6195 = shalt.err (!%p6192_p1)
}
  0x21   :  { %30 = dma.hbm_to_vmem [thread:$0]  %s7424_s1, 8192, %s6291_s12, [#allocation4], %s6224_s21, %s6224_s21, %s6225_s22  }
  0x22   :  { %s6226_s14 = smov [#allocation7]   ;;  %s6196_s18 = scalar_lea.hbm %s7426_s3, 2048 }
  0x23   :  { %s48_s15 = sshll.u32 %s6226_s14, 4  ;;  %p6197_p2 = scmp.ne.s32.totalorder %s7426_s3, %s6196_s18  ;;  %s49_s15 = int_to_ptr.vmem [resolvable:$true] %s48_s15 }
  0x24   :  { %p6200_p3 = scmp.lt.u32.totalorder %s6196_s18, %s7426_s3 }
  0x26   :  { %p6202_p4 = pnand %p6200_p3, %p6197_p2 }
  0x28   :  { %6205 = shalt.err (!%p6202_p4)
}
  0x29   :  { %s6206_s25 = scalar_lea.vmem %s49_s15, 2048  ;;  %p6211_p6 = scmp.lt.s32.totalorder %s49_s15, %s49_s15 }
  0x2a   :  { %p6207_p5 = scmp.ne.s32.totalorder %s49_s15, %s6206_s25  ;;  %p6212_p7 = scmp.lt.s32.totalorder %s6206_s25, %s6206_s25 }
  0x2c   :  { %p6213_p8 = por %p6212_p7, %p6211_p6 }
  0x2e   :  { %p6214_p9 = pnand %p6213_p8, %p6207_p5 }
  0x30   :  { %6217 = shalt.err (!%p6214_p9)
}
  0x31   :  { %s6227_s1 = smov 128   ;;  %s6228_s12 = smov 8  }
  0x32   :  { %54 = dma.hbm_to_vmem [thread:$0]  %s7426_s3, 2048, %s49_s15, [#allocation6], %s6227_s1, %s6227_s1, %s6228_s12  }
  0x33   :  { %6218 = dma.done.wait [#allocation4], 8192  }
  0x34   :  { %6219 = vsyncadd [#allocation4], 4294959104 }
  0x35   :  { %6220 = dma.done.wait [#allocation6], 10240  }
  0x36   :  { %6221 = vsyncadd [#allocation6], 4294957056  ;;  %v6229_v0 = vmov 0   ;;  %v6230_v1 = vmov 2   ;;  %v6337_v2 = vld [vmem:[%s7423_s0] sm:$0xff]  ;;  %v80_v3 = vld [vmem:[#allocation3 + $0x8] sm:$0xff] }
  0x37   :  { %6062 = vset.pattern.permute.xlu0 %v6229_v0  ;;  %6064 = vset.pattern.permute.xlu1 %v6230_v1  ;;  %v84_v4 = vld [vmem:[#allocation3 + $0x28] sm:$0xff]  ;;  %v82_v6 = vld [vmem:[#allocation3 + $0x18] sm:$0xff]  ;;  %v79_v8 = vld [vmem:[#allocation3] sm:$0xff]  ;;  %v6231_v13 = vmov 0.0   ;;  %v6232_v23 = vmov 1   ;;  %v6233_v24 = vmov 3  }
  0x38   :  { %74 = vperm.xlu0 %6062, %v6337_v2   ;;  %506 = vperm.xlu1 %6064, %v6337_v2   ;;  %v6341_v5 = vpack.c.bf16 %v84_v4, %v80_v3  ;;  %v86_v7 = vld [vmem:[#allocation3 + $0x38] sm:$0xff]  ;;  %v83_v10 = vld [vmem:[#allocation3 + $0x20] sm:$0xff]  ;;  %v81_v11 = vld [vmem:[#allocation3 + $0x10] sm:$0xff]  ;;  %v6234_v44 = vmov 4   ;;  %vm6240_vm8 = vmmov 0  }
  0x39   :  { %v6343_v9 = vpack.c.bf16 %v86_v7, %v82_v6  ;;  %v85_v12 = vld [vmem:[#allocation3 + $0x30] sm:$0xff]  ;;  %207 = vmatprep.mubr.f32.mxu0 %v6231_v13  ;;  %278 = vmatprep.mubr.f32.mxu1 %v6231_v13  ;;  %v6348_v14 = vpack.c.bf16 %v83_v10, %v79_v8  ;;  %v88_v16 = vld [vmem:[#allocation3 + $0x48] sm:$0xff]  ;;  %v90_v18 = vld [vmem:[#allocation3 + $0x58] sm:$0xff] }
  0x3a   :  { %4796 = vmatprep.subr.bf16.mxu0 %v6341_v5  ;;  %v6350_v15 = vpack.c.bf16 %v85_v12, %v81_v11  ;;  %v92_v17 = vld [vmem:[#allocation3 + $0x68] sm:$0xff]  ;;  %v94_v20 = vld [vmem:[#allocation3 + $0x78] sm:$0xff]  ;;  %v87_v21 = vld [vmem:[#allocation3 + $0x40] sm:$0xff] }
  0x3b   :  { %4828 = vmatprep.subr.bf16.mxu1 %v6343_v9  ;;  %v6353_v19 = vpack.c.bf16 %v92_v17, %v88_v16  ;;  %v91_v22 = vld [vmem:[#allocation3 + $0x60] sm:$0xff]  ;;  %v6355_v25 = vpack.c.bf16 %v94_v20, %v90_v18  ;;  %v89_v26 = vld [vmem:[#allocation3 + $0x50] sm:$0xff]  ;;  %v96_v28 = vld [vmem:[#allocation3 + $0x88] sm:$0xff]  ;;  %4798 = vmatpush1.bf16.msra.mxu0 %v6348_v14 }
  0x3c   :  { %6063 = vset.pattern.permute.xlu0 %v6232_v23  ;;  %6065 = vset.pattern.permute.xlu1 %v6233_v24  ;;  %v93_v27 = vld [vmem:[#allocation3 + $0x70] sm:$0xff]  ;;  %v100_v29 = vld [vmem:[#allocation3 + $0xa8] sm:$0xff]  ;;  %v98_v30 = vld [vmem:[#allocation3 + $0x98] sm:$0xff]  ;;  %v6361_v32 = vpack.c.bf16 %v91_v22, %v87_v21 }
  0x3d   :  { %290 = vperm.xlu0 %6063, %v6337_v2   ;;  %722 = vperm.xlu1 %6065, %v6337_v2   ;;  %v102_v31 = vld [vmem:[#allocation3 + $0xb8] sm:$0xff]  ;;  %v6363_v33 = vpack.c.bf16 %v93_v27, %v89_v26  ;;  %v95_v34 = vld [vmem:[#allocation3 + $0x80] sm:$0xff]  ;;  %v6367_v36 = vpack.c.bf16 %v100_v29, %v96_v28  ;;  %v97_v38 = vld [vmem:[#allocation3 + $0x90] sm:$0xff] }
  0x3e   :  { %4830 = vmatpush1.bf16.msra.mxu1 %v6350_v15  ;;  %v99_v35 = vld [vmem:[#allocation3 + $0xa0] sm:$0xff]  ;;  %4800 = vmatprep.subr.bf16.mxu0 %v6353_v19  ;;  %v6369_v37 = vpack.c.bf16 %v102_v31, %v98_v30  ;;  %v101_v39 = vld [vmem:[#allocation3 + $0xb0] sm:$0xff]  ;;  %v104_v40 = vld [vmem:[#allocation3 + $0xc8] sm:$0xff] }
  0x3f   :  { %4832 = vmatprep.subr.bf16.mxu1 %v6355_v25  ;;  %v108_v41 = vld [vmem:[#allocation3 + $0xe8] sm:$0xff]  ;;  %v106_v42 = vld [vmem:[#allocation3 + $0xd8] sm:$0xff]  ;;  %4802 = vmatpush1.bf16.msra.mxu0 %v6361_v32  ;;  %v6373_v45 = vpack.c.bf16 %v99_v35, %v95_v34  ;;  %v6375_v46 = vpack.c.bf16 %v101_v39, %v97_v38  ;;  %v103_v47 = vld [vmem:[#allocation3 + $0xc0] sm:$0xff] }
  0x40   :  { %v110_v43 = vld [vmem:[#allocation3 + $0xf8] sm:$0xff]  ;;  %v107_v48 = vld [vmem:[#allocation3 + $0xe0] sm:$0xff]  ;;  %4804 = vmatprep.subr.bf16.mxu0 %v6367_v36  ;;  %v6379_v49 = vpack.c.bf16 %v108_v41, %v104_v40  ;;  %v105_v51 = vld [vmem:[#allocation3 + $0xd0] sm:$0xff] }
  0x41   :  { %6066 = vset.pattern.permute.xlu1 %v6234_v44  ;;  %v6381_v50 = vpack.c.bf16 %v110_v43, %v106_v42  ;;  %v109_v52 = vld [vmem:[#allocation3 + $0xf0] sm:$0xff]  ;;  %v112_v53 = vld [vmem:[#allocation3 + $0x108] sm:$0xff]  ;;  %v114_v55 = vld [vmem:[#allocation3 + $0x118] sm:$0xff]  ;;  %v6386_v57 = vpack.c.bf16 %v107_v48, %v103_v47 }
  0x42   :  { %4834 = vmatpush1.bf16.msra.mxu1 %v6363_v33  ;;  %v116_v54 = vld [vmem:[#allocation3 + $0x128] sm:$0xff]  ;;  %v118_v56 = vld [vmem:[#allocation3 + $0x138] sm:$0xff]  ;;  %938 = vperm.xlu1 %6066, %v6337_v2   ;;  %v6388_v58 = vpack.c.bf16 %v109_v52, %v105_v51  ;;  %v111_v59 = vld [vmem:[#allocation3 + $0x100] sm:$0xff] }
  0x43   :  { %4836 = vmatprep.subr.bf16.mxu1 %v6369_v37  ;;  %4806 = vmatpush1.bf16.msra.mxu0 %v6373_v45  ;;  %v115_v60 = vld [vmem:[#allocation3 + $0x120] sm:$0xff]  ;;  %v6392_v61 = vpack.c.bf16 %v116_v54, %v112_v53  ;;  %v6394_v62 = vpack.c.bf16 %v118_v56, %v114_v55  ;;  %v113_v63 = vld [vmem:[#allocation3 + $0x110] sm:$0xff]  ;;  %v120_v1 = vld [vmem:[#allocation3 + $0x148] sm:$0xff]  ;;  %v6235_v55 = vmov 5   ;;  %v6236_v56 = vmov 6  }
  0x44   :  { %4808 = vmatprep.subr.bf16.mxu0 %v6379_v49  ;;  %v117_v0 = vld [vmem:[#allocation3 + $0x130] sm:$0xff]  ;;  %v124_v3 = vld [vmem:[#allocation3 + $0x168] sm:$0xff]  ;;  %v122_v4 = vld [vmem:[#allocation3 + $0x158] sm:$0xff]  ;;  %v6398_v7 = vpack.c.bf16 %v115_v60, %v111_v59  ;;  %6067 = vset.pattern.permute.xlu0 %v6235_v55  ;;  %v6237_v59 = vmov 7   ;;  %v71_v60 = vlaneseq }
  0x45   :  { %v126_v6 = vld [vmem:[#allocation3 + $0x178] sm:$0xff]  ;;  %v6400_v8 = vpack.c.bf16 %v117_v0, %v113_v63  ;;  %v119_v10 = vld [vmem:[#allocation3 + $0x140] sm:$0xff]  ;;  %v6404_v12 = vpack.c.bf16 %v124_v3, %v120_v1  ;;  %v121_v17 = vld [vmem:[#allocation3 + $0x150] sm:$0xff]  ;;  %1154 = vperm.xlu0 %6067, %v6337_v2   ;;  %v6238_v1 = vmov 1.0  }
  0x46   :  { %4838 = vmatpush1.bf16.msra.mxu1 %v6375_v46  ;;  %v123_v11 = vld [vmem:[#allocation3 + $0x160] sm:$0xff]  ;;  %v6406_v16 = vpack.c.bf16 %v126_v6, %v122_v4  ;;  %v125_v18 = vld [vmem:[#allocation3 + $0x170] sm:$0xff]  ;;  %v128_v20 = vld [vmem:[#allocation3 + $0x188] sm:$0xff]  ;;  %6068 = vset.pattern.permute.xlu1 %v6236_v56  ;;  %v6447_v63 = vand.u32 127, %v71_v60 }
  0x47   :  { %4840 = vmatprep.subr.bf16.mxu1 %v6381_v50  ;;  %4810 = vmatpush1.bf16.msra.mxu0 %v6386_v57  ;;  %v132_v21 = vld [vmem:[#allocation3 + $0x1a8] sm:$0xff]  ;;  %v130_v22 = vld [vmem:[#allocation3 + $0x198] sm:$0xff]  ;;  %v6410_v24 = vpack.c.bf16 %v123_v11, %v119_v10  ;;  %v6412_v26 = vpack.c.bf16 %v125_v18, %v121_v17  ;;  %v127_v27 = vld [vmem:[#allocation3 + $0x180] sm:$0xff] }
  0x48   :  { %4812 = vmatprep.subr.bf16.mxu0 %v6392_v61  ;;  %v134_v23 = vld [vmem:[#allocation3 + $0x1b8] sm:$0xff]  ;;  %v131_v28 = vld [vmem:[#allocation3 + $0x1a0] sm:$0xff]  ;;  %v6416_v29 = vpack.c.bf16 %v132_v21, %v128_v20  ;;  %v129_v31 = vld [vmem:[#allocation3 + $0x190] sm:$0xff]  ;;  %1370 = vperm.xlu1 %6068, %v6337_v2  }
  0x49   :  { %v6418_v30 = vpack.c.bf16 %v134_v23, %v130_v22  ;;  %v133_v34 = vld [vmem:[#allocation3 + $0x1b0] sm:$0xff]  ;;  %v136_v35 = vld [vmem:[#allocation3 + $0x1c8] sm:$0xff]  ;;  %v138_v39 = vld [vmem:[#allocation3 + $0x1d8] sm:$0xff]  ;;  %v6422_v41 = vpack.c.bf16 %v131_v28, %v127_v27  ;;  %6070 = vset.pattern.permute.xlu0 %v6237_v59 }
  0x4a   :  { %4842 = vmatpush1.bf16.msra.mxu1 %v6388_v58  ;;  %v140_v38 = vld [vmem:[#allocation3 + $0x1e8] sm:$0xff]  ;;  %v142_v40 = vld [vmem:[#allocation3 + $0x1f8] sm:$0xff]  ;;  %v6424_v42 = vpack.c.bf16 %v133_v34, %v129_v31  ;;  %v135_v43 = vld [vmem:[#allocation3 + $0x1c0] sm:$0xff] }
  0x4b   :  { %4844 = vmatprep.subr.bf16.mxu1 %v6394_v62  ;;  %4814 = vmatpush1.bf16.msra.mxu0 %v6398_v7  ;;  %v6428_v44 = vpack.c.bf16 %v140_v38, %v136_v35  ;;  %v6430_v47 = vpack.c.bf16 %v142_v40, %v138_v39  ;;  %v139_v48 = vld [vmem:[#allocation3 + $0x1e0] sm:$0xff]  ;;  %v137_v51 = vld [vmem:[#allocation3 + $0x1d0] sm:$0xff]  ;;  %v960_v11 = vld [vmem:[#allocation3 + $0x88] sm:$0xff] }
  0x4c   :  { %4816 = vmatprep.subr.bf16.mxu0 %v6404_v12  ;;  %v141_v52 = vld [vmem:[#allocation3 + $0x1f0] sm:$0xff]  ;;  %v6434_v53 = vpack.c.bf16 %v139_v48, %v135_v43  ;;  %6069 = vset.pattern.permute.xlu1 %v6237_v59  ;;  %v955_v4 = vld [vmem:[#allocation3 + $0x60] sm:$0xff]  ;;  %v966_v17 = vld [vmem:[#allocation3 + $0xb8] sm:$0xff] }
  0x4d   :  { %v6436_v54 = vpack.c.bf16 %v141_v52, %v137_v51  ;;  %1586 = vperm.xlu1 %6069, %v6337_v2   ;;  %v957_v10 = vld [vmem:[#allocation3 + $0x70] sm:$0xff]  ;;  %v959_v21 = vld [vmem:[#allocation3 + $0x80] sm:$0xff]  ;;  %v968_v28 = vld [vmem:[#allocation3 + $0xc8] sm:$0xff] }
  0x4e   :  { %4846 = vmatpush1.bf16.msra.mxu1 %v6400_v8  ;;  %v963_v22 = vld [vmem:[#allocation3 + $0xa0] sm:$0xff]  ;;  %v965_v27 = vld [vmem:[#allocation3 + $0xb0] sm:$0xff]  ;;  %v974_v31 = vld [vmem:[#allocation3 + $0xf8] sm:$0xff] }
  0x4f   :  { %4848 = vmatprep.subr.bf16.mxu1 %v6406_v16  ;;  %4818 = vmatpush1.bf16.msra.mxu0 %v6410_v24  ;;  %v6595_v34 = vpack.c.bf16 %v963_v22, %v959_v21  ;;  %v967_v38 = vld [vmem:[#allocation3 + $0xc0] sm:$0xff]  ;;  %v973_v43 = vld [vmem:[#allocation3 + $0xf0] sm:$0xff]  ;;  %v978_v48 = vld [vmem:[#allocation3 + $0x118] sm:$0xff] }
  0x50   :  { %4820 = vmatprep.subr.bf16.mxu0 %v6416_v29  ;;  %v971_v39 = vld [vmem:[#allocation3 + $0xe0] sm:$0xff]  ;;  %v982_v51 = vld [vmem:[#allocation3 + $0x138] sm:$0xff]  ;;  %v977_v60 = vld [vmem:[#allocation3 + $0x110] sm:$0xff] }
  0x51   :  { %v6607_v52 = vpack.c.bf16 %v971_v39, %v967_v38  ;;  %v979_v55 = vld [vmem:[#allocation3 + $0x120] sm:$0xff]  ;;  %v6615_v59 = vpack.c.bf16 %v982_v51, %v978_v48  ;;  %v997_v21 = vld [vmem:[#allocation3 + $0x1b0] sm:$0xff]  ;;  %v1000_v22 = vld [vmem:[#allocation3 + $0x1c8] sm:$0xff] }
  0x52   :  { %4850 = vmatpush1.bf16.msra.mxu1 %v6412_v26 }
  0x53   :  { %4852 = vmatprep.subr.bf16.mxu1 %v6418_v30  ;;  %4822 = vmatpush1.bf16.msra.mxu0 %v6422_v41 }
  0x54   :  { %4824 = vmatprep.subr.bf16.mxu0 %v6428_v44 }
  0x56   :  { %4854 = vmatpush1.bf16.msra.mxu1 %v6424_v42 }
  0x57   :  { %4856 = vmatprep.subr.bf16.mxu1 %v6430_v47  ;;  %4826 = vmatpush1.bf16.msra.mxu0 %v6434_v53 }
  0x58   :  { %4860 = vmatprep.subr.bf16.mxu0 %v6341_v5 }
  0x5a   :  { %4858 = vmatpush1.bf16.msra.mxu1 %v6436_v54 }
  0x5b   :  { %4892 = vmatprep.subr.bf16.mxu1 %v6343_v9 }
  0xb7   :  { %v75_v0 = vpop.permute.xlu0 %74  ;;  %v507_v3 = vpop.permute.xlu1 %506 }
  0xb8   :  { %vm76_vm0 = vcmp.eq.s32.totalorder %v75_v0, %v6447_v63  ;;  %vm508_vm2 = vcmp.eq.s32.totalorder %v507_v3, %v6447_v63  ;;  %v981_v0 = vld [vmem:[#allocation3 + $0x130] sm:$0xff]  ;;  %v988_v3 = vld [vmem:[#allocation3 + $0x168] sm:$0xff] }
  0xb9   :  { %4355 = vmatmul.mubr.msk.f32.vlgmr.msra.gmra.mrb[0].mxu0 %vm76_vm0, %v6238_v1  ;;  %4356 = vmatmul.mubr.msk.f32.vlgmr.msra.gmra.mrb[0].mxu1 %vm76_vm0, %v6238_v1 }
  0xba   :  { %4862 = vmatpush1.bf16.msra.mxu0 %v6348_v14  ;;  %4894 = vmatpush1.bf16.msra.mxu1 %v6350_v15 }
  0xbb   :  { %4864 = vmatprep.subr.bf16.mxu0 %v6353_v19  ;;  %4896 = vmatprep.subr.bf16.mxu1 %v6355_v25 }
  0xbc   :  { %423 = vmatprep.mubr.f32.mxu0 %v6231_v13  ;;  %494 = vmatprep.mubr.f32.mxu1 %v6231_v13  ;;  %v291_v2 = vpop.permute.xlu0 %290 }
  0xbd   :  { %vm292_vm1 = vcmp.eq.s32.totalorder %v291_v2, %v6447_v63  ;;  %v984_v2 = vld [vmem:[#allocation3 + $0x148] sm:$0xff] }
  0xbe   :  { %4866 = vmatpush1.bf16.msra.mxu0 %v6361_v32  ;;  %4898 = vmatpush1.bf16.msra.mxu1 %v6363_v33 }
  0xbf   :  { %4868 = vmatprep.subr.bf16.mxu0 %v6367_v36  ;;  %4900 = vmatprep.subr.bf16.mxu1 %v6369_v37 }
  0xc2   :  { %4870 = vmatpush1.bf16.msra.mxu0 %v6373_v45  ;;  %4902 = vmatpush1.bf16.msra.mxu1 %v6375_v46 }
  0xc3   :  { %4872 = vmatprep.subr.bf16.mxu0 %v6379_v49  ;;  %4904 = vmatprep.subr.bf16.mxu1 %v6381_v50 }
  0xc6   :  { %4874 = vmatpush1.bf16.msra.mxu0 %v6386_v57  ;;  %4906 = vmatpush1.bf16.msra.mxu1 %v6388_v58 }
  0xc7   :  { %4876 = vmatprep.subr.bf16.mxu0 %v6392_v61  ;;  %4908 = vmatprep.subr.bf16.mxu1 %v6394_v62 }
  0xca   :  { %4878 = vmatpush1.bf16.msra.mxu0 %v6398_v7  ;;  %4910 = vmatpush1.bf16.msra.mxu1 %v6400_v8 }
  0xcb   :  { %4880 = vmatprep.subr.bf16.mxu0 %v6404_v12  ;;  %4912 = vmatprep.subr.bf16.mxu1 %v6406_v16 }
  0xce   :  { %4882 = vmatpush1.bf16.msra.mxu0 %v6410_v24  ;;  %4914 = vmatpush1.bf16.msra.mxu1 %v6412_v26 }
  0xcf   :  { %4884 = vmatprep.subr.bf16.mxu0 %v6416_v29  ;;  %4916 = vmatprep.subr.bf16.mxu1 %v6418_v30 }
  0xd2   :  { %4886 = vmatpush1.bf16.msra.mxu0 %v6422_v41  ;;  %4918 = vmatpush1.bf16.msra.mxu1 %v6424_v42 }
  0xd3   :  { %4888 = vmatprep.subr.bf16.mxu0 %v6428_v44  ;;  %4920 = vmatprep.subr.bf16.mxu1 %v6430_v47 }
  0xd6   :  { %4890 = vmatpush1.bf16.msra.mxu0 %v6434_v53  ;;  %4922 = vmatpush1.bf16.msra.mxu1 %v6436_v54 }
  0xd7   :  { %4924 = vmatprep.subr.bf16.mxu0 %v6341_v5  ;;  %4956 = vmatprep.subr.bf16.mxu1 %v6343_v9 }
  0xd9   :  { %4358 = vmatmul.mubr.msk.f32.vlgmr.msra.gmra.mrb[2].mxu0 %vm292_vm1, %v6238_v1  ;;  %4359 = vmatmul.mubr.msk.f32.vlgmr.msra.gmra.mrb[2].mxu1 %vm292_vm1, %v6238_v1 }
  0xda   :  { %4926 = vmatpush1.bf16.msra.mxu0 %v6348_v14  ;;  %4958 = vmatpush1.bf16.msra.mxu1 %v6350_v15 }
  0xdb   :  { %4928 = vmatprep.subr.bf16.mxu0 %v6353_v19  ;;  %4960 = vmatprep.subr.bf16.mxu1 %v6355_v25 }
  0xdc   :  { %639 = vmatprep.mubr.f32.mxu0 %v6231_v13  ;;  %710 = vmatprep.mubr.f32.mxu1 %v6231_v13 }
  0xde   :  { %4930 = vmatpush1.bf16.msra.mxu0 %v6361_v32  ;;  %4962 = vmatpush1.bf16.msra.mxu1 %v6363_v33 }
  0xdf   :  { %4932 = vmatprep.subr.bf16.mxu0 %v6367_v36  ;;  %4964 = vmatprep.subr.bf16.mxu1 %v6369_v37 }
  0xe2   :  { %4934 = vmatpush1.bf16.msra.mxu0 %v6373_v45  ;;  %4966 = vmatpush1.bf16.msra.mxu1 %v6375_v46 }
  0xe3   :  { %4936 = vmatprep.subr.bf16.mxu0 %v6379_v49  ;;  %4968 = vmatprep.subr.bf16.mxu1 %v6381_v50 }
  0xe6   :  { %4938 = vmatpush1.bf16.msra.mxu0 %v6386_v57  ;;  %4970 = vmatpush1.bf16.msra.mxu1 %v6388_v58 }
  0xe7   :  { %4940 = vmatprep.subr.bf16.mxu0 %v6392_v61  ;;  %4972 = vmatprep.subr.bf16.mxu1 %v6394_v62 }
  0xea   :  { %4942 = vmatpush1.bf16.msra.mxu0 %v6398_v7  ;;  %4974 = vmatpush1.bf16.msra.mxu1 %v6400_v8 }
  0xeb   :  { %4944 = vmatprep.subr.bf16.mxu0 %v6404_v12  ;;  %4976 = vmatprep.subr.bf16.mxu1 %v6406_v16 }
  0xee   :  { %4946 = vmatpush1.bf16.msra.mxu0 %v6410_v24  ;;  %4978 = vmatpush1.bf16.msra.mxu1 %v6412_v26 }
  0xef   :  { %4948 = vmatprep.subr.bf16.mxu0 %v6416_v29  ;;  %4980 = vmatprep.subr.bf16.mxu1 %v6418_v30 }
  0xf2   :  { %4950 = vmatpush1.bf16.msra.mxu0 %v6422_v41  ;;  %4982 = vmatpush1.bf16.msra.mxu1 %v6424_v42 }
  0xf3   :  { %4952 = vmatprep.subr.bf16.mxu0 %v6428_v44  ;;  %4984 = vmatprep.subr.bf16.mxu1 %v6430_v47 }
  0xf6   :  { %4954 = vmatpush1.bf16.msra.mxu0 %v6434_v53  ;;  %4986 = vmatpush1.bf16.msra.mxu1 %v6436_v54 }
  0xf7   :  { %4988 = vmatprep.subr.bf16.mxu0 %v6341_v5  ;;  %5020 = vmatprep.subr.bf16.mxu1 %v6343_v9  ;;  %v944_v5 = vld [vmem:[#allocation3 + $0x8] sm:$0xff] }
  0xf8   :  { %v948_v9 = vld [vmem:[#allocation3 + $0x28] sm:$0xff] }
  0xf9   :  { %4361 = vmatmul.mubr.msk.f32.vlgmr.msra.gmra.mrb[4].mxu0 %vm508_vm2, %v6238_v1  ;;  %4362 = vmatmul.mubr.msk.f32.vlgmr.msra.gmra.mrb[4].mxu1 %vm508_vm2, %v6238_v1 }
  0xfa   :  { %4990 = vmatpush1.bf16.msra.mxu0 %v6348_v14  ;;  %5022 = vmatpush1.bf16.msra.mxu1 %v6350_v15  ;;  %v946_v14 = vld [vmem:[#allocation3 + $0x18] sm:$0xff] }
  0xfb   :  { %4992 = vmatprep.subr.bf16.mxu0 %v6353_v19  ;;  %5024 = vmatprep.subr.bf16.mxu1 %v6355_v25  ;;  %v950_v15 = vld [vmem:[#allocation3 + $0x38] sm:$0xff]  ;;  %v943_v19 = vld [vmem:[#allocation3] sm:$0xff] }
  0xfc   :  { %855 = vmatprep.mubr.f32.mxu0 %v6231_v13  ;;  %926 = vmatprep.mubr.f32.mxu1 %v6231_v13  ;;  %v947_v25 = vld [vmem:[#allocation3 + $0x20] sm:$0xff] }
  0xfe   :  { %4994 = vmatpush1.bf16.msra.mxu0 %v6361_v32  ;;  %5026 = vmatpush1.bf16.msra.mxu1 %v6363_v33  ;;  %v723_v32 = vpop.permute.xlu1 %722  ;;  %v6556_v33 = vpack.c.bf16 %v948_v9, %v944_v5  ;;  %v986_v5 = vld [vmem:[#allocation3 + $0x158] sm:$0xff] }
  0xff   :  { %4996 = vmatprep.subr.bf16.mxu0 %v6367_v36  ;;  %5028 = vmatprep.subr.bf16.mxu1 %v6369_v37  ;;  %v6558_v36 = vpack.c.bf16 %v950_v15, %v946_v14  ;;  %v945_v37 = vld [vmem:[#allocation3 + $0x10] sm:$0xff]  ;;  %vm724_vm3 = vcmp.eq.s32.totalorder %v723_v32, %v6447_v63  ;;  %v990_v9 = vld [vmem:[#allocation3 + $0x178] sm:$0xff]  ;;  %v6621_v15 = vpack.c.bf16 %v981_v0, %v977_v60  ;;  %v1826_v60 = vld [vmem:[#allocation5 + $0x60] sm:$0xff] }
 0x100   :  { %v6625_v32 = vpack.c.bf16 %v988_v3, %v984_v2  ;;  %v1824_v3 = vld [vmem:[#allocation5 + $0x50] sm:$0xff] }
 0x102   :  { %4998 = vmatpush1.bf16.msra.mxu0 %v6373_v45  ;;  %5030 = vmatpush1.bf16.msra.mxu1 %v6375_v46  ;;  %v949_v45 = vld [vmem:[#allocation3 + $0x30] sm:$0xff]  ;;  %v952_v46 = vld [vmem:[#allocation3 + $0x48] sm:$0xff]  ;;  %v939_v51 = vpop.permute.xlu1 %938 }
 0x103   :  { %5000 = vmatprep.subr.bf16.mxu0 %v6379_v49  ;;  %5032 = vmatprep.subr.bf16.mxu1 %v6381_v50  ;;  %v956_v49 = vld [vmem:[#allocation3 + $0x68] sm:$0xff]  ;;  %v954_v50 = vld [vmem:[#allocation3 + $0x58] sm:$0xff]  ;;  %vm940_vm4 = vcmp.eq.s32.totalorder %v939_v51, %v6447_v63 }
 0x104   :  { %v6569_v6 = vpack.c.bf16 %v956_v49, %v952_v46  ;;  %v989_v46 = vld [vmem:[#allocation3 + $0x170] sm:$0xff]  ;;  %v992_v49 = vld [vmem:[#allocation3 + $0x188] sm:$0xff] }
 0x105   :  { %v1859_v51 = vld [vmem:[#allocation5 + $0x168] sm:$0xff] }
 0x106   :  { %5002 = vmatpush1.bf16.msra.mxu0 %v6386_v57  ;;  %5034 = vmatpush1.bf16.msra.mxu1 %v6388_v58  ;;  %v958_v57 = vld [vmem:[#allocation3 + $0x78] sm:$0xff]  ;;  %v6563_v58 = vpack.c.bf16 %v947_v25, %v943_v19  ;;  %v983_v19 = vld [vmem:[#allocation3 + $0x140] sm:$0xff] }
 0x107   :  { %5004 = vmatprep.subr.bf16.mxu0 %v6392_v61  ;;  %5036 = vmatprep.subr.bf16.mxu1 %v6394_v62  ;;  %v6565_v61 = vpack.c.bf16 %v949_v45, %v945_v37  ;;  %v951_v62 = vld [vmem:[#allocation3 + $0x40] sm:$0xff]  ;;  %v6627_v37 = vpack.c.bf16 %v990_v9, %v986_v5  ;;  %v985_v45 = vld [vmem:[#allocation3 + $0x150] sm:$0xff]  ;;  %v1831_v9 = vld [vmem:[#allocation5 + $0x88] sm:$0xff] }
 0x108   :  { %v6581_v18 = vpack.c.bf16 %v955_v4, %v951_v62  ;;  %v987_v25 = vld [vmem:[#allocation3 + $0x160] sm:$0xff]  ;;  %v998_v62 = vld [vmem:[#allocation3 + $0x1b8] sm:$0xff]  ;;  %v1828_v5 = vld [vmem:[#allocation5 + $0x70] sm:$0xff] }
 0x109   :  { %v6631_v4 = vpack.c.bf16 %v987_v25, %v983_v19  ;;  %v1837_v19 = vld [vmem:[#allocation5 + $0xb8] sm:$0xff] }
 0x10a   :  { %5006 = vmatpush1.bf16.msra.mxu0 %v6398_v7  ;;  %5038 = vmatpush1.bf16.msra.mxu1 %v6400_v8  ;;  %v6571_v7 = vpack.c.bf16 %v958_v57, %v954_v50  ;;  %v953_v8 = vld [vmem:[#allocation3 + $0x50] sm:$0xff]  ;;  %v996_v50 = vld [vmem:[#allocation3 + $0x1a8] sm:$0xff]  ;;  %v994_v57 = vld [vmem:[#allocation3 + $0x198] sm:$0xff] }
 0x10b   :  { %5008 = vmatprep.subr.bf16.mxu0 %v6404_v12  ;;  %5040 = vmatprep.subr.bf16.mxu1 %v6406_v16  ;;  %v964_v12 = vld [vmem:[#allocation3 + $0xa8] sm:$0xff]  ;;  %v962_v16 = vld [vmem:[#allocation3 + $0x98] sm:$0xff]  ;;  %v6583_v20 = vpack.c.bf16 %v957_v10, %v953_v8  ;;  %v6633_v8 = vpack.c.bf16 %v989_v46, %v985_v45  ;;  %v991_v10 = vld [vmem:[#allocation3 + $0x180] sm:$0xff] }
 0x10c   :  { %v6587_v23 = vpack.c.bf16 %v964_v12, %v960_v11  ;;  %v995_v11 = vld [vmem:[#allocation3 + $0x1a0] sm:$0xff]  ;;  %v6637_v12 = vpack.c.bf16 %v996_v50, %v992_v49  ;;  %v1839_v50 = vld [vmem:[#allocation5 + $0xc8] sm:$0xff] }
 0x10d   :  { %v1834_v45 = vld [vmem:[#allocation5 + $0xa0] sm:$0xff] }
 0x10e   :  { %5010 = vmatpush1.bf16.msra.mxu0 %v6410_v24  ;;  %5042 = vmatpush1.bf16.msra.mxu1 %v6412_v26  ;;  %v6589_v24 = vpack.c.bf16 %v966_v17, %v962_v16  ;;  %v961_v26 = vld [vmem:[#allocation3 + $0x90] sm:$0xff]  ;;  %v6639_v16 = vpack.c.bf16 %v998_v62, %v994_v57  ;;  %v1843_v57 = vld [vmem:[#allocation5 + $0xe8] sm:$0xff]  ;;  %v1841_v62 = vld [vmem:[#allocation5 + $0xd8] sm:$0xff] }
 0x10f   :  { %5012 = vmatprep.subr.bf16.mxu0 %v6416_v29  ;;  %5044 = vmatprep.subr.bf16.mxu1 %v6418_v30  ;;  %v972_v29 = vld [vmem:[#allocation3 + $0xe8] sm:$0xff]  ;;  %v970_v30 = vld [vmem:[#allocation3 + $0xd8] sm:$0xff]  ;;  %v6597_v35 = vpack.c.bf16 %v965_v27, %v961_v26  ;;  %v993_v17 = vld [vmem:[#allocation3 + $0x190] sm:$0xff] }
 0x110   :  { %v6601_v40 = vpack.c.bf16 %v972_v29, %v968_v28  ;;  %v1004_v26 = vld [vmem:[#allocation3 + $0x1e8] sm:$0xff]  ;;  %v1002_v27 = vld [vmem:[#allocation3 + $0x1d8] sm:$0xff]  ;;  %v6643_v29 = vpack.c.bf16 %v995_v11, %v991_v10  ;;  %v1838_v11 = vld [vmem:[#allocation5 + $0xc0] sm:$0xff] }
 0x111   :  { %v1006_v28 = vld [vmem:[#allocation3 + $0x1f8] sm:$0xff]  ;;  %v6649_v38 = vpack.c.bf16 %v1004_v26, %v1000_v22  ;;  %v1844_v22 = vld [vmem:[#allocation5 + $0xf0] sm:$0xff]  ;;  %v1847_v26 = vld [vmem:[#allocation5 + $0x108] sm:$0xff] }
 0x112   :  { %5014 = vmatpush1.bf16.msra.mxu0 %v6422_v41  ;;  %5046 = vmatpush1.bf16.msra.mxu1 %v6424_v42  ;;  %v6603_v41 = vpack.c.bf16 %v974_v31, %v970_v30  ;;  %v969_v42 = vld [vmem:[#allocation3 + $0xd0] sm:$0xff]  ;;  %v6645_v30 = vpack.c.bf16 %v997_v21, %v993_v17  ;;  %v999_v31 = vld [vmem:[#allocation3 + $0x1c0] sm:$0xff]  ;;  %v6651_v39 = vpack.c.bf16 %v1006_v28, %v1002_v27  ;;  %v1851_v27 = vld [vmem:[#allocation5 + $0x128] sm:$0xff] }
 0x113   :  { %5016 = vmatprep.subr.bf16.mxu0 %v6428_v44  ;;  %5048 = vmatprep.subr.bf16.mxu1 %v6430_v47  ;;  %v976_v44 = vld [vmem:[#allocation3 + $0x108] sm:$0xff]  ;;  %v1840_v21 = vld [vmem:[#allocation5 + $0xd0] sm:$0xff]  ;;  %v1849_v28 = vld [vmem:[#allocation5 + $0x118] sm:$0xff] }
 0x114   :  { %v980_v47 = vld [vmem:[#allocation3 + $0x128] sm:$0xff] }
 0x115   :  { %v6613_v56 = vpack.c.bf16 %v980_v47, %v976_v44  ;;  %v1005_v44 = vld [vmem:[#allocation3 + $0x1f0] sm:$0xff] }
 0x116   :  { %5018 = vmatpush1.bf16.msra.mxu0 %v6434_v53  ;;  %5050 = vmatpush1.bf16.msra.mxu1 %v6436_v54  ;;  %v6609_v53 = vpack.c.bf16 %v973_v43, %v969_v42  ;;  %v975_v54 = vld [vmem:[#allocation3 + $0x100] sm:$0xff]  ;;  %v1001_v43 = vld [vmem:[#allocation3 + $0x1d0] sm:$0xff] }
 0x117   :  { %5052 = vmatprep.subr.bf16.mxu0 %v6556_v33  ;;  %5084 = vmatprep.subr.bf16.mxu1 %v6558_v36  ;;  %v6619_v14 = vpack.c.bf16 %v979_v55, %v975_v54  ;;  %v1003_v42 = vld [vmem:[#allocation3 + $0x1e0] sm:$0xff]  ;;  %v6657_v48 = vpack.c.bf16 %v1005_v44, %v1001_v43  ;;  %v1155_v54 = vpop.permute.xlu0 %1154  ;;  %v1371_v55 = vpop.permute.xlu1 %1370  ;;  %v1848_v44 = vld [vmem:[#allocation5 + $0x110] sm:$0xff] }
 0x118   :  { %v6655_v47 = vpack.c.bf16 %v1003_v42, %v999_v31  ;;  %vm1156_vm5 = vcmp.eq.s32.totalorder %v1155_v54, %v6447_v63  ;;  %vm1372_vm6 = vcmp.eq.s32.totalorder %v1371_v55, %v6447_v63  ;;  %v6825_v31 = vpack.c.bf16 %v1844_v22, %v1840_v21  ;;  %v1857_v54 = vld [vmem:[#allocation5 + $0x158] sm:$0xff]  ;;  %v1876_v21 = vld [vmem:[#allocation5 + $0x1f0] sm:$0xff] }
 0x119   :  { %4364 = vmatmul.mubr.msk.f32.vlgmr.msra.gmra.mrb[6].mxu0 %vm724_vm3, %v6238_v1  ;;  %4365 = vmatmul.mubr.msk.f32.vlgmr.msra.gmra.mrb[6].mxu1 %vm724_vm3, %v6238_v1  ;;  %v6829_v42 = vpack.c.bf16 %v1851_v27, %v1847_v26  ;;  %v1861_v55 = vld [vmem:[#allocation5 + $0x178] sm:$0xff]  ;;  %v1801_v27 = vld [vmem:[%s7428_s5] sm:$0xff] }
 0x11a   :  { %5054 = vmatpush1.bf16.msra.mxu0 %v6563_v58  ;;  %5086 = vmatpush1.bf16.msra.mxu1 %v6565_v61 }
 0x11b   :  { %5056 = vmatprep.subr.bf16.mxu0 %v6569_v6  ;;  %5088 = vmatprep.subr.bf16.mxu1 %v6571_v7 }
 0x11c   :  { %1071 = vmatprep.mubr.f32.mxu0 %v6231_v13  ;;  %1142 = vmatprep.mubr.f32.mxu1 %v6231_v13 }
 0x11e   :  { %5058 = vmatpush1.bf16.msra.mxu0 %v6581_v18  ;;  %5090 = vmatpush1.bf16.msra.mxu1 %v6583_v20 }
 0x11f   :  { %5060 = vmatprep.subr.bf16.mxu0 %v6587_v23  ;;  %5092 = vmatprep.subr.bf16.mxu1 %v6589_v24 }
 0x122   :  { %5062 = vmatpush1.bf16.msra.mxu0 %v6595_v34  ;;  %5094 = vmatpush1.bf16.msra.mxu1 %v6597_v35 }
 0x123   :  { %5064 = vmatprep.subr.bf16.mxu0 %v6601_v40  ;;  %5096 = vmatprep.subr.bf16.mxu1 %v6603_v41 }
 0x126   :  { %5066 = vmatpush1.bf16.msra.mxu0 %v6607_v52  ;;  %5098 = vmatpush1.bf16.msra.mxu1 %v6609_v53 }
 0x127   :  { %5068 = vmatprep.subr.bf16.mxu0 %v6613_v56  ;;  %5100 = vmatprep.subr.bf16.mxu1 %v6615_v59 }
 0x12a   :  { %5070 = vmatpush1.bf16.msra.mxu0 %v6619_v14  ;;  %5102 = vmatpush1.bf16.msra.mxu1 %v6621_v15 }
 0x12b   :  { %5072 = vmatprep.subr.bf16.mxu0 %v6625_v32  ;;  %5104 = vmatprep.subr.bf16.mxu1 %v6627_v37 }
 0x12e   :  { %5074 = vmatpush1.bf16.msra.mxu0 %v6631_v4  ;;  %5106 = vmatpush1.bf16.msra.mxu1 %v6633_v8 }
 0x12f   :  { %5076 = vmatprep.subr.bf16.mxu0 %v6637_v12  ;;  %5108 = vmatprep.subr.bf16.mxu1 %v6639_v16 }
 0x132   :  { %5078 = vmatpush1.bf16.msra.mxu0 %v6643_v29  ;;  %5110 = vmatpush1.bf16.msra.mxu1 %v6645_v30 }
 0x133   :  { %5080 = vmatprep.subr.bf16.mxu0 %v6649_v38  ;;  %5112 = vmatprep.subr.bf16.mxu1 %v6651_v39 }
 0x136   :  { %5082 = vmatpush1.bf16.msra.mxu0 %v6655_v47  ;;  %5114 = vmatpush1.bf16.msra.mxu1 %v6657_v48 }
 0x137   :  { %5116 = vmatprep.subr.bf16.mxu0 %v6556_v33  ;;  %5148 = vmatprep.subr.bf16.mxu1 %v6558_v36 }
 0x139   :  { %4367 = vmatmul.mubr.msk.f32.vlgmr.msra.gmra.mrb[8].mxu0 %vm940_vm4, %v6238_v1  ;;  %4368 = vmatmul.mubr.msk.f32.vlgmr.msra.gmra.mrb[8].mxu1 %vm940_vm4, %v6238_v1 }
 0x13a   :  { %5118 = vmatpush1.bf16.msra.mxu0 %v6563_v58  ;;  %5150 = vmatpush1.bf16.msra.mxu1 %v6565_v61 }
 0x13b   :  { %5120 = vmatprep.subr.bf16.mxu0 %v6569_v6  ;;  %5152 = vmatprep.subr.bf16.mxu1 %v6571_v7 }
 0x13c   :  { %1287 = vmatprep.mubr.f32.mxu0 %v6231_v13  ;;  %1358 = vmatprep.mubr.f32.mxu1 %v6231_v13 }
 0x13e   :  { %5122 = vmatpush1.bf16.msra.mxu0 %v6581_v18  ;;  %5154 = vmatpush1.bf16.msra.mxu1 %v6583_v20 }
 0x13f   :  { %5124 = vmatprep.subr.bf16.mxu0 %v6587_v23  ;;  %5156 = vmatprep.subr.bf16.mxu1 %v6589_v24 }
 0x142   :  { %5126 = vmatpush1.bf16.msra.mxu0 %v6595_v34  ;;  %5158 = vmatpush1.bf16.msra.mxu1 %v6597_v35 }
 0x143   :  { %5128 = vmatprep.subr.bf16.mxu0 %v6601_v40  ;;  %5160 = vmatprep.subr.bf16.mxu1 %v6603_v41 }
 0x146   :  { %5130 = vmatpush1.bf16.msra.mxu0 %v6607_v52  ;;  %5162 = vmatpush1.bf16.msra.mxu1 %v6609_v53 }
 0x147   :  { %5132 = vmatprep.subr.bf16.mxu0 %v6613_v56  ;;  %5164 = vmatprep.subr.bf16.mxu1 %v6615_v59 }
 0x14a   :  { %5134 = vmatpush1.bf16.msra.mxu0 %v6619_v14  ;;  %5166 = vmatpush1.bf16.msra.mxu1 %v6621_v15 }
 0x14b   :  { %5136 = vmatprep.subr.bf16.mxu0 %v6625_v32  ;;  %5168 = vmatprep.subr.bf16.mxu1 %v6627_v37 }
 0x14e   :  { %5138 = vmatpush1.bf16.msra.mxu0 %v6631_v4  ;;  %5170 = vmatpush1.bf16.msra.mxu1 %v6633_v8 }
 0x14f   :  { %5140 = vmatprep.subr.bf16.mxu0 %v6637_v12  ;;  %5172 = vmatprep.subr.bf16.mxu1 %v6639_v16 }
 0x152   :  { %5142 = vmatpush1.bf16.msra.mxu0 %v6643_v29  ;;  %5174 = vmatpush1.bf16.msra.mxu1 %v6645_v30 }
 0x153   :  { %5144 = vmatprep.subr.bf16.mxu0 %v6649_v38  ;;  %5176 = vmatprep.subr.bf16.mxu1 %v6651_v39 }
 0x156   :  { %5146 = vmatpush1.bf16.msra.mxu0 %v6655_v47  ;;  %5178 = vmatpush1.bf16.msra.mxu1 %v6657_v48 }
 0x157   :  { %5180 = vmatprep.subr.bf16.mxu0 %v6556_v33  ;;  %5212 = vmatprep.subr.bf16.mxu1 %v6558_v36 }
 0x159   :  { %4370 = vmatmul.mubr.msk.f32.vlgmr.msra.gmra.mrb[10].mxu0 %vm1156_vm5, %v6238_v1  ;;  %4371 = vmatmul.mubr.msk.f32.vlgmr.msra.gmra.mrb[10].mxu1 %vm1156_vm5, %v6238_v1 }
 0x15a   :  { %5182 = vmatpush1.bf16.msra.mxu0 %v6563_v58  ;;  %5214 = vmatpush1.bf16.msra.mxu1 %v6565_v61 }
 0x15b   :  { %5184 = vmatprep.subr.bf16.mxu0 %v6569_v6  ;;  %5216 = vmatprep.subr.bf16.mxu1 %v6571_v7 }
 0x15c   :  { %1503 = vmatprep.mubr.f32.mxu0 %v6231_v13  ;;  %1574 = vmatprep.mubr.f32.mxu1 %v6231_v13 }
 0x15e   :  { %5186 = vmatpush1.bf16.msra.mxu0 %v6581_v18  ;;  %5218 = vmatpush1.bf16.msra.mxu1 %v6583_v20 }
 0x15f   :  { %5188 = vmatprep.subr.bf16.mxu0 %v6587_v23  ;;  %5220 = vmatprep.subr.bf16.mxu1 %v6589_v24 }
 0x162   :  { %5190 = vmatpush1.bf16.msra.mxu0 %v6595_v34  ;;  %5222 = vmatpush1.bf16.msra.mxu1 %v6597_v35 }
 0x163   :  { %5192 = vmatprep.subr.bf16.mxu0 %v6601_v40  ;;  %5224 = vmatprep.subr.bf16.mxu1 %v6603_v41 }
 0x166   :  { %5194 = vmatpush1.bf16.msra.mxu0 %v6607_v52  ;;  %5226 = vmatpush1.bf16.msra.mxu1 %v6609_v53 }
 0x167   :  { %5196 = vmatprep.subr.bf16.mxu0 %v6613_v56  ;;  %5228 = vmatprep.subr.bf16.mxu1 %v6615_v59 }
 0x16a   :  { %5198 = vmatpush1.bf16.msra.mxu0 %v6619_v14  ;;  %5230 = vmatpush1.bf16.msra.mxu1 %v6621_v15 }
 0x16b   :  { %5200 = vmatprep.subr.bf16.mxu0 %v6625_v32  ;;  %5232 = vmatprep.subr.bf16.mxu1 %v6627_v37 }
 0x16e   :  { %5202 = vmatpush1.bf16.msra.mxu0 %v6631_v4  ;;  %5234 = vmatpush1.bf16.msra.mxu1 %v6633_v8 }
 0x16f   :  { %5204 = vmatprep.subr.bf16.mxu0 %v6637_v12  ;;  %5236 = vmatprep.subr.bf16.mxu1 %v6639_v16 }
 0x172   :  { %5206 = vmatpush1.bf16.msra.mxu0 %v6643_v29  ;;  %5238 = vmatpush1.bf16.msra.mxu1 %v6645_v30 }
 0x173   :  { %5208 = vmatprep.subr.bf16.mxu0 %v6649_v38  ;;  %5240 = vmatprep.subr.bf16.mxu1 %v6651_v39 }
 0x176   :  { %5210 = vmatpush1.bf16.msra.mxu0 %v6655_v47  ;;  %5242 = vmatpush1.bf16.msra.mxu1 %v6657_v48 }
 0x177   :  { %5244 = vmatprep.subr.bf16.mxu0 %v6556_v33  ;;  %5276 = vmatprep.subr.bf16.mxu1 %v6558_v36  ;;  %v1815_v33 = vld [vmem:[#allocation5 + $0x8] sm:$0xff] }
 0x178   :  { %v1819_v36 = vld [vmem:[#allocation5 + $0x28] sm:$0xff] }
 0x179   :  { %4373 = vmatmul.mubr.msk.f32.vlgmr.msra.gmra.mrb[12].mxu0 %vm1372_vm6, %v6238_v1  ;;  %4374 = vmatmul.mubr.msk.f32.vlgmr.msra.gmra.mrb[12].mxu1 %vm1372_vm6, %v6238_v1 }
 0x17a   :  { %5246 = vmatpush1.bf16.msra.mxu0 %v6563_v58  ;;  %5278 = vmatpush1.bf16.msra.mxu1 %v6565_v61  ;;  %v1817_v58 = vld [vmem:[#allocation5 + $0x18] sm:$0xff] }
 0x17b   :  { %5248 = vmatprep.subr.bf16.mxu0 %v6569_v6  ;;  %5280 = vmatprep.subr.bf16.mxu1 %v6571_v7  ;;  %v1821_v61 = vld [vmem:[#allocation5 + $0x38] sm:$0xff]  ;;  %v1814_v6 = vld [vmem:[#allocation5] sm:$0xff] }
 0x17c   :  { %1719 = vmatprep.mubr.f32.mxu0 %v6231_v13  ;;  %1790 = vmatprep.mubr.f32.mxu1 %v6231_v13  ;;  %v1818_v7 = vld [vmem:[#allocation5 + $0x20] sm:$0xff] }
 0x17e   :  { %5250 = vmatpush1.bf16.msra.mxu0 %v6581_v18  ;;  %5282 = vmatpush1.bf16.msra.mxu1 %v6583_v20  ;;  %v1587_v18 = vpop.permute.xlu1 %1586  ;;  %v6772_v20 = vpack.c.bf16 %v1819_v36, %v1815_v33 }
 0x17f   :  { %5252 = vmatprep.subr.bf16.mxu0 %v6587_v23  ;;  %5284 = vmatprep.subr.bf16.mxu1 %v6589_v24  ;;  %v6774_v23 = vpack.c.bf16 %v1821_v61, %v1817_v58  ;;  %v1816_v24 = vld [vmem:[#allocation5 + $0x10] sm:$0xff]  ;;  %vm1588_vm7 = vcmp.eq.s32.totalorder %v1587_v18, %v6447_v63  ;;  %v1854_v58 = vld [vmem:[#allocation5 + $0x140] sm:$0xff] }
 0x180   :  { %v1832_v63 = vld [vmem:[#allocation5 + $0x90] sm:$0xff]  ;;  %v1858_v61 = vld [vmem:[#allocation5 + $0x160] sm:$0xff] }
 0x181   :  { %v1856_v18 = vld [vmem:[#allocation5 + $0x150] sm:$0xff] }
 0x182   :  { %5254 = vmatpush1.bf16.msra.mxu0 %v6595_v34  ;;  %5286 = vmatpush1.bf16.msra.mxu1 %v6597_v35  ;;  %v1820_v34 = vld [vmem:[#allocation5 + $0x30] sm:$0xff]  ;;  %v1823_v35 = vld [vmem:[#allocation5 + $0x48] sm:$0xff] }
 0x183   :  { %5256 = vmatprep.subr.bf16.mxu0 %v6601_v40  ;;  %5288 = vmatprep.subr.bf16.mxu1 %v6603_v41  ;;  %v1827_v40 = vld [vmem:[#allocation5 + $0x68] sm:$0xff]  ;;  %v1825_v41 = vld [vmem:[#allocation5 + $0x58] sm:$0xff] }
 0x184   :  { %v6785_v0 = vpack.c.bf16 %v1827_v40, %v1823_v35  ;;  %v1867_v35 = vld [vmem:[#allocation5 + $0x1a8] sm:$0xff]  ;;  %v1865_v40 = vld [vmem:[#allocation5 + $0x198] sm:$0xff] }
 0x186   :  { %5258 = vmatpush1.bf16.msra.mxu0 %v6607_v52  ;;  %5290 = vmatpush1.bf16.msra.mxu1 %v6609_v53  ;;  %v1829_v52 = vld [vmem:[#allocation5 + $0x78] sm:$0xff]  ;;  %v6779_v53 = vpack.c.bf16 %v1818_v7, %v1814_v6  ;;  %v6843_v7 = vpack.c.bf16 %v1861_v55, %v1857_v54  ;;  %v2044_v54 = vld [vmem:[#allocation7 + $0x28] sm:$0xff] }
 0x187   :  { %5260 = vmatprep.subr.bf16.mxu0 %v6613_v56  ;;  %5292 = vmatprep.subr.bf16.mxu1 %v6615_v59  ;;  %v6781_v56 = vpack.c.bf16 %v1820_v34, %v1816_v24  ;;  %v1822_v59 = vld [vmem:[#allocation5 + $0x40] sm:$0xff]  ;;  %v6787_v2 = vpack.c.bf16 %v1829_v52, %v1825_v41  ;;  %v1860_v24 = vld [vmem:[#allocation5 + $0x170] sm:$0xff]  ;;  %v1863_v34 = vld [vmem:[#allocation5 + $0x188] sm:$0xff]  ;;  %v6847_v52 = vpack.c.bf16 %v1858_v61, %v1854_v58 }
 0x188   :  { %v6797_v25 = vpack.c.bf16 %v1826_v60, %v1822_v59  ;;  %v1869_v41 = vld [vmem:[#allocation5 + $0x1b8] sm:$0xff]  ;;  %v6849_v59 = vpack.c.bf16 %v1860_v24, %v1856_v18  ;;  %v1862_v60 = vld [vmem:[#allocation5 + $0x180] sm:$0xff]  ;;  %v2045_v58 = vld [vmem:[#allocation7 + $0x30] sm:$0xff] }
 0x189   :  { %v2046_v61 = vld [vmem:[#allocation7 + $0x38] sm:$0xff]  ;;  %v2047_v24 = vld [vmem:[#allocation7 + $0x40] sm:$0xff] }
 0x18a   :  { %5262 = vmatpush1.bf16.msra.mxu0 %v6619_v14  ;;  %5294 = vmatpush1.bf16.msra.mxu1 %v6621_v15  ;;  %v1835_v14 = vld [vmem:[#allocation5 + $0xa8] sm:$0xff]  ;;  %v1833_v15 = vld [vmem:[#allocation5 + $0x98] sm:$0xff]  ;;  %v6913_v18 = vpack.c.bf16 %v2046_v61, %v2045_v58 }
 0x18b   :  { %5264 = vmatprep.subr.bf16.mxu0 %v6625_v32  ;;  %5296 = vmatprep.subr.bf16.mxu1 %v6627_v37  ;;  %v6799_v32 = vpack.c.bf16 %v1828_v5, %v1824_v3  ;;  %v1830_v37 = vld [vmem:[#allocation5 + $0x80] sm:$0xff]  ;;  %v6803_v46 = vpack.c.bf16 %v1835_v14, %v1831_v9  ;;  %v6805_v49 = vpack.c.bf16 %v1837_v19, %v1833_v15  ;;  %v1864_v14 = vld [vmem:[#allocation5 + $0x190] sm:$0xff]  ;;  %v1871_v19 = vld [vmem:[#allocation5 + $0x1c8] sm:$0xff] }
 0x18c   :  { %v1866_v3 = vld [vmem:[#allocation5 + $0x1a0] sm:$0xff]  ;;  %v6853_v5 = vpack.c.bf16 %v1867_v35, %v1863_v34  ;;  %v6855_v9 = vpack.c.bf16 %v1869_v41, %v1865_v40  ;;  %v1868_v15 = vld [vmem:[#allocation5 + $0x1b0] sm:$0xff]  ;;  %v2048_v34 = vld [vmem:[#allocation7 + $0x48] sm:$0xff] }
 0x18d   :  { %v6917_v35 = vpack.c.bf16 %v2048_v34, %v2047_v24  ;;  %v2049_v40 = vld [vmem:[#allocation7 + $0x50] sm:$0xff]  ;;  %v2050_v41 = vld [vmem:[#allocation7 + $0x58] sm:$0xff] }
 0x18e   :  { %5266 = vmatpush1.bf16.msra.mxu0 %v6631_v4  ;;  %5298 = vmatpush1.bf16.msra.mxu1 %v6633_v8  ;;  %v1845_v4 = vld [vmem:[#allocation5 + $0xf8] sm:$0xff]  ;;  %v6811_v8 = vpack.c.bf16 %v1834_v45, %v1830_v37  ;;  %v1875_v37 = vld [vmem:[#allocation5 + $0x1e8] sm:$0xff] }
 0x18f   :  { %5268 = vmatprep.subr.bf16.mxu0 %v6637_v12  ;;  %5300 = vmatprep.subr.bf16.mxu1 %v6639_v16  ;;  %v1842_v12 = vld [vmem:[#allocation5 + $0xe0] sm:$0xff]  ;;  %v6817_v16 = vpack.c.bf16 %v1843_v57, %v1839_v50  ;;  %v6819_v17 = vpack.c.bf16 %v1845_v4, %v1841_v62  ;;  %v1873_v45 = vld [vmem:[#allocation5 + $0x1d8] sm:$0xff]  ;;  %v6861_v50 = vpack.c.bf16 %v1868_v15, %v1864_v14  ;;  %v2052_v14 = vld [vmem:[#allocation7 + $0x68] sm:$0xff] }
 0x190   :  { %v1870_v57 = vld [vmem:[#allocation5 + $0x1c0] sm:$0xff]  ;;  %v6865_v62 = vpack.c.bf16 %v1875_v37, %v1871_v19  ;;  %v2053_v19 = vld [vmem:[#allocation7 + $0x70] sm:$0xff]  ;;  %v2054_v37 = vld [vmem:[#allocation7 + $0x78] sm:$0xff] }
 0x192   :  { %5270 = vmatpush1.bf16.msra.mxu0 %v6643_v29  ;;  %5302 = vmatpush1.bf16.msra.mxu1 %v6645_v30  ;;  %v1853_v29 = vld [vmem:[#allocation5 + $0x138] sm:$0xff]  ;;  %v6823_v30 = vpack.c.bf16 %v1842_v12, %v1838_v11  ;;  %v1874_v11 = vld [vmem:[#allocation5 + $0x1e0] sm:$0xff]  ;;  %v1872_v12 = vld [vmem:[#allocation5 + $0x1d0] sm:$0xff] }
 0x193   :  { %5272 = vmatprep.subr.bf16.mxu0 %v6649_v38  ;;  %5304 = vmatprep.subr.bf16.mxu1 %v6651_v39  ;;  %v1846_v38 = vld [vmem:[#allocation5 + $0x100] sm:$0xff]  ;;  %v6831_v43 = vpack.c.bf16 %v1853_v29, %v1849_v28  ;;  %v6871_v22 = vpack.c.bf16 %v1874_v11, %v1870_v57  ;;  %v6873_v26 = vpack.c.bf16 %v1876_v21, %v1872_v12  ;;  %v2040_v29 = vld [vmem:[#allocation7 + $0x8] sm:$0xff] }
 0x194   :  { %v1850_v39 = vld [vmem:[#allocation5 + $0x120] sm:$0xff] }
 0x195   :  { %v6835_v33 = vpack.c.bf16 %v1850_v39, %v1846_v38  ;;  %v2039_v28 = vld [vmem:[#allocation7] sm:$0xff]  ;;  %v6239_v39 = vmov 0.0|0.0  }
 0x196   :  { %5274 = vmatpush1.bf16.msra.mxu0 %v6655_v47  ;;  %5306 = vmatpush1.bf16.msra.mxu1 %v6657_v48  ;;  %v1852_v47 = vld [vmem:[#allocation5 + $0x130] sm:$0xff]  ;;  %v1855_v48 = vld [vmem:[#allocation5 + $0x148] sm:$0xff]  ;;  %v6899_v38 = vpack.c.bf16 %v2040_v29, %v2039_v28 }
 0x197   :  { %5308 = vmatprep.subr.bf16.mxu0 %v6772_v20  ;;  %5340 = vmatprep.subr.bf16.mxu1 %v6774_v23  ;;  %v6837_v36 = vpack.c.bf16 %v1852_v47, %v1848_v44  ;;  %v6841_v6 = vpack.c.bf16 %v1859_v51, %v1855_v48  ;;  %v2041_v44 = vld [vmem:[#allocation7 + $0x10] sm:$0xff]  ;;  %v2042_v47 = vld [vmem:[#allocation7 + $0x18] sm:$0xff]  ;;  %v2043_v51 = vld [vmem:[#allocation7 + $0x20] sm:$0xff] }
 0x198   :  { %v6905_v48 = vpack.c.bf16 %v2042_v47, %v2041_v44  ;;  %v6909_v55 = vpack.c.bf16 %v2044_v54, %v2043_v51  ;;  %v1802_v51 = vld [vmem:[%s7429_s6] sm:$0xff] }
 0x199   :  { %4376 = vmatmul.mubr.msk.f32.vlgmr.msra.gmra.mrb[14].mxu0 %vm1588_vm7, %v6238_v1  ;;  %4377 = vmatmul.mubr.msk.f32.vlgmr.msra.gmra.mrb[14].mxu1 %vm1588_vm7, %v6238_v1  ;;  %v1836_v1 = vld [vmem:[#allocation5 + $0xb0] sm:$0xff] }
 0x19a   :  { %5310 = vmatpush1.bf16.msra.mxu0 %v6779_v53  ;;  %5342 = vmatpush1.bf16.msra.mxu1 %v6781_v56  ;;  %v6813_v10 = vpack.c.bf16 %v1836_v1, %v1832_v63  ;;  %v1877_v63 = vld [vmem:[#allocation5 + $0x1f8] sm:$0xff]  ;;  %v6859_v1 = vpack.c.bf16 %v1866_v3, %v1862_v60  ;;  %v6921_v60 = vpack.c.bf16 %v2050_v41, %v2049_v40  ;;  %v2051_v3 = vld [vmem:[#allocation7 + $0x60] sm:$0xff] }
 0x19b   :  { %5312 = vmatprep.subr.bf16.mxu0 %v6785_v0  ;;  %5344 = vmatprep.subr.bf16.mxu1 %v6787_v2  ;;  %v6867_v4 = vpack.c.bf16 %v1877_v63, %v1873_v45  ;;  %v6925_v15 = vpack.c.bf16 %v2052_v14, %v2051_v3  ;;  %v6929_v45 = vpack.c.bf16 %v2054_v37, %v2053_v19 }
 0x19c   :  { %1942 = vmatprep.mubr.f32.mxu0 %v6231_v13  ;;  %2013 = vmatprep.mubr.f32.mxu1 %v6231_v13 }
 0x19e   :  { %5314 = vmatpush1.bf16.msra.mxu0 %v6797_v25  ;;  %5346 = vmatpush1.bf16.msra.mxu1 %v6799_v32 }
 0x19f   :  { %5316 = vmatprep.subr.bf16.mxu0 %v6803_v46  ;;  %5348 = vmatprep.subr.bf16.mxu1 %v6805_v49 }
 0x1a2   :  { %5318 = vmatpush1.bf16.msra.mxu0 %v6811_v8  ;;  %5350 = vmatpush1.bf16.msra.mxu1 %v6813_v10 }
 0x1a3   :  { %5320 = vmatprep.subr.bf16.mxu0 %v6817_v16  ;;  %5352 = vmatprep.subr.bf16.mxu1 %v6819_v17 }
 0x1a6   :  { %5322 = vmatpush1.bf16.msra.mxu0 %v6823_v30  ;;  %5354 = vmatpush1.bf16.msra.mxu1 %v6825_v31 }
 0x1a7   :  { %5324 = vmatprep.subr.bf16.mxu0 %v6829_v42  ;;  %5356 = vmatprep.subr.bf16.mxu1 %v6831_v43 }
 0x1aa   :  { %5326 = vmatpush1.bf16.msra.mxu0 %v6835_v33  ;;  %5358 = vmatpush1.bf16.msra.mxu1 %v6837_v36 }
 0x1ab   :  { %5328 = vmatprep.subr.bf16.mxu0 %v6841_v6  ;;  %5360 = vmatprep.subr.bf16.mxu1 %v6843_v7 }
 0x1ae   :  { %5330 = vmatpush1.bf16.msra.mxu0 %v6847_v52  ;;  %5362 = vmatpush1.bf16.msra.mxu1 %v6849_v59 }
 0x1af   :  { %5332 = vmatprep.subr.bf16.mxu0 %v6853_v5  ;;  %5364 = vmatprep.subr.bf16.mxu1 %v6855_v9 }
 0x1b2   :  { %5334 = vmatpush1.bf16.msra.mxu0 %v6859_v1  ;;  %5366 = vmatpush1.bf16.msra.mxu1 %v6861_v50 }
 0x1b3   :  { %5336 = vmatprep.subr.bf16.mxu0 %v6865_v62  ;;  %5368 = vmatprep.subr.bf16.mxu1 %v6867_v4 }
 0x1b6   :  { %5338 = vmatpush1.bf16.msra.mxu0 %v6871_v22  ;;  %5370 = vmatpush1.bf16.msra.mxu1 %v6873_v26 }
 0x1b7   :  { %5428 = vmatprep.subr.bf16.mxu1 %v6774_v23  ;;  %5371 = vmatprep.subr.bf16.mxu0 %v6239_v39 }
 0x1b9   :  { %1943 = vmatmul.mubr.f32.vlgmr.msra.gmra.mrb[0].mxu0 %v1801_v27  ;;  %2014 = vmatmul.mubr.f32.vlgmr.msra.gmra.mrb[0].mxu1 %v1801_v27 }
 0x1ba   :  { %5430 = vmatpush1.bf16.msra.mxu1 %v6781_v56  ;;  %2329 = vmatprep.mubr.f32.mxu1 %v6231_v13 }
 0x1bb   :  { %5432 = vmatprep.subr.bf16.mxu1 %v6787_v2  ;;  %5373 = vmatpush3.bf16.msra.mxu0 %v6899_v38 }
 0x1bc   :  { %5374 = vmatprep.subr.bf16.mxu0 %v6239_v39  ;;  %4547 = vmatprep.mubr.msk.f32.mxu0 %vm6240_vm8, %v6231_v13 }
 0x1be   :  { %5434 = vmatpush1.bf16.msra.mxu1 %v6799_v32 }
 0x1bf   :  { %5436 = vmatprep.subr.bf16.mxu1 %v6805_v49  ;;  %5376 = vmatpush3.bf16.msra.mxu0 %v6905_v48 }
 0x1c0   :  { %5377 = vmatprep.subr.bf16.mxu0 %v6239_v39 }
 0x1c2   :  { %5438 = vmatpush1.bf16.msra.mxu1 %v6813_v10 }
 0x1c3   :  { %5440 = vmatprep.subr.bf16.mxu1 %v6819_v17  ;;  %5379 = vmatpush3.bf16.msra.mxu0 %v6909_v55 }
 0x1c4   :  { %5380 = vmatprep.subr.bf16.mxu0 %v6239_v39 }
 0x1c6   :  { %5442 = vmatpush1.bf16.msra.mxu1 %v6825_v31 }
 0x1c7   :  { %5444 = vmatprep.subr.bf16.mxu1 %v6831_v43  ;;  %5382 = vmatpush3.bf16.msra.mxu0 %v6913_v18 }
 0x1c8   :  { %5383 = vmatprep.subr.bf16.mxu0 %v6239_v39 }
 0x1ca   :  { %5446 = vmatpush1.bf16.msra.mxu1 %v6837_v36 }
 0x1cb   :  { %5448 = vmatprep.subr.bf16.mxu1 %v6843_v7  ;;  %5385 = vmatpush3.bf16.msra.mxu0 %v6917_v35 }
 0x1cc   :  { %5386 = vmatprep.subr.bf16.mxu0 %v6239_v39 }
 0x1ce   :  { %5450 = vmatpush1.bf16.msra.mxu1 %v6849_v59 }
 0x1cf   :  { %5452 = vmatprep.subr.bf16.mxu1 %v6855_v9  ;;  %5388 = vmatpush3.bf16.msra.mxu0 %v6921_v60 }
 0x1d0   :  { %5389 = vmatprep.subr.bf16.mxu0 %v6239_v39 }
 0x1d2   :  { %5454 = vmatpush1.bf16.msra.mxu1 %v6861_v50 }
 0x1d3   :  { %5456 = vmatprep.subr.bf16.mxu1 %v6867_v4  ;;  %5391 = vmatpush3.bf16.msra.mxu0 %v6925_v15 }
 0x1d4   :  { %5392 = vmatprep.subr.bf16.mxu0 %v6239_v39 }
 0x1d6   :  { %5458 = vmatpush1.bf16.msra.mxu1 %v6873_v26 }
 0x1d7   :  { %5459 = vmatprep.subr.bf16.mxu1 %v6239_v39  ;;  %5394 = vmatpush3.bf16.msra.mxu0 %v6929_v45 }
 0x1d8   :  { %5396 = vmatprep.subr.bf16.mxu0 %v6772_v20 }
 0x28c   :  { %v1944_v63 = vpop.f32.mrb[0].mxu0  ;;  %v2015_v57 = vpop.f32.mrb[0].mxu1 }
 0x28d   :  { %6071 = vtanh.f32 %v1944_v63  ;;  %v1946_v11 = vpop.f32.mrb[1].mxu0  ;;  %v2017_v12 = vpop.f32.mrb[1].mxu1 }
 0x28e   :  { %6073 = vtanh.f32 %v1946_v11 }
 0x28f   :  { %6075 = vtanh.f32 %v2015_v57 }
 0x290   :  { %6077 = vtanh.f32 %v2017_v12 }
 0x297   :  { %v6072_v21 = vpop.eup %6071 }
 0x298   :  { %v2028_v27 = vmul.f32 0.5, %v6072_v21  ;;  %v6074_v28 = vpop.eup %6073 }
 0x299   :  { %v2030_v44 = vmul.f32 0.5, %v6074_v28  ;;  %v6076_v47 = vpop.eup %6075  ;;  %v2801_v28 = vld [vmem:[#allocation5 + $0x138] sm:$0xff] }
 0x29a   :  { %v2029_v29 = vadd.f32 0.5, %v2028_v27  ;;  %v6078_v34 = vpop.eup %6077  ;;  %v2797_v27 = vld [vmem:[#allocation5 + $0x118] sm:$0xff] }
 0x29b   :  { %v2031_v54 = vadd.f32 0.5, %v2030_v44  ;;  %v2032_v40 = vmul.f32 0.5, %v6078_v34  ;;  %v2796_v44 = vld [vmem:[#allocation5 + $0x110] sm:$0xff] }
 0x29c   :  { %v2035_v58 = vmul.f32 %v6076_v47, %v2029_v29  ;;  %v7064_v29 = vpack.c.bf16 %v2801_v28, %v2797_v27  ;;  %v2800_v47 = vld [vmem:[#allocation5 + $0x130] sm:$0xff] }
 0x29d   :  { %v2034_v61 = vmul.f32 %v2031_v54, %v1802_v51  ;;  %v2033_v41 = vadd.f32 0.5, %v2032_v40  ;;  %v7066_v51 = vpack.c.bf16 %v2800_v47, %v2796_v44  ;;  %v2805_v54 = vld [vmem:[#allocation5 + $0x158] sm:$0xff]  ;;  %v2808_v34 = vld [vmem:[#allocation5 + $0x170] sm:$0xff]  ;;  %v2770_v47 = vld [vmem:[#allocation5 + $0x40] sm:$0xff] }
 0x29f   :  { %v6938_v24 = vadd.f32 %v2035_v58, %v2034_v61  ;;  %v2809_v58 = vld [vmem:[#allocation5 + $0x178] sm:$0xff] }
 0x2a0   :  { %v7070_v61 = vpack.c.bf16 %v2809_v58, %v2805_v54  ;;  %v2779_v54 = vld [vmem:[#allocation5 + $0x88] sm:$0xff] }
 0x2a1   :  { %6079 = vtanh.f32 %v6938_v24  ;;  %v2783_v58 = vld [vmem:[#allocation5 + $0xa8] sm:$0xff] }
 0x2ab   :  { %v6080_v3 = vpop.eup %6079 }
 0x2ac   :  { %v2038_v14 = vmul.f32 %v6080_v3, %v2033_v41  ;;  %v2813_v41 = vld [vmem:[#allocation5 + $0x198] sm:$0xff] }
 0x2ad   :  { %v2817_v3 = vld [vmem:[#allocation5 + $0x1b8] sm:$0xff] }
 0x2ae   :  { %4548 = vmatmul.mubr.f32.vlgmr.msra.gmra.mrb[16].mxu0 %v2038_v14  ;;  %2330 = vmatmul.mubr.f32.vlgmr.msra.gmra.mrb[2].mxu1 %v2038_v14 }
 0x2af   :  { %5398 = vmatpush1.bf16.msra.mxu0 %v6779_v53  ;;  %2258 = vmatprep.mubr.f32.mxu0 %v6231_v13 }
 0x2b0   :  { %5400 = vmatprep.subr.bf16.mxu0 %v6785_v0  ;;  %5461 = vmatpush3.bf16.msra.mxu1 %v6899_v38 }
 0x2b1   :  { %5462 = vmatprep.subr.bf16.mxu1 %v6239_v39  ;;  %4582 = vmatprep.mubr.msk.f32.mxu1 %vm6240_vm8, %v6231_v13 }
 0x2b3   :  { %5402 = vmatpush1.bf16.msra.mxu0 %v6797_v25 }
 0x2b4   :  { %5404 = vmatprep.subr.bf16.mxu0 %v6803_v46  ;;  %5464 = vmatpush3.bf16.msra.mxu1 %v6905_v48 }
 0x2b5   :  { %5465 = vmatprep.subr.bf16.mxu1 %v6239_v39 }
 0x2b7   :  { %5406 = vmatpush1.bf16.msra.mxu0 %v6811_v8 }
 0x2b8   :  { %5408 = vmatprep.subr.bf16.mxu0 %v6817_v16  ;;  %5467 = vmatpush3.bf16.msra.mxu1 %v6909_v55 }
 0x2b9   :  { %5468 = vmatprep.subr.bf16.mxu1 %v6239_v39 }
 0x2bb   :  { %5410 = vmatpush1.bf16.msra.mxu0 %v6823_v30 }
 0x2bc   :  { %5412 = vmatprep.subr.bf16.mxu0 %v6829_v42  ;;  %5470 = vmatpush3.bf16.msra.mxu1 %v6913_v18 }
 0x2bd   :  { %5471 = vmatprep.subr.bf16.mxu1 %v6239_v39 }
 0x2bf   :  { %5414 = vmatpush1.bf16.msra.mxu0 %v6835_v33 }
 0x2c0   :  { %5416 = vmatprep.subr.bf16.mxu0 %v6841_v6  ;;  %5473 = vmatpush3.bf16.msra.mxu1 %v6917_v35 }
 0x2c1   :  { %5474 = vmatprep.subr.bf16.mxu1 %v6239_v39 }
 0x2c3   :  { %5418 = vmatpush1.bf16.msra.mxu0 %v6847_v52 }
 0x2c4   :  { %5420 = vmatprep.subr.bf16.mxu0 %v6853_v5  ;;  %5476 = vmatpush3.bf16.msra.mxu1 %v6921_v60 }
 0x2c5   :  { %5477 = vmatprep.subr.bf16.mxu1 %v6239_v39 }
 0x2c7   :  { %5422 = vmatpush1.bf16.msra.mxu0 %v6859_v1 }
 0x2c8   :  { %5424 = vmatprep.subr.bf16.mxu0 %v6865_v62  ;;  %5479 = vmatpush3.bf16.msra.mxu1 %v6925_v15 }
 0x2c9   :  { %5480 = vmatprep.subr.bf16.mxu1 %v6239_v39 }
 0x2cb   :  { %5426 = vmatpush1.bf16.msra.mxu0 %v6871_v22 }
 0x2cc   :  { %5484 = vmatprep.subr.bf16.mxu0 %v6772_v20  ;;  %5482 = vmatpush3.bf16.msra.mxu1 %v6929_v45  ;;  %v6996_v20 = vld [vmem:[%s7427_s4] ss:$0 sm:$0xff] }
 0x2cd   :  { %5516 = vmatprep.subr.bf16.mxu1 %v6774_v23 }
 0x2ce   :  { %2259 = vmatmul.mubr.f32.vlgmr.msra.gmra.mrb[2].mxu0 %v2038_v14  ;;  %v7076_v14 = vpack.c.bf16 %v2817_v3, %v2813_v41  ;;  %v2778_v41 = vld [vmem:[#allocation5 + $0x80] sm:$0xff] }
 0x2cf   :  { %5486 = vmatpush1.bf16.msra.mxu0 %v6779_v53  ;;  %2574 = vmatprep.mubr.f32.mxu0 %v6231_v13  ;;  %v2782_v3 = vld [vmem:[#allocation5 + $0xa0] sm:$0xff] }
 0x2d0   :  { %5488 = vmatprep.subr.bf16.mxu0 %v6785_v0 }
 0x2d3   :  { %5490 = vmatpush1.bf16.msra.mxu0 %v6797_v25 }
 0x2d4   :  { %5492 = vmatprep.subr.bf16.mxu0 %v6803_v46 }
 0x2d7   :  { %5494 = vmatpush1.bf16.msra.mxu0 %v6811_v8 }
 0x2d8   :  { %5496 = vmatprep.subr.bf16.mxu0 %v6817_v16 }
 0x2db   :  { %5498 = vmatpush1.bf16.msra.mxu0 %v6823_v30 }
 0x2dc   :  { %5500 = vmatprep.subr.bf16.mxu0 %v6829_v42 }
 0x2df   :  { %5502 = vmatpush1.bf16.msra.mxu0 %v6835_v33 }
 0x2e0   :  { %5504 = vmatprep.subr.bf16.mxu0 %v6841_v6 }
 0x2e3   :  { %5506 = vmatpush1.bf16.msra.mxu0 %v6847_v52 }
 0x2e4   :  { %5508 = vmatprep.subr.bf16.mxu0 %v6853_v5 }
 0x2e7   :  { %5510 = vmatpush1.bf16.msra.mxu0 %v6859_v1 }
 0x2e8   :  { %5512 = vmatprep.subr.bf16.mxu0 %v6865_v62 }
 0x2eb   :  { %5514 = vmatpush1.bf16.msra.mxu0 %v6871_v22 }
 0x2ec   :  { %5547 = vmatprep.subr.bf16.mxu0 %v6239_v39 }
 0x381   :  { %v2121_v23 = vpop.f32.mrb[16].mxu0  ;;  %v2331_v53 = vpop.f32.mrb[2].mxu1 }
 0x382   :  { %v2122_v0 = vadd.f32 %v6996_v20, %v2121_v23  ;;  %v4549_v25 = vpop.f32.mrb[17].mxu0  ;;  %v2333_v46 = vpop.f32.mrb[3].mxu1  ;;  %v2812_v23 = vld [vmem:[#allocation5 + $0x190] sm:$0xff] }
 0x383   :  { %v2821_v25 = vld [vmem:[#allocation5 + $0x1d8] sm:$0xff] }
 0x384   :  { %2125 = vst [vmem:[%s7430_s7] sm:$0xff] %v2122_v0 }
 0x3a1   :  { %v2260_v8 = vpop.f32.mrb[2].mxu0 }
 0x3a2   :  { %6081 = vtanh.f32 %v2260_v8  ;;  %v2262_v16 = vpop.f32.mrb[3].mxu0 }
 0x3a3   :  { %6083 = vtanh.f32 %v2262_v16  ;;  %v2820_v16 = vld [vmem:[#allocation5 + $0x1d0] sm:$0xff] }
 0x3a4   :  { %6085 = vtanh.f32 %v2331_v53  ;;  %v2816_v53 = vld [vmem:[#allocation5 + $0x1b0] sm:$0xff] }
 0x3a5   :  { %6087 = vtanh.f32 %v2333_v46  ;;  %v7078_v0 = vpack.c.bf16 %v2816_v53, %v2812_v23  ;;  %v2825_v46 = vld [vmem:[#allocation5 + $0x1f8] sm:$0xff]  ;;  %v2787_v23 = vld [vmem:[#allocation5 + $0xc8] sm:$0xff] }
 0x3a6   :  { %v7082_v8 = vpack.c.bf16 %v2825_v46, %v2821_v25  ;;  %v2791_v53 = vld [vmem:[#allocation5 + $0xe8] sm:$0xff]  ;;  %v7114_v25 = vpack.c.bf16 %v2782_v3, %v2778_v41  ;;  %v2991_v41 = vld [vmem:[#allocation7 + $0x20] sm:$0xff] }
 0x3a7   :  { %v7117_v46 = vpack.c.bf16 %v2791_v53, %v2787_v23  ;;  %v2992_v3 = vld [vmem:[#allocation7 + $0x28] sm:$0xff]  ;;  %v2993_v53 = vld [vmem:[#allocation7 + $0x30] sm:$0xff] }
 0x3a8   :  { %v7174_v23 = vpack.c.bf16 %v2992_v3, %v2991_v41 }
 0x3ac   :  { %v6082_v30 = vpop.eup %6081 }
 0x3ad   :  { %v6084_v42 = vpop.eup %6083  ;;  %v2344_v33 = vmul.f32 0.5, %v6082_v30  ;;  %v2824_v30 = vld [vmem:[#allocation5 + $0x1f0] sm:$0xff] }
 0x3ae   :  { %v2346_v6 = vmul.f32 0.5, %v6084_v42  ;;  %v6086_v5 = vpop.eup %6085  ;;  %v7084_v42 = vpack.c.bf16 %v2824_v30, %v2820_v16  ;;  %v2786_v16 = vld [vmem:[#allocation5 + $0xc0] sm:$0xff] }
 0x3af   :  { %v2345_v52 = vadd.f32 0.5, %v2344_v33  ;;  %v6088_v37 = vpop.eup %6087  ;;  %v2763_v33 = vld [vmem:[#allocation5 + $0x8] sm:$0xff]  ;;  %v2790_v30 = vld [vmem:[#allocation5 + $0xe0] sm:$0xff] }
 0x3b0   :  { %v2347_v1 = vadd.f32 0.5, %v2346_v6  ;;  %v2348_v63 = vmul.f32 0.5, %v6088_v37  ;;  %v2767_v6 = vld [vmem:[#allocation5 + $0x28] sm:$0xff] }
 0x3b1   :  { %v2351_v62 = vmul.f32 %v6086_v5, %v2345_v52  ;;  %v7088_v52 = vpack.c.bf16 %v2767_v6, %v2763_v33  ;;  %v2795_v33 = vld [vmem:[#allocation5 + $0x108] sm:$0xff] }
 0x3b2   :  { %v2350_v22 = vmul.f32 %v2347_v1, %v6938_v24  ;;  %v2349_v57 = vadd.f32 0.5, %v2348_v63  ;;  %v2804_v24 = vld [vmem:[#allocation5 + $0x150] sm:$0xff]  ;;  %v2799_v6 = vld [vmem:[#allocation5 + $0x128] sm:$0xff] }
 0x3b3   :  { %v7072_v40 = vpack.c.bf16 %v2808_v34, %v2804_v24  ;;  %v7109_v34 = vpack.c.bf16 %v2783_v58, %v2779_v54  ;;  %v2990_v54 = vld [vmem:[#allocation7 + $0x18] sm:$0xff] }
 0x3b4   :  { %v7003_v19 = vadd.f32 %v2351_v62, %v2350_v22 }
 0x3b6   :  { %6089 = vtanh.f32 %v7003_v19 }
 0x3c0   :  { %v6090_v11 = vpop.eup %6089 }
 0x3c1   :  { %v2354_v12 = vmul.f32 %v6090_v11, %v2349_v57 }
 0x3c3   :  { %4583 = vmatmul.mubr.f32.vlgmr.msra.gmra.mrb[16].mxu1 %v2354_v12  ;;  %2575 = vmatmul.mubr.f32.vlgmr.msra.gmra.mrb[4].mxu0 %v2354_v12 }
 0x3c4   :  { %5518 = vmatpush1.bf16.msra.mxu1 %v6781_v56  ;;  %2645 = vmatprep.mubr.f32.mxu1 %v6231_v13  ;;  %v2765_v56 = vld [vmem:[#allocation5 + $0x18] sm:$0xff] }
 0x3c5   :  { %5520 = vmatprep.subr.bf16.mxu1 %v6787_v2  ;;  %5549 = vmatpush3.bf16.msra.mxu0 %v6899_v38  ;;  %v2769_v2 = vld [vmem:[#allocation5 + $0x38] sm:$0xff]  ;;  %v2780_v38 = vld [vmem:[#allocation5 + $0x90] sm:$0xff] }
 0x3c6   :  { %5550 = vmatprep.subr.bf16.mxu0 %v6239_v39  ;;  %4617 = vmatprep.mubr.msk.f32.mxu0 %vm6240_vm8, %v6231_v13 }
 0x3c8   :  { %5522 = vmatpush1.bf16.msra.mxu1 %v6799_v32  ;;  %v2764_v32 = vld [vmem:[#allocation5 + $0x10] sm:$0xff] }
 0x3c9   :  { %5524 = vmatprep.subr.bf16.mxu1 %v6805_v49  ;;  %5552 = vmatpush3.bf16.msra.mxu0 %v6905_v48  ;;  %v7040_v49 = vpack.c.bf16 %v2769_v2, %v2765_v56  ;;  %v2784_v48 = vld [vmem:[#allocation5 + $0xb0] sm:$0xff] }
 0x3ca   :  { %5553 = vmatprep.subr.bf16.mxu0 %v6239_v39 }
 0x3cc   :  { %5526 = vmatpush1.bf16.msra.mxu1 %v6813_v10  ;;  %v2768_v10 = vld [vmem:[#allocation5 + $0x30] sm:$0xff] }
 0x3cd   :  { %5528 = vmatprep.subr.bf16.mxu1 %v6819_v17  ;;  %5555 = vmatpush3.bf16.msra.mxu0 %v6909_v55  ;;  %v7042_v17 = vpack.c.bf16 %v2768_v10, %v2764_v32  ;;  %v7054_v55 = vpack.c.bf16 %v2784_v48, %v2780_v38  ;;  %v2762_v38 = vld [vmem:[#allocation5] sm:$0xff] }
 0x3ce   :  { %5556 = vmatprep.subr.bf16.mxu0 %v6239_v39  ;;  %v2766_v48 = vld [vmem:[#allocation5 + $0x20] sm:$0xff] }
 0x3cf   :  { %v7100_v27 = vpack.c.bf16 %v2766_v48, %v2762_v38 }
 0x3d0   :  { %5530 = vmatpush1.bf16.msra.mxu1 %v6825_v31  ;;  %v2773_v31 = vld [vmem:[#allocation5 + $0x58] sm:$0xff] }
 0x3d1   :  { %5532 = vmatprep.subr.bf16.mxu1 %v6831_v43  ;;  %5558 = vmatpush3.bf16.msra.mxu0 %v6913_v18  ;;  %v2777_v43 = vld [vmem:[#allocation5 + $0x78] sm:$0xff] }
 0x3d2   :  { %5559 = vmatprep.subr.bf16.mxu0 %v6239_v39  ;;  %v2789_v18 = vld [vmem:[#allocation5 + $0xd8] sm:$0xff] }
 0x3d4   :  { %5534 = vmatpush1.bf16.msra.mxu1 %v6837_v36  ;;  %v7046_v36 = vpack.c.bf16 %v2777_v43, %v2773_v31 }
 0x3d5   :  { %5536 = vmatprep.subr.bf16.mxu1 %v6843_v7  ;;  %5561 = vmatpush3.bf16.msra.mxu0 %v6917_v35  ;;  %v2772_v7 = vld [vmem:[#allocation5 + $0x50] sm:$0xff]  ;;  %v2793_v35 = vld [vmem:[#allocation5 + $0xf8] sm:$0xff] }
 0x3d6   :  { %5562 = vmatprep.subr.bf16.mxu0 %v6239_v39 }
 0x3d8   :  { %5538 = vmatpush1.bf16.msra.mxu1 %v6849_v59  ;;  %v2776_v59 = vld [vmem:[#allocation5 + $0x70] sm:$0xff] }
 0x3d9   :  { %5540 = vmatprep.subr.bf16.mxu1 %v6855_v9  ;;  %5564 = vmatpush3.bf16.msra.mxu0 %v6921_v60  ;;  %v7048_v9 = vpack.c.bf16 %v2776_v59, %v2772_v7  ;;  %v7058_v60 = vpack.c.bf16 %v2793_v35, %v2789_v18  ;;  %v2771_v18 = vld [vmem:[#allocation5 + $0x48] sm:$0xff] }
 0x3da   :  { %5565 = vmatprep.subr.bf16.mxu0 %v6239_v39  ;;  %v2775_v35 = vld [vmem:[#allocation5 + $0x68] sm:$0xff] }
 0x3db   :  { %v7102_v44 = vpack.c.bf16 %v2775_v35, %v2771_v18  ;;  %v2818_v18 = vld [vmem:[#allocation5 + $0x1c0] sm:$0xff] }
 0x3dc   :  { %5542 = vmatpush1.bf16.msra.mxu1 %v6861_v50  ;;  %v2781_v50 = vld [vmem:[#allocation5 + $0x98] sm:$0xff]  ;;  %v2822_v35 = vld [vmem:[#allocation5 + $0x1e0] sm:$0xff] }
 0x3dd   :  { %5544 = vmatprep.subr.bf16.mxu1 %v6867_v4  ;;  %5567 = vmatpush3.bf16.msra.mxu0 %v6925_v15  ;;  %v2785_v4 = vld [vmem:[#allocation5 + $0xb8] sm:$0xff]  ;;  %v2788_v15 = vld [vmem:[#allocation5 + $0xd0] sm:$0xff] }
 0x3de   :  { %5568 = vmatprep.subr.bf16.mxu0 %v6239_v39 }
 0x3e0   :  { %5546 = vmatpush1.bf16.msra.mxu1 %v6873_v26  ;;  %v7052_v26 = vpack.c.bf16 %v2785_v4, %v2781_v50 }
 0x3e1   :  { %5570 = vmatpush3.bf16.msra.mxu0 %v6929_v45  ;;  %5604 = vmatprep.subr.bf16.mxu1 %v7040_v49  ;;  %v2792_v45 = vld [vmem:[#allocation5 + $0xf0] sm:$0xff] }
 0x3e2   :  { %v7060_v21 = vpack.c.bf16 %v2792_v45, %v2788_v15  ;;  %5572 = vmatprep.subr.bf16.mxu0 %v7088_v52 }
 0x3e3   :  { %2646 = vmatmul.mubr.f32.vlgmr.msra.gmra.mrb[4].mxu1 %v2354_v12 }
 0x3e4   :  { %2961 = vmatprep.mubr.f32.mxu1 %v6231_v13  ;;  %5606 = vmatpush1.bf16.msra.mxu1 %v7042_v17 }
 0x3e5   :  { %5608 = vmatprep.subr.bf16.mxu1 %v7046_v36 }
 0x3e8   :  { %5610 = vmatpush1.bf16.msra.mxu1 %v7048_v9 }
 0x3e9   :  { %5612 = vmatprep.subr.bf16.mxu1 %v7052_v26 }
 0x3ec   :  { %5614 = vmatpush1.bf16.msra.mxu1 %v7054_v55 }
 0x3ed   :  { %5616 = vmatprep.subr.bf16.mxu1 %v7058_v60 }
 0x3f0   :  { %5618 = vmatpush1.bf16.msra.mxu1 %v7060_v21 }
 0x3f1   :  { %5620 = vmatprep.subr.bf16.mxu1 %v7064_v29 }
 0x3f4   :  { %5622 = vmatpush1.bf16.msra.mxu1 %v7066_v51 }
 0x3f5   :  { %5624 = vmatprep.subr.bf16.mxu1 %v7070_v61 }
 0x3f8   :  { %5626 = vmatpush1.bf16.msra.mxu1 %v7072_v40 }
 0x3f9   :  { %5628 = vmatprep.subr.bf16.mxu1 %v7076_v14 }
 0x3fc   :  { %5630 = vmatpush1.bf16.msra.mxu1 %v7078_v0 }
 0x3fd   :  { %5632 = vmatprep.subr.bf16.mxu1 %v7082_v8 }
 0x400   :  { %5634 = vmatpush1.bf16.msra.mxu1 %v7084_v42 }
 0x401   :  { %5635 = vmatprep.subr.bf16.mxu1 %v6239_v39 }
 0x496   :  { %v2437_v5 = vpop.f32.mrb[16].mxu1  ;;  %v2576_v1 = vpop.f32.mrb[4].mxu0 }
 0x497   :  { %v2438_v62 = vadd.f32 %v6996_v20, %v2437_v5  ;;  %v4584_v22 = vpop.f32.mrb[17].mxu1  ;;  %v2578_v37 = vpop.f32.mrb[5].mxu0  ;;  %v7120_v5 = vpack.c.bf16 %v2790_v30, %v2786_v16  ;;  %v2994_v16 = vld [vmem:[#allocation7 + $0x38] sm:$0xff] }
 0x498   :  { %6091 = vtanh.f32 %v2578_v37  ;;  %v2798_v22 = vld [vmem:[#allocation5 + $0x120] sm:$0xff]  ;;  %v2803_v37 = vld [vmem:[#allocation5 + $0x148] sm:$0xff]  ;;  %v7178_v30 = vpack.c.bf16 %v2994_v16, %v2993_v53 }
 0x499   :  { %2441 = vst [vmem:[%s7430_s7 + $0x8] sm:$0xff] %v2438_v62  ;;  %6093 = vtanh.f32 %v2576_v1  ;;  %v7123_v1 = vpack.c.bf16 %v2799_v6, %v2795_v33  ;;  %v2794_v62 = vld [vmem:[#allocation5 + $0x100] sm:$0xff]  ;;  %v2996_v6 = vld [vmem:[#allocation7 + $0x48] sm:$0xff] }
 0x49a   :  { %v2995_v33 = vld [vmem:[#allocation7 + $0x40] sm:$0xff] }
 0x4a2   :  { %v6092_v57 = vpop.eup %6091 }
 0x4a3   :  { %v6094_v12 = vpop.eup %6093  ;;  %v2662_v56 = vmul.f32 0.5, %v6092_v57  ;;  %v7126_v57 = vpack.c.bf16 %v2798_v22, %v2794_v62  ;;  %v7182_v62 = vpack.c.bf16 %v2996_v6, %v2995_v33  ;;  %v2997_v22 = vld [vmem:[#allocation7 + $0x50] sm:$0xff] }
 0x4a4   :  { %v2660_v2 = vmul.f32 0.5, %v6094_v12  ;;  %v2802_v12 = vld [vmem:[#allocation5 + $0x140] sm:$0xff] }
 0x4a5   :  { %v2663_v32 = vadd.f32 0.5, %v2662_v56  ;;  %v2806_v56 = vld [vmem:[#allocation5 + $0x160] sm:$0xff] }
 0x4a6   :  { %v2661_v10 = vadd.f32 0.5, %v2660_v2  ;;  %v2811_v2 = vld [vmem:[#allocation5 + $0x188] sm:$0xff] }
 0x4a7   :  { %v2666_v43 = vmul.f32 %v2663_v32, %v7003_v19  ;;  %v2774_v19 = vld [vmem:[#allocation5 + $0x60] sm:$0xff]  ;;  %v2815_v32 = vld [vmem:[#allocation5 + $0x1a8] sm:$0xff] }
 0x4a8   :  { %v7105_v24 = vpack.c.bf16 %v2774_v19, %v2770_v47  ;;  %v2989_v19 = vld [vmem:[#allocation7 + $0x10] sm:$0xff] }
 0x4a9   :  { %v7170_v58 = vpack.c.bf16 %v2990_v54, %v2989_v19 }
 0x4b6   :  { %v2647_v63 = vpop.f32.mrb[4].mxu1 }
 0x4b7   :  { %6095 = vtanh.f32 %v2647_v63  ;;  %v2649_v11 = vpop.f32.mrb[5].mxu1  ;;  %v2807_v63 = vld [vmem:[#allocation5 + $0x168] sm:$0xff] }
 0x4b8   :  { %6097 = vtanh.f32 %v2649_v11  ;;  %v7129_v11 = vpack.c.bf16 %v2807_v63, %v2803_v37  ;;  %v2998_v37 = vld [vmem:[#allocation7 + $0x58] sm:$0xff] }
 0x4b9   :  { %v7186_v63 = vpack.c.bf16 %v2998_v37, %v2997_v22 }
 0x4c1   :  { %v6096_v31 = vpop.eup %6095 }
 0x4c2   :  { %v2667_v7 = vmul.f32 %v6096_v31, %v2661_v10  ;;  %v6098_v50 = vpop.eup %6097  ;;  %v7132_v10 = vpack.c.bf16 %v2806_v56, %v2802_v12  ;;  %v7135_v31 = vpack.c.bf16 %v2815_v32, %v2811_v2  ;;  %v2999_v12 = vld [vmem:[#allocation7 + $0x60] sm:$0xff]  ;;  %v3000_v56 = vld [vmem:[#allocation7 + $0x68] sm:$0xff]  ;;  %v3001_v32 = vld [vmem:[#allocation7 + $0x70] sm:$0xff] }
 0x4c3   :  { %v2664_v4 = vmul.f32 0.5, %v6098_v50  ;;  %v2819_v50 = vld [vmem:[#allocation5 + $0x1c8] sm:$0xff]  ;;  %v7189_v2 = vpack.c.bf16 %v3000_v56, %v2999_v12 }
 0x4c4   :  { %v7097_v59 = vadd.f32 %v2667_v7, %v2666_v43  ;;  %v2810_v43 = vld [vmem:[#allocation5 + $0x180] sm:$0xff] }
 0x4c5   :  { %v2665_v15 = vadd.f32 0.5, %v2664_v4  ;;  %v2814_v7 = vld [vmem:[#allocation5 + $0x1a0] sm:$0xff]  ;;  %v2823_v4 = vld [vmem:[#allocation5 + $0x1e8] sm:$0xff] }
 0x4c6   :  { %6099 = vtanh.f32 %v7097_v59  ;;  %v7138_v38 = vpack.c.bf16 %v2814_v7, %v2810_v43  ;;  %v7141_v48 = vpack.c.bf16 %v2823_v4, %v2819_v50  ;;  %v3002_v43 = vld [vmem:[#allocation7 + $0x78] sm:$0xff] }
 0x4c7   :  { %v7193_v7 = vpack.c.bf16 %v3002_v43, %v3001_v32 }
 0x4d0   :  { %v6100_v45 = vpop.eup %6099 }
 0x4d1   :  { %v2670_v28 = vmul.f32 %v6100_v45, %v2665_v15  ;;  %v7144_v15 = vpack.c.bf16 %v2822_v35, %v2818_v18  ;;  %v2987_v45 = vld [vmem:[#allocation7] sm:$0xff] }
 0x4d3   :  { %4618 = vmatmul.mubr.f32.vlgmr.msra.gmra.mrb[18].mxu0 %v2670_v28  ;;  %2962 = vmatmul.mubr.f32.vlgmr.msra.gmra.mrb[6].mxu1 %v2670_v28 }
 0x4d4   :  { %5574 = vmatpush1.bf16.msra.mxu0 %v7100_v27  ;;  %2890 = vmatprep.mubr.f32.mxu0 %v6231_v13 }
 0x4d5   :  { %5576 = vmatprep.subr.bf16.mxu0 %v7102_v44  ;;  %4652 = vmatprep.mubr.msk.f32.mxu1 %vm6240_vm8, %v6231_v13 }
 0x4d8   :  { %5578 = vmatpush1.bf16.msra.mxu0 %v7105_v24 }
 0x4d9   :  { %5580 = vmatprep.subr.bf16.mxu0 %v7109_v34 }
 0x4dc   :  { %5582 = vmatpush1.bf16.msra.mxu0 %v7114_v25 }
 0x4dd   :  { %5584 = vmatprep.subr.bf16.mxu0 %v7117_v46 }
 0x4e0   :  { %5586 = vmatpush1.bf16.msra.mxu0 %v7120_v5 }
 0x4e1   :  { %5588 = vmatprep.subr.bf16.mxu0 %v7123_v1 }
 0x4e4   :  { %5590 = vmatpush1.bf16.msra.mxu0 %v7126_v57 }
 0x4e5   :  { %5592 = vmatprep.subr.bf16.mxu0 %v7129_v11 }
 0x4e8   :  { %5594 = vmatpush1.bf16.msra.mxu0 %v7132_v10 }
 0x4e9   :  { %5596 = vmatprep.subr.bf16.mxu0 %v7135_v31 }
 0x4ec   :  { %5598 = vmatpush1.bf16.msra.mxu0 %v7138_v38 }
 0x4ed   :  { %5600 = vmatprep.subr.bf16.mxu0 %v7141_v48 }
 0x4f0   :  { %5602 = vmatpush1.bf16.msra.mxu0 %v7144_v15 }
 0x4f1   :  { %5660 = vmatprep.subr.bf16.mxu0 %v7088_v52 }
 0x4f3   :  { %2891 = vmatmul.mubr.f32.vlgmr.msra.gmra.mrb[6].mxu0 %v2670_v28  ;;  %v2988_v28 = vld [vmem:[#allocation7 + $0x8] sm:$0xff] }
 0x4f4   :  { %5662 = vmatpush1.bf16.msra.mxu0 %v7100_v27  ;;  %3206 = vmatprep.mubr.f32.mxu0 %v6231_v13  ;;  %v7166_v47 = vpack.c.bf16 %v2988_v28, %v2987_v45 }
 0x4f5   :  { %5664 = vmatprep.subr.bf16.mxu0 %v7102_v44 }
 0x4f6   :  { %5637 = vmatpush3.bf16.msra.mxu1 %v7166_v47 }
 0x4f7   :  { %5638 = vmatprep.subr.bf16.mxu1 %v6239_v39 }
 0x4f8   :  { %5666 = vmatpush1.bf16.msra.mxu0 %v7105_v24 }
 0x4f9   :  { %5668 = vmatprep.subr.bf16.mxu0 %v7109_v34 }
 0x4fa   :  { %5640 = vmatpush3.bf16.msra.mxu1 %v7170_v58 }
 0x4fb   :  { %5641 = vmatprep.subr.bf16.mxu1 %v6239_v39 }
 0x4fc   :  { %5670 = vmatpush1.bf16.msra.mxu0 %v7114_v25 }
 0x4fd   :  { %5672 = vmatprep.subr.bf16.mxu0 %v7117_v46 }
 0x4fe   :  { %5643 = vmatpush3.bf16.msra.mxu1 %v7174_v23 }
 0x4ff   :  { %5644 = vmatprep.subr.bf16.mxu1 %v6239_v39 }
 0x500   :  { %5674 = vmatpush1.bf16.msra.mxu0 %v7120_v5 }
 0x501   :  { %5676 = vmatprep.subr.bf16.mxu0 %v7123_v1 }
 0x502   :  { %5646 = vmatpush3.bf16.msra.mxu1 %v7178_v30 }
 0x503   :  { %5647 = vmatprep.subr.bf16.mxu1 %v6239_v39 }
 0x504   :  { %5678 = vmatpush1.bf16.msra.mxu0 %v7126_v57 }
 0x505   :  { %5680 = vmatprep.subr.bf16.mxu0 %v7129_v11 }
 0x506   :  { %5649 = vmatpush3.bf16.msra.mxu1 %v7182_v62 }
 0x507   :  { %5650 = vmatprep.subr.bf16.mxu1 %v6239_v39 }
 0x508   :  { %5682 = vmatpush1.bf16.msra.mxu0 %v7132_v10 }
 0x509   :  { %5684 = vmatprep.subr.bf16.mxu0 %v7135_v31 }
 0x50a   :  { %5652 = vmatpush3.bf16.msra.mxu1 %v7186_v63 }
 0x50b   :  { %5653 = vmatprep.subr.bf16.mxu1 %v6239_v39 }
 0x50c   :  { %5686 = vmatpush1.bf16.msra.mxu0 %v7138_v38 }
 0x50d   :  { %5688 = vmatprep.subr.bf16.mxu0 %v7141_v48 }
 0x50e   :  { %5655 = vmatpush3.bf16.msra.mxu1 %v7189_v2 }
 0x50f   :  { %5656 = vmatprep.subr.bf16.mxu1 %v6239_v39 }
 0x510   :  { %5690 = vmatpush1.bf16.msra.mxu0 %v7144_v15 }
 0x511   :  { %5723 = vmatprep.subr.bf16.mxu0 %v6239_v39 }
 0x512   :  { %5658 = vmatpush3.bf16.msra.mxu1 %v7193_v7 }
 0x513   :  { %5692 = vmatprep.subr.bf16.mxu1 %v7040_v49 }
 0x5a6   :  { %v2753_v50 = vpop.f32.mrb[18].mxu0  ;;  %v2963_v4 = vpop.f32.mrb[6].mxu1 }
 0x5a7   :  { %v2754_v18 = vadd.f32 %v6996_v20, %v2753_v50  ;;  %v4619_v35 = vpop.f32.mrb[19].mxu0  ;;  %v2965_v45 = vpop.f32.mrb[7].mxu1 }
 0x5a9   :  { %2757 = vst [vmem:[%s7430_s7 + $0x10] sm:$0xff] %v2754_v18 }
 0x5c6   :  { %v2892_v28 = vpop.f32.mrb[6].mxu0 }
 0x5c7   :  { %6101 = vtanh.f32 %v2892_v28  ;;  %v2894_v19 = vpop.f32.mrb[7].mxu0 }
 0x5c8   :  { %6103 = vtanh.f32 %v2894_v19 }
 0x5c9   :  { %6105 = vtanh.f32 %v2963_v4 }
 0x5ca   :  { %6107 = vtanh.f32 %v2965_v45 }
 0x5d1   :  { %v6102_v54 = vpop.eup %6101 }
 0x5d2   :  { %v6104_v41 = vpop.eup %6103  ;;  %v2976_v3 = vmul.f32 0.5, %v6102_v54 }
 0x5d3   :  { %v2978_v53 = vmul.f32 0.5, %v6104_v41  ;;  %v6106_v33 = vpop.eup %6105 }
 0x5d4   :  { %v2977_v16 = vadd.f32 0.5, %v2976_v3  ;;  %v6108_v56 = vpop.eup %6107 }
 0x5d5   :  { %v2979_v6 = vadd.f32 0.5, %v2978_v53  ;;  %v2980_v32 = vmul.f32 0.5, %v6108_v56  ;;  %v3716_v56 = vld [vmem:[#allocation5 + $0x30] sm:$0xff] }
 0x5d6   :  { %v2983_v22 = vmul.f32 %v6106_v33, %v2977_v16 }
 0x5d7   :  { %v2982_v37 = vmul.f32 %v2979_v6, %v7097_v59  ;;  %v2981_v43 = vadd.f32 0.5, %v2980_v32  ;;  %v3721_v32 = vld [vmem:[#allocation5 + $0x58] sm:$0xff] }
 0x5d9   :  { %v7203_v12 = vadd.f32 %v2983_v22, %v2982_v37 }
 0x5db   :  { %6109 = vtanh.f32 %v7203_v12 }
 0x5e5   :  { %v6110_v50 = vpop.eup %6109 }
 0x5e6   :  { %v2986_v4 = vmul.f32 %v6110_v50, %v2981_v43  ;;  %v3725_v43 = vld [vmem:[#allocation5 + $0x78] sm:$0xff] }
 0x5e8   :  { %4653 = vmatmul.mubr.f32.vlgmr.msra.gmra.mrb[18].mxu1 %v2986_v4  ;;  %3207 = vmatmul.mubr.f32.vlgmr.msra.gmra.mrb[8].mxu0 %v2986_v4 }
 0x5e9   :  { %5694 = vmatpush1.bf16.msra.mxu1 %v7042_v17  ;;  %3277 = vmatprep.mubr.f32.mxu1 %v6231_v13 }
 0x5ea   :  { %5696 = vmatprep.subr.bf16.mxu1 %v7046_v36  ;;  %5725 = vmatpush3.bf16.msra.mxu0 %v7166_v47 }
 0x5eb   :  { %5726 = vmatprep.subr.bf16.mxu0 %v6239_v39  ;;  %4687 = vmatprep.mubr.msk.f32.mxu0 %vm6240_vm8, %v6231_v13 }
 0x5ed   :  { %5698 = vmatpush1.bf16.msra.mxu1 %v7048_v9 }
 0x5ee   :  { %5700 = vmatprep.subr.bf16.mxu1 %v7052_v26  ;;  %5728 = vmatpush3.bf16.msra.mxu0 %v7170_v58 }
 0x5ef   :  { %5729 = vmatprep.subr.bf16.mxu0 %v6239_v39 }
 0x5f1   :  { %5702 = vmatpush1.bf16.msra.mxu1 %v7054_v55 }
 0x5f2   :  { %5704 = vmatprep.subr.bf16.mxu1 %v7058_v60  ;;  %5731 = vmatpush3.bf16.msra.mxu0 %v7174_v23 }
 0x5f3   :  { %5732 = vmatprep.subr.bf16.mxu0 %v6239_v39 }
 0x5f5   :  { %5706 = vmatpush1.bf16.msra.mxu1 %v7060_v21 }
 0x5f6   :  { %5708 = vmatprep.subr.bf16.mxu1 %v7064_v29  ;;  %5734 = vmatpush3.bf16.msra.mxu0 %v7178_v30 }
 0x5f7   :  { %5735 = vmatprep.subr.bf16.mxu0 %v6239_v39 }
 0x5f9   :  { %5710 = vmatpush1.bf16.msra.mxu1 %v7066_v51 }
 0x5fa   :  { %5712 = vmatprep.subr.bf16.mxu1 %v7070_v61  ;;  %5737 = vmatpush3.bf16.msra.mxu0 %v7182_v62 }
 0x5fb   :  { %5738 = vmatprep.subr.bf16.mxu0 %v6239_v39 }
 0x5fd   :  { %5714 = vmatpush1.bf16.msra.mxu1 %v7072_v40 }
 0x5fe   :  { %5716 = vmatprep.subr.bf16.mxu1 %v7076_v14  ;;  %5740 = vmatpush3.bf16.msra.mxu0 %v7186_v63 }
 0x5ff   :  { %5741 = vmatprep.subr.bf16.mxu0 %v6239_v39 }
 0x601   :  { %5718 = vmatpush1.bf16.msra.mxu1 %v7078_v0 }
 0x602   :  { %5720 = vmatprep.subr.bf16.mxu1 %v7082_v8  ;;  %5743 = vmatpush3.bf16.msra.mxu0 %v7189_v2 }
 0x603   :  { %5744 = vmatprep.subr.bf16.mxu0 %v6239_v39 }
 0x605   :  { %5722 = vmatpush1.bf16.msra.mxu1 %v7084_v42 }
 0x606   :  { %5780 = vmatprep.subr.bf16.mxu1 %v7040_v49  ;;  %5746 = vmatpush3.bf16.msra.mxu0 %v7193_v7 }
 0x607   :  { %5748 = vmatprep.subr.bf16.mxu0 %v7088_v52 }
 0x608   :  { %3278 = vmatmul.mubr.f32.vlgmr.msra.gmra.mrb[8].mxu1 %v2986_v4 }
 0x609   :  { %5782 = vmatpush1.bf16.msra.mxu1 %v7042_v17  ;;  %3593 = vmatprep.mubr.f32.mxu1 %v6231_v13 }
 0x60a   :  { %5784 = vmatprep.subr.bf16.mxu1 %v7046_v36 }
 0x60d   :  { %5786 = vmatpush1.bf16.msra.mxu1 %v7048_v9 }
 0x60e   :  { %5788 = vmatprep.subr.bf16.mxu1 %v7052_v26 }
 0x611   :  { %5790 = vmatpush1.bf16.msra.mxu1 %v7054_v55 }
 0x612   :  { %5792 = vmatprep.subr.bf16.mxu1 %v7058_v60 }
 0x615   :  { %5794 = vmatpush1.bf16.msra.mxu1 %v7060_v21 }
 0x616   :  { %5796 = vmatprep.subr.bf16.mxu1 %v7064_v29 }
 0x619   :  { %5798 = vmatpush1.bf16.msra.mxu1 %v7066_v51 }
 0x61a   :  { %5800 = vmatprep.subr.bf16.mxu1 %v7070_v61 }
 0x61d   :  { %5802 = vmatpush1.bf16.msra.mxu1 %v7072_v40 }
 0x61e   :  { %5804 = vmatprep.subr.bf16.mxu1 %v7076_v14 }
 0x621   :  { %5806 = vmatpush1.bf16.msra.mxu1 %v7078_v0 }
 0x622   :  { %5808 = vmatprep.subr.bf16.mxu1 %v7082_v8 }
 0x625   :  { %5810 = vmatpush1.bf16.msra.mxu1 %v7084_v42 }
 0x626   :  { %5811 = vmatprep.subr.bf16.mxu1 %v6239_v39 }
 0x6bb   :  { %v3069_v49 = vpop.f32.mrb[18].mxu1  ;;  %v3208_v17 = vpop.f32.mrb[8].mxu0 }
 0x6bc   :  { %v3070_v36 = vadd.f32 %v6996_v20, %v3069_v49  ;;  %v4654_v9 = vpop.f32.mrb[19].mxu1  ;;  %v3210_v26 = vpop.f32.mrb[9].mxu0 }
 0x6bd   :  { %6111 = vtanh.f32 %v3210_v26  ;;  %v3720_v9 = vld [vmem:[#allocation5 + $0x50] sm:$0xff] }
 0x6be   :  { %3073 = vst [vmem:[%s7430_s7 + $0x18] sm:$0xff] %v3070_v36  ;;  %6113 = vtanh.f32 %v3208_v17  ;;  %v5871_v36 = vpack.c.bf16 %v3725_v43, %v3721_v32  ;;  %v3724_v26 = vld [vmem:[#allocation5 + $0x70] sm:$0xff]  ;;  %v3943_v43 = vld [vmem:[#allocation7 + $0x40] sm:$0xff] }
 0x6c7   :  { %v6112_v60 = vpop.eup %6111 }
 0x6c8   :  { %v6114_v29 = vpop.eup %6113  ;;  %v3294_v51 = vmul.f32 0.5, %v6112_v60  ;;  %v3733_v60 = vld [vmem:[#allocation5 + $0xb8] sm:$0xff] }
 0x6c9   :  { %v3292_v61 = vmul.f32 0.5, %v6114_v29 }
 0x6ca   :  { %v3295_v40 = vadd.f32 0.5, %v3294_v51  ;;  %v3728_v51 = vld [vmem:[#allocation5 + $0x90] sm:$0xff] }
 0x6cb   :  { %v3293_v14 = vadd.f32 0.5, %v3292_v61  ;;  %v3732_v61 = vld [vmem:[#allocation5 + $0xb0] sm:$0xff] }
 0x6cc   :  { %v3298_v8 = vmul.f32 %v3295_v40, %v7203_v12  ;;  %v3712_v12 = vld [vmem:[#allocation5 + $0x10] sm:$0xff]  ;;  %v3737_v40 = vld [vmem:[#allocation5 + $0xd8] sm:$0xff] }
 0x6cd   :  { %v5869_v49 = vpack.c.bf16 %v3716_v56, %v3712_v12  ;;  %v3941_v12 = vld [vmem:[#allocation7 + $0x30] sm:$0xff]  ;;  %v3942_v56 = vld [vmem:[#allocation7 + $0x38] sm:$0xff] }
 0x6ce   :  { %v7354_v32 = vpack.c.bf16 %v3942_v56, %v3941_v12  ;;  %v4051_v12 = vld [vmem:[#allocation5 + $0xc8] sm:$0xff] }
 0x6cf   :  { %v4055_v56 = vld [vmem:[#allocation5 + $0xe8] sm:$0xff] }
 0x6db   :  { %v3279_v55 = vpop.f32.mrb[8].mxu1 }
 0x6dc   :  { %6115 = vtanh.f32 %v3279_v55  ;;  %v3281_v21 = vpop.f32.mrb[9].mxu1  ;;  %v3729_v55 = vld [vmem:[#allocation5 + $0x98] sm:$0xff] }
 0x6dd   :  { %6117 = vtanh.f32 %v3281_v21  ;;  %v5873_v21 = vpack.c.bf16 %v3724_v26, %v3720_v9  ;;  %v5875_v29 = vpack.c.bf16 %v3733_v60, %v3729_v55  ;;  %v3947_v9 = vld [vmem:[#allocation7 + $0x60] sm:$0xff]  ;;  %v3948_v26 = vld [vmem:[#allocation7 + $0x68] sm:$0xff]  ;;  %v3949_v60 = vld [vmem:[#allocation7 + $0x70] sm:$0xff] }
 0x6de   :  { %v7366_v55 = vpack.c.bf16 %v3948_v26, %v3947_v9  ;;  %v4059_v9 = vld [vmem:[#allocation5 + $0x108] sm:$0xff] }
 0x6df   :  { %v4063_v26 = vld [vmem:[#allocation5 + $0x128] sm:$0xff] }
 0x6e6   :  { %v6116_v0 = vpop.eup %6115 }
 0x6e7   :  { %v3299_v42 = vmul.f32 %v6116_v0, %v3293_v14  ;;  %v6118_v18 = vpop.eup %6117  ;;  %v3741_v14 = vld [vmem:[#allocation5 + $0xf8] sm:$0xff]  ;;  %v5877_v0 = vpack.c.bf16 %v3732_v61, %v3728_v51  ;;  %v4027_v51 = vld [vmem:[#allocation5 + $0x8] sm:$0xff] }
 0x6e8   :  { %v3296_v35 = vmul.f32 0.5, %v6118_v18  ;;  %v3745_v18 = vld [vmem:[#allocation5 + $0x118] sm:$0xff]  ;;  %v4031_v61 = vld [vmem:[#allocation5 + $0x28] sm:$0xff] }
 0x6e9   :  { %v7263_v59 = vadd.f32 %v3299_v42, %v3298_v8  ;;  %v5879_v8 = vpack.c.bf16 %v3741_v14, %v3737_v40  ;;  %v3736_v42 = vld [vmem:[#allocation5 + $0xd0] sm:$0xff]  ;;  %v5923_v40 = vpack.c.bf16 %v4031_v61, %v4027_v51  ;;  %v4062_v51 = vld [vmem:[#allocation5 + $0x120] sm:$0xff]  ;;  %v4071_v61 = vld [vmem:[#allocation5 + $0x168] sm:$0xff] }
 0x6ea   :  { %v3297_v45 = vadd.f32 0.5, %v3296_v35  ;;  %v3749_v35 = vld [vmem:[#allocation5 + $0x138] sm:$0xff] }
 0x6eb   :  { %6119 = vtanh.f32 %v7263_v59 }
 0x6f5   :  { %v6120_v28 = vpop.eup %6119 }
 0x6f6   :  { %v3302_v19 = vmul.f32 %v6120_v28, %v3297_v45  ;;  %v5883_v28 = vpack.c.bf16 %v3749_v35, %v3745_v18 }
 0x6f8   :  { %4688 = vmatmul.mubr.f32.vlgmr.msra.gmra.mrb[20].mxu0 %v3302_v19  ;;  %3594 = vmatmul.mubr.f32.vlgmr.msra.gmra.mrb[10].mxu1 %v3302_v19 }
 0x6f9   :  { %5750 = vmatpush1.bf16.msra.mxu0 %v7100_v27  ;;  %3522 = vmatprep.mubr.f32.mxu0 %v6231_v13 }
 0x6fa   :  { %5752 = vmatprep.subr.bf16.mxu0 %v7102_v44  ;;  %5813 = vmatpush3.bf16.msra.mxu1 %v7166_v47 }
 0x6fb   :  { %5814 = vmatprep.subr.bf16.mxu1 %v6239_v39  ;;  %4722 = vmatprep.mubr.msk.f32.mxu1 %vm6240_vm8, %v6231_v13 }
 0x6fd   :  { %5754 = vmatpush1.bf16.msra.mxu0 %v7105_v24 }
 0x6fe   :  { %5756 = vmatprep.subr.bf16.mxu0 %v7109_v34  ;;  %5816 = vmatpush3.bf16.msra.mxu1 %v7170_v58 }
 0x6ff   :  { %5817 = vmatprep.subr.bf16.mxu1 %v6239_v39 }
 0x701   :  { %5758 = vmatpush1.bf16.msra.mxu0 %v7114_v25 }
 0x702   :  { %5760 = vmatprep.subr.bf16.mxu0 %v7117_v46  ;;  %5819 = vmatpush3.bf16.msra.mxu1 %v7174_v23 }
 0x703   :  { %5820 = vmatprep.subr.bf16.mxu1 %v6239_v39 }
 0x705   :  { %5762 = vmatpush1.bf16.msra.mxu0 %v7120_v5 }
 0x706   :  { %5764 = vmatprep.subr.bf16.mxu0 %v7123_v1  ;;  %5822 = vmatpush3.bf16.msra.mxu1 %v7178_v30 }
 0x707   :  { %5823 = vmatprep.subr.bf16.mxu1 %v6239_v39 }
 0x709   :  { %5766 = vmatpush1.bf16.msra.mxu0 %v7126_v57 }
 0x70a   :  { %5768 = vmatprep.subr.bf16.mxu0 %v7129_v11  ;;  %5825 = vmatpush3.bf16.msra.mxu1 %v7182_v62 }
 0x70b   :  { %5826 = vmatprep.subr.bf16.mxu1 %v6239_v39 }
 0x70d   :  { %5770 = vmatpush1.bf16.msra.mxu0 %v7132_v10 }
 0x70e   :  { %5772 = vmatprep.subr.bf16.mxu0 %v7135_v31  ;;  %5828 = vmatpush3.bf16.msra.mxu1 %v7186_v63  ;;  %v3767_v31 = vld [vmem:[#allocation5 + $0x1c8] sm:$0xff] }
 0x70f   :  { %5829 = vmatprep.subr.bf16.mxu1 %v6239_v39 }
 0x711   :  { %5774 = vmatpush1.bf16.msra.mxu0 %v7138_v38 }
 0x712   :  { %5776 = vmatprep.subr.bf16.mxu0 %v7141_v48  ;;  %5831 = vmatpush3.bf16.msra.mxu1 %v7189_v2  ;;  %v3713_v48 = vld [vmem:[#allocation5 + $0x18] sm:$0xff] }
 0x713   :  { %5832 = vmatprep.subr.bf16.mxu1 %v6239_v39 }
 0x715   :  { %5778 = vmatpush1.bf16.msra.mxu0 %v7144_v15 }
 0x716   :  { %5836 = vmatprep.subr.bf16.mxu0 %v7088_v52  ;;  %5834 = vmatpush3.bf16.msra.mxu1 %v7193_v7  ;;  %v3759_v52 = vld [vmem:[#allocation5 + $0x188] sm:$0xff] }
 0x718   :  { %3523 = vmatmul.mubr.f32.vlgmr.msra.gmra.mrb[10].mxu0 %v3302_v19  ;;  %v3744_v19 = vld [vmem:[#allocation5 + $0x110] sm:$0xff] }
 0x719   :  { %5838 = vmatpush1.bf16.msra.mxu0 %v7100_v27  ;;  %3838 = vmatprep.mubr.f32.mxu0 %v6231_v13  ;;  %v3763_v27 = vld [vmem:[#allocation5 + $0x1a8] sm:$0xff] }
 0x71a   :  { %5840 = vmatprep.subr.bf16.mxu0 %v7102_v44  ;;  %v3758_v44 = vld [vmem:[#allocation5 + $0x180] sm:$0xff] }
 0x71d   :  { %5842 = vmatpush1.bf16.msra.mxu0 %v7105_v24  ;;  %v7312_v24 = vpack.c.bf16 %v3763_v27, %v3759_v52  ;;  %v3748_v52 = vld [vmem:[#allocation5 + $0x130] sm:$0xff]  ;;  %v3753_v27 = vld [vmem:[#allocation5 + $0x158] sm:$0xff] }
 0x71e   :  { %5844 = vmatprep.subr.bf16.mxu0 %v7109_v34  ;;  %v3762_v34 = vld [vmem:[#allocation5 + $0x1a0] sm:$0xff] }
 0x71f   :  { %v7314_v38 = vpack.c.bf16 %v3762_v34, %v3758_v44  ;;  %v3757_v44 = vld [vmem:[#allocation5 + $0x178] sm:$0xff]  ;;  %v5885_v34 = vpack.c.bf16 %v3748_v52, %v3744_v19 }
 0x721   :  { %5846 = vmatpush1.bf16.msra.mxu0 %v7114_v25  ;;  %v3771_v25 = vld [vmem:[#allocation5 + $0x1e8] sm:$0xff] }
 0x722   :  { %5848 = vmatprep.subr.bf16.mxu0 %v7117_v46  ;;  %v7316_v46 = vpack.c.bf16 %v3771_v25, %v3767_v31  ;;  %v5887_v31 = vpack.c.bf16 %v3757_v44, %v3753_v27  ;;  %v3752_v25 = vld [vmem:[#allocation5 + $0x150] sm:$0xff] }
 0x725   :  { %5850 = vmatpush1.bf16.msra.mxu0 %v7120_v5  ;;  %v3766_v5 = vld [vmem:[#allocation5 + $0x1c0] sm:$0xff] }
 0x726   :  { %5852 = vmatprep.subr.bf16.mxu0 %v7123_v1  ;;  %v3770_v1 = vld [vmem:[#allocation5 + $0x1e0] sm:$0xff] }
 0x729   :  { %5854 = vmatpush1.bf16.msra.mxu0 %v7126_v57  ;;  %v3717_v57 = vld [vmem:[#allocation5 + $0x38] sm:$0xff] }
 0x72a   :  { %5856 = vmatprep.subr.bf16.mxu0 %v7129_v11  ;;  %v7320_v11 = vpack.c.bf16 %v3770_v1, %v3766_v5  ;;  %v3756_v5 = vld [vmem:[#allocation5 + $0x170] sm:$0xff]  ;;  %v3761_v1 = vld [vmem:[#allocation5 + $0x198] sm:$0xff] }
 0x72d   :  { %5858 = vmatpush1.bf16.msra.mxu0 %v7132_v10  ;;  %v7322_v10 = vpack.c.bf16 %v3717_v57, %v3713_v48  ;;  %v3765_v48 = vld [vmem:[#allocation5 + $0x1b8] sm:$0xff]  ;;  %v5889_v57 = vpack.c.bf16 %v3756_v5, %v3752_v25 }
 0x72e   :  { %5860 = vmatprep.subr.bf16.mxu0 %v7312_v24 }
 0x72f   :  { %5868 = vmatprep.subr.bf16.mxu1 %v7322_v10 }
 0x731   :  { %5862 = vmatpush1.bf16.msra.mxu0 %v7314_v38 }
 0x732   :  { %5864 = vmatprep.subr.bf16.mxu0 %v7316_v46 }
 0x735   :  { %5866 = vmatpush1.bf16.msra.mxu0 %v7320_v11 }
 0x736   :  { %5899 = vmatprep.subr.bf16.mxu0 %v6239_v39 }
 0x7cb   :  { %v3385_v15 = vpop.f32.mrb[20].mxu0  ;;  %v3595_v47 = vpop.f32.mrb[10].mxu1 }
 0x7cc   :  { %v3386_v58 = vadd.f32 %v6996_v20, %v3385_v15  ;;  %v4689_v23 = vpop.f32.mrb[21].mxu0  ;;  %v3597_v30 = vpop.f32.mrb[11].mxu1  ;;  %v5891_v15 = vpack.c.bf16 %v3765_v48, %v3761_v1 }
 0x7cd   :  { %v3769_v23 = vld [vmem:[#allocation5 + $0x1d8] sm:$0xff] }
 0x7ce   :  { %3389 = vst [vmem:[%s7430_s7 + $0x20] sm:$0xff] %v3386_v58  ;;  %v3764_v58 = vld [vmem:[#allocation5 + $0x1b0] sm:$0xff] }
 0x7eb   :  { %v3524_v62 = vpop.f32.mrb[10].mxu0 }
 0x7ec   :  { %6121 = vtanh.f32 %v3524_v62  ;;  %v3526_v63 = vpop.f32.mrb[11].mxu0 }
 0x7ed   :  { %6123 = vtanh.f32 %v3526_v63 }
 0x7ee   :  { %6125 = vtanh.f32 %v3595_v47  ;;  %v3760_v47 = vld [vmem:[#allocation5 + $0x190] sm:$0xff] }
 0x7ef   :  { %6127 = vtanh.f32 %v3597_v30  ;;  %v3773_v30 = vld [vmem:[#allocation5 + $0x1f8] sm:$0xff]  ;;  %v5893_v62 = vpack.c.bf16 %v3764_v58, %v3760_v47  ;;  %v4030_v47 = vld [vmem:[#allocation5 + $0x20] sm:$0xff]  ;;  %v4035_v58 = vld [vmem:[#allocation5 + $0x48] sm:$0xff] }
 0x7f0   :  { %v5895_v63 = vpack.c.bf16 %v3773_v30, %v3769_v23  ;;  %v4039_v23 = vld [vmem:[#allocation5 + $0x68] sm:$0xff] }
 0x7f6   :  { %v6122_v2 = vpop.eup %6121 }
 0x7f7   :  { %v6124_v7 = vpop.eup %6123  ;;  %v3608_v54 = vmul.f32 0.5, %v6122_v2  ;;  %v3768_v2 = vld [vmem:[#allocation5 + $0x1d0] sm:$0xff] }
 0x7f8   :  { %v3610_v41 = vmul.f32 0.5, %v6124_v7  ;;  %v6126_v53 = vpop.eup %6125  ;;  %v3772_v7 = vld [vmem:[#allocation5 + $0x1f0] sm:$0xff] }
 0x7f9   :  { %v3609_v3 = vadd.f32 0.5, %v3608_v54  ;;  %v6128_v22 = vpop.eup %6127  ;;  %v5897_v54 = vpack.c.bf16 %v3772_v7, %v3768_v2  ;;  %v5927_v7 = vpack.c.bf16 %v4039_v23, %v4035_v58 }
 0x7fa   :  { %v3611_v16 = vadd.f32 0.5, %v3610_v41  ;;  %v3612_v37 = vmul.f32 0.5, %v6128_v22  ;;  %v3936_v41 = vld [vmem:[#allocation7 + $0x8] sm:$0xff] }
 0x7fb   :  { %v3615_v20 = vmul.f32 %v6126_v53, %v3609_v3  ;;  %v3937_v53 = vld [vmem:[#allocation7 + $0x10] sm:$0xff]  ;;  %v3940_v22 = vld [vmem:[#allocation7 + $0x28] sm:$0xff] }
 0x7fc   :  { %v3614_v33 = vmul.f32 %v3611_v16, %v7263_v59  ;;  %v3613_v50 = vadd.f32 0.5, %v3612_v37  ;;  %v3740_v59 = vld [vmem:[#allocation5 + $0xf0] sm:$0xff]  ;;  %v3938_v16 = vld [vmem:[#allocation7 + $0x18] sm:$0xff] }
 0x7fd   :  { %v5881_v45 = vpack.c.bf16 %v3740_v59, %v3736_v42 }
 0x7fe   :  { %v7333_v6 = vadd.f32 %v3615_v20, %v3614_v33  ;;  %v7346_v20 = vpack.c.bf16 %v3938_v16, %v3937_v53  ;;  %v3939_v33 = vld [vmem:[#allocation7 + $0x20] sm:$0xff] }
 0x7ff   :  { %v7350_v37 = vpack.c.bf16 %v3940_v22, %v3939_v33  ;;  %v4042_v33 = vld [vmem:[#allocation5 + $0x80] sm:$0xff] }
 0x800   :  { %6129 = vtanh.f32 %v7333_v6  ;;  %v4046_v22 = vld [vmem:[#allocation5 + $0xa0] sm:$0xff] }
 0x80a   :  { %v6130_v4 = vpop.eup %6129 }
 0x80b   :  { %v3618_v17 = vmul.f32 %v6130_v4, %v3613_v50  ;;  %v3944_v50 = vld [vmem:[#allocation7 + $0x48] sm:$0xff] }
 0x80c   :  { %v7358_v4 = vpack.c.bf16 %v3944_v50, %v3943_v43  ;;  %v5933_v43 = vpack.c.bf16 %v4046_v22, %v4042_v33  ;;  %v5935_v50 = vpack.c.bf16 %v4055_v56, %v4051_v12 }
 0x80d   :  { %4723 = vmatmul.mubr.f32.vlgmr.msra.gmra.mrb[20].mxu1 %v3618_v17  ;;  %3839 = vmatmul.mubr.f32.vlgmr.msra.gmra.mrb[12].mxu0 %v3618_v17 }
 0x80e   :  { %5870 = vmatpush1.bf16.msra.mxu1 %v5869_v49  ;;  %3909 = vmatprep.mubr.f32.mxu1 %v6231_v13 }
 0x80f   :  { %5872 = vmatprep.subr.bf16.mxu1 %v5871_v36  ;;  %4757 = vmatprep.mubr.msk.f32.mxu0 %vm6240_vm8, %v6231_v13 }
 0x812   :  { %5874 = vmatpush1.bf16.msra.mxu1 %v5873_v21 }
 0x813   :  { %5876 = vmatprep.subr.bf16.mxu1 %v5875_v29 }
 0x816   :  { %5878 = vmatpush1.bf16.msra.mxu1 %v5877_v0 }
 0x817   :  { %5880 = vmatprep.subr.bf16.mxu1 %v5879_v8 }
 0x81a   :  { %5882 = vmatpush1.bf16.msra.mxu1 %v5881_v45 }
 0x81b   :  { %5884 = vmatprep.subr.bf16.mxu1 %v5883_v28 }
 0x81e   :  { %5886 = vmatpush1.bf16.msra.mxu1 %v5885_v34 }
 0x81f   :  { %5888 = vmatprep.subr.bf16.mxu1 %v5887_v31 }
 0x822   :  { %5890 = vmatpush1.bf16.msra.mxu1 %v5889_v57 }
 0x823   :  { %5892 = vmatprep.subr.bf16.mxu1 %v5891_v15 }
 0x826   :  { %5894 = vmatpush1.bf16.msra.mxu1 %v5893_v62 }
 0x827   :  { %5896 = vmatprep.subr.bf16.mxu1 %v5895_v63 }
 0x82a   :  { %5898 = vmatpush1.bf16.msra.mxu1 %v5897_v54 }
 0x82b   :  { %5956 = vmatprep.subr.bf16.mxu1 %v7322_v10  ;;  %v3935_v10 = vld [vmem:[#allocation7] sm:$0xff] }
 0x82c   :  { %v7342_v3 = vpack.c.bf16 %v3936_v41, %v3935_v10  ;;  %v4038_v10 = vld [vmem:[#allocation5 + $0x60] sm:$0xff]  ;;  %v4043_v41 = vld [vmem:[#allocation5 + $0x88] sm:$0xff] }
 0x82d   :  { %3910 = vmatmul.mubr.f32.vlgmr.msra.gmra.mrb[12].mxu1 %v3618_v17  ;;  %v3946_v17 = vld [vmem:[#allocation7 + $0x58] sm:$0xff] }
 0x82e   :  { %5958 = vmatpush1.bf16.msra.mxu1 %v5869_v49  ;;  %4225 = vmatprep.mubr.f32.mxu1 %v6231_v13  ;;  %v3945_v49 = vld [vmem:[#allocation7 + $0x50] sm:$0xff] }
 0x82f   :  { %5960 = vmatprep.subr.bf16.mxu1 %v5871_v36  ;;  %5901 = vmatpush3.bf16.msra.mxu0 %v7342_v3  ;;  %v7362_v36 = vpack.c.bf16 %v3946_v17, %v3945_v49  ;;  %v4050_v49 = vld [vmem:[#allocation5 + $0xc0] sm:$0xff] }
 0x830   :  { %5902 = vmatprep.subr.bf16.mxu0 %v6239_v39  ;;  %v4054_v17 = vld [vmem:[#allocation5 + $0xe0] sm:$0xff] }
 0x832   :  { %5962 = vmatpush1.bf16.msra.mxu1 %v5873_v21  ;;  %v3950_v21 = vld [vmem:[#allocation7 + $0x78] sm:$0xff] }
 0x833   :  { %5964 = vmatprep.subr.bf16.mxu1 %v5875_v29  ;;  %5904 = vmatpush3.bf16.msra.mxu0 %v7346_v20  ;;  %v7370_v29 = vpack.c.bf16 %v3950_v21, %v3949_v60  ;;  %v5939_v60 = vpack.c.bf16 %v4063_v26, %v4059_v9  ;;  %v4058_v21 = vld [vmem:[#allocation5 + $0x100] sm:$0xff] }
 0x834   :  { %5905 = vmatprep.subr.bf16.mxu0 %v6239_v39 }
 0x836   :  { %5966 = vmatpush1.bf16.msra.mxu1 %v5877_v0 }
 0x837   :  { %5968 = vmatprep.subr.bf16.mxu1 %v5879_v8  ;;  %5907 = vmatpush3.bf16.msra.mxu0 %v7350_v37  ;;  %v7376_v8 = vld [vmem:[%s7427_s4] ss:$0 sm:$0xff] }
 0x838   :  { %5908 = vmatprep.subr.bf16.mxu0 %v6239_v39 }
 0x83a   :  { %5970 = vmatpush1.bf16.msra.mxu1 %v5881_v45 }
 0x83b   :  { %5972 = vmatprep.subr.bf16.mxu1 %v5883_v28  ;;  %5910 = vmatpush3.bf16.msra.mxu0 %v7354_v32 }
 0x83c   :  { %5911 = vmatprep.subr.bf16.mxu0 %v6239_v39 }
 0x83e   :  { %5974 = vmatpush1.bf16.msra.mxu1 %v5885_v34 }
 0x83f   :  { %5976 = vmatprep.subr.bf16.mxu1 %v5887_v31  ;;  %5913 = vmatpush3.bf16.msra.mxu0 %v7358_v4 }
 0x840   :  { %5914 = vmatprep.subr.bf16.mxu0 %v6239_v39 }
 0x842   :  { %5978 = vmatpush1.bf16.msra.mxu1 %v5889_v57 }
 0x843   :  { %5980 = vmatprep.subr.bf16.mxu1 %v5891_v15  ;;  %5916 = vmatpush3.bf16.msra.mxu0 %v7362_v36  ;;  %v4026_v15 = vld [vmem:[#allocation5] sm:$0xff] }
 0x844   :  { %5917 = vmatprep.subr.bf16.mxu0 %v6239_v39 }
 0x846   :  { %5982 = vmatpush1.bf16.msra.mxu1 %v5893_v62 }
 0x847   :  { %5984 = vmatprep.subr.bf16.mxu1 %v5895_v63  ;;  %5919 = vmatpush3.bf16.msra.mxu0 %v7366_v55  ;;  %v5925_v63 = vpack.c.bf16 %v4030_v47, %v4026_v15 }
 0x848   :  { %5920 = vmatprep.subr.bf16.mxu0 %v6239_v39 }
 0x84a   :  { %5986 = vmatpush1.bf16.msra.mxu1 %v5897_v54  ;;  %v4034_v54 = vld [vmem:[#allocation5 + $0x40] sm:$0xff] }
 0x84b   :  { %5987 = vmatprep.subr.bf16.mxu1 %v6239_v39  ;;  %5922 = vmatpush3.bf16.msra.mxu0 %v7370_v29  ;;  %v5929_v53 = vpack.c.bf16 %v4038_v10, %v4034_v54 }
 0x84c   :  { %5924 = vmatprep.subr.bf16.mxu0 %v5923_v40  ;;  %v5941_v40 = vpack.c.bf16 %v4062_v51, %v4058_v21 }
 0x8e0   :  { %v3701_v14 = vpop.f32.mrb[20].mxu1  ;;  %v3840_v0 = vpop.f32.mrb[12].mxu0 }
 0x8e1   :  { %v3702_v42 = vadd.f32 %v7376_v8, %v3701_v14  ;;  %v4724_v59 = vpop.f32.mrb[21].mxu1  ;;  %v3842_v18 = vpop.f32.mrb[13].mxu0  ;;  %v4066_v14 = vld [vmem:[#allocation5 + $0x140] sm:$0xff] }
 0x8e2   :  { %6131 = vtanh.f32 %v3842_v18 }
 0x8e3   :  { %3705 = vst [vmem:[%s7430_s7 + $0x28] sm:$0xff] %v3702_v42  ;;  %6133 = vtanh.f32 %v3840_v0  ;;  %v4070_v0 = vld [vmem:[#allocation5 + $0x160] sm:$0xff] }
 0x8e4   :  { %v5945_v42 = vpack.c.bf16 %v4070_v0, %v4066_v14 }
 0x8ec   :  { %v6132_v45 = vpop.eup %6131 }
 0x8ed   :  { %v6134_v19 = vpop.eup %6133  ;;  %v3926_v52 = vmul.f32 0.5, %v6132_v45 }
 0x8ee   :  { %v3924_v27 = vmul.f32 0.5, %v6134_v19 }
 0x8ef   :  { %v3927_v44 = vadd.f32 0.5, %v3926_v52 }
 0x8f0   :  { %v3925_v34 = vadd.f32 0.5, %v3924_v27 }
 0x8f1   :  { %v3930_v25 = vmul.f32 %v3927_v44, %v7333_v6  ;;  %v4047_v6 = vld [vmem:[#allocation5 + $0xa8] sm:$0xff] }
 0x8f2   :  { %v5931_v16 = vpack.c.bf16 %v4047_v6, %v4043_v41 }
 0x900   :  { %v3911_v35 = vpop.f32.mrb[12].mxu1 }
 0x901   :  { %6135 = vtanh.f32 %v3911_v35  ;;  %v3913_v28 = vpop.f32.mrb[13].mxu1 }
 0x902   :  { %6137 = vtanh.f32 %v3913_v28 }
 0x90b   :  { %v6136_v31 = vpop.eup %6135 }
 0x90c   :  { %v3931_v5 = vmul.f32 %v6136_v31, %v3925_v34  ;;  %v6138_v48 = vpop.eup %6137 }
 0x90d   :  { %v3928_v57 = vmul.f32 0.5, %v6138_v48 }
 0x90e   :  { %v7383_v1 = vadd.f32 %v3931_v5, %v3930_v25 }
 0x90f   :  { %v3929_v30 = vadd.f32 0.5, %v3928_v57 }
 0x910   :  { %6139 = vtanh.f32 %v7383_v1 }
 0x91a   :  { %v6140_v62 = vpop.eup %6139 }
 0x91b   :  { %v3934_v2 = vmul.f32 %v6140_v62, %v3929_v30 }
 0x91d   :  { %4758 = vmatmul.mubr.f32.vlgmr.msra.gmra.mrb[22].mxu0 %v3934_v2  ;;  %4226 = vmatmul.mubr.f32.vlgmr.msra.gmra.mrb[14].mxu1 %v3934_v2 }
 0x91e   :  { %5926 = vmatpush1.bf16.msra.mxu0 %v5925_v63  ;;  %4154 = vmatprep.mubr.f32.mxu0 %v6231_v13 }
 0x91f   :  { %5928 = vmatprep.subr.bf16.mxu0 %v5927_v7  ;;  %5989 = vmatpush3.bf16.msra.mxu1 %v7342_v3  ;;  %v5937_v3 = vpack.c.bf16 %v4054_v17, %v4050_v49 }
 0x920   :  { %5990 = vmatprep.subr.bf16.mxu1 %v6239_v39  ;;  %4792 = vmatprep.mubr.msk.f32.mxu1 %vm6240_vm8, %v6231_v13  ;;  %v4067_v13 = vld [vmem:[#allocation5 + $0x148] sm:$0xff] }
 0x922   :  { %5930 = vmatpush1.bf16.msra.mxu0 %v5929_v53 }
 0x923   :  { %5932 = vmatprep.subr.bf16.mxu0 %v5931_v16  ;;  %5992 = vmatpush3.bf16.msra.mxu1 %v7346_v20  ;;  %v5943_v20 = vpack.c.bf16 %v4071_v61, %v4067_v13 }
 0x924   :  { %5993 = vmatprep.subr.bf16.mxu1 %v6239_v39 }
 0x926   :  { %5934 = vmatpush1.bf16.msra.mxu0 %v5933_v43 }
 0x927   :  { %5936 = vmatprep.subr.bf16.mxu0 %v5935_v50  ;;  %5995 = vmatpush3.bf16.msra.mxu1 %v7350_v37 }
 0x928   :  { %5996 = vmatprep.subr.bf16.mxu1 %v6239_v39 }
 0x92a   :  { %5938 = vmatpush1.bf16.msra.mxu0 %v5937_v3 }
 0x92b   :  { %5940 = vmatprep.subr.bf16.mxu0 %v5939_v60  ;;  %5998 = vmatpush3.bf16.msra.mxu1 %v7354_v32 }
 0x92c   :  { %5999 = vmatprep.subr.bf16.mxu1 %v6239_v39 }
 0x92e   :  { %5942 = vmatpush1.bf16.msra.mxu0 %v5941_v40 }
 0x92f   :  { %5944 = vmatprep.subr.bf16.mxu0 %v5943_v20  ;;  %6001 = vmatpush3.bf16.msra.mxu1 %v7358_v4 }
 0x930   :  { %6002 = vmatprep.subr.bf16.mxu1 %v6239_v39 }
 0x932   :  { %5946 = vmatpush1.bf16.msra.mxu0 %v5945_v42 }
 0x933   :  { %5948 = vmatprep.subr.bf16.mxu0 %v7312_v24  ;;  %6004 = vmatpush3.bf16.msra.mxu1 %v7362_v36 }
 0x934   :  { %6005 = vmatprep.subr.bf16.mxu1 %v6239_v39 }
 0x936   :  { %5950 = vmatpush1.bf16.msra.mxu0 %v7314_v38 }
 0x937   :  { %5952 = vmatprep.subr.bf16.mxu0 %v7316_v46  ;;  %6007 = vmatpush3.bf16.msra.mxu1 %v7366_v55 }
 0x938   :  { %6008 = vmatprep.subr.bf16.mxu1 %v6239_v39 }
 0x93a   :  { %5954 = vmatpush1.bf16.msra.mxu0 %v7320_v11 }
 0x93b   :  { %6010 = vmatpush3.bf16.msra.mxu1 %v7370_v29 }
 0x93d   :  { %4155 = vmatmul.mubr.f32.vlgmr.msra.gmra.mrb[14].mxu0 %v3934_v2 }
 0x9f0   :  { %v4017_v37 = vpop.f32.mrb[22].mxu0  ;;  %v4227_v32 = vpop.f32.mrb[14].mxu1 }
 0x9f1   :  { %v4018_v24 = vadd.f32 %v7376_v8, %v4017_v37  ;;  %v4759_v4 = vpop.f32.mrb[23].mxu0  ;;  %v4229_v36 = vpop.f32.mrb[15].mxu1 }
 0x9f3   :  { %4021 = vst [vmem:[%s7430_s7 + $0x30] sm:$0xff] %v4018_v24 }
 0xa10   :  { %v4156_v38 = vpop.f32.mrb[14].mxu0 }
 0xa11   :  { %6141 = vtanh.f32 %v4156_v38  ;;  %v4158_v46 = vpop.f32.mrb[15].mxu0 }
 0xa12   :  { %6143 = vtanh.f32 %v4158_v46 }
 0xa13   :  { %6145 = vtanh.f32 %v4227_v32 }
 0xa14   :  { %6147 = vtanh.f32 %v4229_v36 }
 0xa1b   :  { %v6142_v39 = vpop.eup %6141 }
 0xa1c   :  { %v6144_v11 = vpop.eup %6143  ;;  %v4240_v55 = vmul.f32 0.5, %v6142_v39 }
 0xa1d   :  { %v4242_v29 = vmul.f32 0.5, %v6144_v11  ;;  %v6146_v18 = vpop.eup %6145 }
 0xa1e   :  { %v4241_v59 = vadd.f32 0.5, %v4240_v55  ;;  %v6148_v52 = vpop.eup %6147 }
 0xa1f   :  { %v4243_v35 = vadd.f32 0.5, %v4242_v29  ;;  %v4244_v27 = vmul.f32 0.5, %v6148_v52 }
 0xa20   :  { %v4247_v45 = vmul.f32 %v6146_v18, %v4241_v59 }
 0xa21   :  { %v4246_v28 = vmul.f32 %v4243_v35, %v7383_v1  ;;  %v4245_v44 = vadd.f32 0.5, %v4244_v27 }
 0xa23   :  { %v4248_v19 = vadd.f32 %v4247_v45, %v4246_v28 }
 0xa25   :  { %6149 = vtanh.f32 %v4248_v19  ;;  %4339 = vst [vmem:[%s7432_s9] sm:$0xff] %v4248_v19 }
 0xa2f   :  { %v6150_v34 = vpop.eup %6149 }
 0xa30   :  { %v4250_v31 = vmul.f32 %v6150_v34, %v4245_v44 }
 0xa32   :  { %4793 = vmatmul.mubr.f32.vlgmr.msra.gmra.mrb[22].mxu1 %v4250_v31  ;;  %4338 = vst [vmem:[%s7431_s8] sm:$0xff] %v4250_v31 }
 0xb05   :  { %v4333_v25 = vpop.f32.mrb[22].mxu1 }
 0xb06   :  { %v4334_v5 = vadd.f32 %v7376_v8, %v4333_v25  ;;  %v4794_v1 = vpop.f32.mrb[23].mxu1 }
 0xb08   :  { %4337 = vst [vmem:[%s7430_s7 + $0x38] sm:$0xff] %v4334_v5 }
 0xb09   :  { %4352 = vsyncpa [#allocation4], 1 }
 0xb0a   :  { %4353 = vsyncpa [#allocation6], 1 }

</bundles_post_ra>
